<compile_context>
chip_gen: v5e
topology: v5e:2x2
jax: 0.10.0
libtpu: 0.0.40
codegen_flags: <defaults>
</compile_context>

<pallas_src>
import functools
import math

import jax
import jax.numpy as jnp
from jax.experimental import pallas as pl
from jax.experimental.pallas import tpu as pltpu


def _vmem_limit_bytes():
    """Per-chip VMEM budget: physical capacity minus headroom for the
    pipeline's I/O double-buffers and compiler-internal scratch
    (~100 MiB on v5e/v6e's 128 MiB, ~36 MiB on v7x's 64 MiB)."""
    cap = 128 * 1024 * 1024
    try:
        info_cap = int(pltpu.get_tpu_info().vmem_capacity_bytes)
        if info_cap > 0:
            cap = info_cap
    except Exception:
        pass
    return max(cap - 28 * 1024 * 1024, cap // 2)


VMEM_LIMIT = _vmem_limit_bytes()


# ----------------------------------------------------------------------------
# ALiBi slopes / combined bias (matches create_alibi_exponential semantics)
# ----------------------------------------------------------------------------
def get_exponential_slopes(n):
    sizes = [64, 128, 256, 512, 1024, 2048, 4096, 8192, 16384, 32768]
    slopes = []
    for i in range(n):
        u = i
        while u >= len(sizes):
            u -= len(sizes)
        slopes.append(math.log(0.1) / sizes[u])
    return slopes


def build_alibi_causal_mask(num_heads, seq_len):
    """Combined causal + exponential-ALiBi additive bias, (H, T, T) f32.

    Precomputed once (this is PyTorch's `_future_mask` buffer) so it is not
    recomputed per batch element inside the kernel.  Masked positions use a
    large finite negative (-1e30) instead of -inf for robustness."""
    slopes = jnp.abs(jnp.asarray(get_exponential_slopes(num_heads),
                                 jnp.float32)).reshape(num_heads, 1, 1)
    ctx = jnp.arange(seq_len, dtype=jnp.int32)[:, None]   # context position
    mem = jnp.arange(seq_len, dtype=jnp.int32)[None, :]   # memory position
    rel = -jnp.abs(mem - ctx).astype(jnp.float32)          # (T, T), <= 0
    alibi = jnp.exp(rel[None, :, :] * slopes)               # (H, T, T)
    causal = jnp.where(mem > ctx, jnp.float32(-1e30), jnp.float32(0.0))
    return alibi + causal[None, :, :]


# ----------------------------------------------------------------------------
# Kernels
# ----------------------------------------------------------------------------
def _layernorm(x, g, b, eps=1e-5):
    mu = jnp.mean(x, axis=-1, keepdims=True)
    var = jnp.mean((x - mu) ** 2, axis=-1, keepdims=True)
    return (x - mu) * jax.lax.rsqrt(var + eps) * g + b


def decoder_block_kernel(x_ref, mask_ref,
                         wqkv_ref, bqkv_ref, wo_ref, bo_ref,
                         ln1_g_ref, ln1_b_ref,
                         w1_ref, b1_ref, w2_ref, b2_ref,
                         ln2_g_ref, ln2_b_ref,
                         lnf_g_ref, lnf_b_ref,
                         o_ref, *, num_heads, apply_final_ln):
    xb = x_ref[0]                                   # (T, E) bf16 residual stream
    x = xb.astype(jnp.float32)
    T, E = x.shape
    H = num_heads
    D = E // H

    # Fused QKV projection, one MXU op (K = E).  1/sqrt(D) is pre-folded into
    # the Q columns (and Q bias) at parameter-construction time.
    qkv = jnp.dot(xb, wqkv_ref[...],
                  preferred_element_type=jnp.float32) + bqkv_ref[...]   # (T, 3E) f32
    qkv_b = qkv.astype(jnp.bfloat16)                # single cast (v5e has no bf16 VPU)

    # Per-head attention, entirely in registers — no VMEM scratch round-trips.
    # Head width D should be a multiple of 128 so every column slice is
    # lane-aligned and lane-dense (demo uses D = 128).
    # The output projection is folded into the head loop:
    #   concat_h(o_h) @ Wo == sum_h o_h @ Wo[h*D:(h+1)*D, :]
    # so no concatenate and no (T, E) staging buffer is needed.
    attn = jnp.zeros((T, E), jnp.float32)
    for h in range(H):
        qh = qkv_b[:, h * D:(h + 1) * D]                       # (T, D)
        kh = qkv_b[:, E + h * D:E + (h + 1) * D]               # (T, D)
        vh = qkv_b[:, 2 * E + h * D:2 * E + (h + 1) * D]       # (T, D)

        # q @ k^T expressed as an NT dot_general (no explicit transpose node).
        s = jax.lax.dot_general(qh, kh, (((1,), (1,)), ((), ())),
                                preferred_element_type=jnp.float32)     # (T, T)
        # Single add of the precomputed causal + ALiBi bias (no -inf math).
        s = s + mask_ref[h]

        # Softmax in f32; denominator reciprocal on the EUP slot.
        s = s - jnp.max(s, axis=-1, keepdims=True)
        p = jnp.exp(s)
        p = p * pl.reciprocal(jnp.sum(p, axis=-1, keepdims=True), approx=True)

        oh = jnp.dot(p.astype(jnp.bfloat16), vh,
                     preferred_element_type=jnp.float32)                # (T, D)
        attn = attn + jnp.dot(oh.astype(jnp.bfloat16), wo_ref[h],
                              preferred_element_type=jnp.float32)       # (T, E)
    attn = attn + bo_ref[...]

    # Post-norm residual + ReLU FFN (dropout disabled / eval mode).
    x = _layernorm(x + attn, ln1_g_ref[...], ln1_b_ref[...])
    h1 = jnp.maximum(
        jnp.dot(x.astype(jnp.bfloat16), w1_ref[...],
                preferred_element_type=jnp.float32) + b1_ref[...], 0.0)
    h2 = jnp.dot(h1.astype(jnp.bfloat16), w2_ref[...],
                 preferred_element_type=jnp.float32) + b2_ref[...]
    x = _layernorm(x + h2, ln2_g_ref[...], ln2_b_ref[...])

    # Final decoder LayerNorm fused into the LAST block's epilogue, so the LM
    # head never recomputes it per vocab tile.
    if apply_final_ln:
        x = _layernorm(x, lnf_g_ref[...], lnf_b_ref[...])

    o_ref[0] = x.astype(o_ref.dtype)


def lm_head_kernel(x_ref, w_ref, bias_ref, o_ref):
    # Pure matmul + bias (final LayerNorm was fused into the last block).
    o_ref[...] = (jnp.dot(x_ref[...], w_ref[...],
                          preferred_element_type=jnp.float32)
                  + bias_ref[...]).astype(o_ref.dtype)


# ----------------------------------------------------------------------------
# Wrappers
# ----------------------------------------------------------------------------
def run_decoder_block(x, mask, p, lnf_g, lnf_b, num_heads, apply_final_ln):
    B, T, E = x.shape

    weights = [p["wqkv"], p["bqkv"], p["wo"], p["bo"], p["ln1_g"], p["ln1_b"],
               p["w1"], p["b1"], p["w2"], p["b2"], p["ln2_g"], p["ln2_b"],
               lnf_g, lnf_b]

    def const_spec(arr):
        n = arr.ndim
        # Constant index map => fetched once, never re-DMA'd across the grid.
        return pl.BlockSpec(arr.shape, lambda b, _n=n: (0,) * _n)

    in_specs = ([pl.BlockSpec((1, T, E), lambda b: (b, 0, 0)),
                 const_spec(mask)]
                + [const_spec(w) for w in weights])

    return pl.pallas_call(
        functools.partial(decoder_block_kernel, num_heads=num_heads,
                          apply_final_ln=apply_final_ln),
        out_shape=jax.ShapeDtypeStruct((B, T, E), jnp.bfloat16),
        grid=(B,),
        in_specs=in_specs,
        out_specs=pl.BlockSpec((1, T, E), lambda b: (b, 0, 0)),
        compiler_params=pltpu.CompilerParams(
            dimension_semantics=("parallel",),
            vmem_limit_bytes=VMEM_LIMIT),
    )(x, mask, *weights)


def run_lm_head(x_flat, w, bias, *, tn=256, tv=512):
    N, E = x_flat.shape
    V = w.shape[1]
    tn = min(tn, N)
    tv = min(tv, V)
    if N % tn:
        tn = N
    if V % tv:
        tv = V
    # Vocab axis OUTER, token axis INNER: the (E, tv) weight tile's block
    # index only changes with the outer axis, so each weight tile is read
    # from HBM exactly once and reused across all token tiles.
    grid = (V // tv, N // tn)

    return pl.pallas_call(
        lm_head_kernel,
        out_shape=jax.ShapeDtypeStruct((N, V), jnp.float32),
        grid=grid,
        in_specs=[pl.BlockSpec((tn, E), lambda j, i: (i, 0)),
                  pl.BlockSpec((E, tv), lambda j, i: (0, j)),
                  pl.BlockSpec((1, tv), lambda j, i: (0, j))],
        out_specs=pl.BlockSpec((tn, tv), lambda j, i: (i, j)),
        compiler_params=pltpu.CompilerParams(
            dimension_semantics=("parallel", "parallel"),
            vmem_limit_bytes=VMEM_LIMIT),
    )(x_flat, w, bias)


# ----------------------------------------------------------------------------
# Deterministic parameter construction (shapes implied by __init__).
# ----------------------------------------------------------------------------
def init_params(key, vocab_size, embed_dim, num_layers, num_heads, hidden_size):
    def normal(k, shape):
        return 0.02 * jax.random.normal(k, shape, jnp.float32)

    D = embed_dim // num_heads
    scale = 1.0 / math.sqrt(D)

    keys = jax.random.split(key, 2 + num_layers)
    params = {
        "embedding": normal(keys[0], (vocab_size, embed_dim)),
        "lm_head_w": normal(keys[1], (embed_dim, vocab_size)).astype(jnp.bfloat16),
        "lm_head_b": jnp.zeros((1, vocab_size), jnp.float32),
        "last_ln_g": jnp.ones((1, embed_dim), jnp.float32),
        "last_ln_b": jnp.zeros((1, embed_dim), jnp.float32),
        "blocks": [],
    }
    for l in range(num_layers):
        kq, kk, kv, ko, k1, k2 = jax.random.split(keys[2 + l], 6)
        # 1/sqrt(D) folded into the Q projection.  NOTE: when converting a
        # real checkpoint, fold the scale into the Q bias as well (zero here).
        wq = normal(kq, (embed_dim, embed_dim)) * scale
        wk = normal(kk, (embed_dim, embed_dim))
        wv = normal(kv, (embed_dim, embed_dim))
        wo = normal(ko, (embed_dim, embed_dim))
        params["blocks"].append({
            "wqkv": jnp.concatenate([wq, wk, wv], axis=1).astype(jnp.bfloat16),
            "bqkv": jnp.zeros((1, 3 * embed_dim), jnp.float32),
            # Wo pre-split per head: (H, D, E) so the output projection folds
            # into the head loop (concat(o_h) @ Wo == sum_h o_h @ Wo[h]).
            "wo": wo.reshape(num_heads, D, embed_dim).astype(jnp.bfloat16),
            "bo": jnp.zeros((1, embed_dim), jnp.float32),
            "ln1_g": jnp.ones((1, embed_dim), jnp.float32),
            "ln1_b": jnp.zeros((1, embed_dim), jnp.float32),
            "w1": normal(k1, (embed_dim, hidden_size)).astype(jnp.bfloat16),
            "b1": jnp.zeros((1, hidden_size), jnp.float32),
            "w2": normal(k2, (hidden_size, embed_dim)).astype(jnp.bfloat16),
            "b2": jnp.zeros((1, embed_dim), jnp.float32),
            "ln2_g": jnp.ones((1, embed_dim), jnp.float32),
            "ln2_b": jnp.zeros((1, embed_dim), jnp.float32),
        })
    return params


def alibi_decoder_lm_forward(tokens, params, num_heads):
    B, T = tokens.shape
    # Embedding gather stays in plain JAX (glue); residual stream kept bf16
    # in HBM between layers (compute stays f32 inside the kernels).
    x = params["embedding"][tokens].astype(jnp.bfloat16)       # (B, T, E)
    mask = build_alibi_causal_mask(num_heads, T)                # (H, T, T) f32
    n_layers = len(params["blocks"])
    for i, blk in enumerate(params["blocks"]):
        x = run_decoder_block(x, mask, blk,
                              params["last_ln_g"], params["last_ln_b"],
                              num_heads,
                              apply_final_ln=(i == n_layers - 1))
    x_flat = x.reshape(-1, x.shape[-1])                          # (B*T, E) bf16
    logits = run_lm_head(x_flat, params["lm_head_w"], params["lm_head_b"])
    return logits                                                # (B*T, vocab)


# ----------------------------------------------------------------------------
if __name__ == "__main__":
    VOCAB = 256      # lane-dense logits, 256-aligned for v6e/v7x MXU
    EMBED = 256      # 256-aligned embed dim
    LAYERS = 2
    HEADS = 2        # head_dim D = 128 -> lane-aligned per-head slices
    HIDDEN = 512
    B, T = 2, 16

    key = jax.random.PRNGKey(0)
    k_params, k_tok = jax.random.split(key)
    params = init_params(k_params, VOCAB, EMBED, LAYERS, HEADS, HIDDEN)
    tokens = jax.random.randint(k_tok, (B, T), 0, VOCAB, dtype=jnp.int32)

    logits = alibi_decoder_lm_forward(tokens, params, HEADS)
    logits = jax.block_until_ready(logits)
    assert logits.shape == (B * T, VOCAB), logits.shape
    assert bool(jnp.all(jnp.isfinite(logits)))
    print("KERNEL_OK")
</pallas_src>

<mosaic_0001>
module attributes {stable_mosaic.version = 11 : i64} {
  func.func @decoder_block_kernel(%arg0: i32, %arg1: memref<1x16x256xbf16, #tpu.memory_space<vmem>>, %arg2: memref<2x16x16xf32, #tpu.memory_space<vmem>>, %arg3: memref<256x768xbf16, #tpu.memory_space<vmem>>, %arg4: memref<1x768xf32, #tpu.memory_space<vmem>>, %arg5: memref<2x128x256xbf16, #tpu.memory_space<vmem>>, %arg6: memref<1x256xf32, #tpu.memory_space<vmem>>, %arg7: memref<1x256xf32, #tpu.memory_space<vmem>>, %arg8: memref<1x256xf32, #tpu.memory_space<vmem>>, %arg9: memref<256x512xbf16, #tpu.memory_space<vmem>>, %arg10: memref<1x512xf32, #tpu.memory_space<vmem>>, %arg11: memref<512x256xbf16, #tpu.memory_space<vmem>>, %arg12: memref<1x256xf32, #tpu.memory_space<vmem>>, %arg13: memref<1x256xf32, #tpu.memory_space<vmem>>, %arg14: memref<1x256xf32, #tpu.memory_space<vmem>>, %arg15: memref<1x256xf32, #tpu.memory_space<vmem>>, %arg16: memref<1x256xf32, #tpu.memory_space<vmem>>, %arg17: memref<1x16x256xbf16, #tpu.memory_space<vmem>>) attributes {dimension_semantics = [#tpu.dimension_semantics<parallel>], iteration_bounds = array<i64: 2>, scalar_prefetch = 0 : i64, scratch_operands = 0 : i64, tpu.core_type = #tpu.core_type<tc>, window_params = [{transform_indices = @transform_0, window_bounds = array<i64: 1, 16, 256>}, {pipeline_mode = #tpu.pipeline_mode<synchronous>, transform_indices = @transform_1, window_bounds = array<i64: 2, 16, 16>}, {pipeline_mode = #tpu.pipeline_mode<synchronous>, transform_indices = @transform_2, window_bounds = array<i64: 256, 768>}, {pipeline_mode = #tpu.pipeline_mode<synchronous>, transform_indices = @transform_3, window_bounds = array<i64: 1, 768>}, {pipeline_mode = #tpu.pipeline_mode<synchronous>, transform_indices = @transform_4, window_bounds = array<i64: 2, 128, 256>}, {pipeline_mode = #tpu.pipeline_mode<synchronous>, transform_indices = @transform_5, window_bounds = array<i64: 1, 256>}, {pipeline_mode = #tpu.pipeline_mode<synchronous>, transform_indices = @transform_6, window_bounds = array<i64: 1, 256>}, {pipeline_mode = #tpu.pipeline_mode<synchronous>, transform_indices = @transform_7, window_bounds = array<i64: 1, 256>}, {pipeline_mode = #tpu.pipeline_mode<synchronous>, transform_indices = @transform_8, window_bounds = array<i64: 256, 512>}, {pipeline_mode = #tpu.pipeline_mode<synchronous>, transform_indices = @transform_9, window_bounds = array<i64: 1, 512>}, {pipeline_mode = #tpu.pipeline_mode<synchronous>, transform_indices = @transform_10, window_bounds = array<i64: 512, 256>}, {pipeline_mode = #tpu.pipeline_mode<synchronous>, transform_indices = @transform_11, window_bounds = array<i64: 1, 256>}, {pipeline_mode = #tpu.pipeline_mode<synchronous>, transform_indices = @transform_12, window_bounds = array<i64: 1, 256>}, {pipeline_mode = #tpu.pipeline_mode<synchronous>, transform_indices = @transform_13, window_bounds = array<i64: 1, 256>}, {pipeline_mode = #tpu.pipeline_mode<synchronous>, transform_indices = @transform_14, window_bounds = array<i64: 1, 256>}, {pipeline_mode = #tpu.pipeline_mode<synchronous>, transform_indices = @transform_15, window_bounds = array<i64: 1, 256>}, {transform_indices = @transform_16, window_bounds = array<i64: 1, 16, 256>}]} {
    %c0 = arith.constant 0 : index
    %c0_0 = arith.constant 0 : index
    %c0_1 = arith.constant 0 : index
    %0 = vector.load %arg1[%c0, %c0_0, %c0_1] : memref<1x16x256xbf16, #tpu.memory_space<vmem>>, vector<1x16x256xbf16>
    %1 = vector.shape_cast %0 : vector<1x16x256xbf16> to vector<16x256xbf16>
    %2 = arith.extf %1 : vector<16x256xbf16> to vector<16x256xf32>
    %c0_2 = arith.constant 0 : index
    %c0_3 = arith.constant 0 : index
    %3 = vector.load %arg3[%c0_2, %c0_3] : memref<256x768xbf16, #tpu.memory_space<vmem>>, vector<256x768xbf16>
    %cst = arith.constant dense<0.000000e+00> : vector<16x768xf32>
    %4 = tpu.matmul %1, %3, %cst {dimension_numbers = #tpu.dot_dimension_numbers<[1], [0], [0], [1], [0, 0, 1, 1], [], []>} : vector<16x256xbf16>, vector<256x768xbf16>, vector<16x768xf32> -> vector<16x768xf32>
    %c0_4 = arith.constant 0 : index
    %c0_5 = arith.constant 0 : index
    %5 = vector.load %arg4[%c0_4, %c0_5] : memref<1x768xf32, #tpu.memory_space<vmem>>, vector<1x768xf32>
    %6 = vector.broadcast %5 : vector<1x768xf32> to vector<16x768xf32>
    %7 = arith.addf %4, %6 : vector<16x768xf32>
    %8 = arith.truncf %7 : vector<16x768xf32> to vector<16x768xbf16>
    %cst_6 = arith.constant 0.000000e+00 : f32
    %9 = vector.broadcast %cst_6 : f32 to vector<16x256xf32>
    %10 = vector.extract_strided_slice %8 {offsets = [0, 0], sizes = [16, 128], strides = [1, 1]} : vector<16x768xbf16> to vector<16x128xbf16>
    %11 = vector.extract_strided_slice %8 {offsets = [0, 256], sizes = [16, 128], strides = [1, 1]} : vector<16x768xbf16> to vector<16x128xbf16>
    %12 = vector.extract_strided_slice %8 {offsets = [0, 512], sizes = [16, 128], strides = [1, 1]} : vector<16x768xbf16> to vector<16x128xbf16>
    %cst_7 = arith.constant dense<0.000000e+00> : vector<16x16xf32>
    %13 = tpu.matmul %10, %11, %cst_7 {dimension_numbers = #tpu.dot_dimension_numbers<[1], [1], [0], [0], [0, 0, 1, 0], [], []>} : vector<16x128xbf16>, vector<16x128xbf16>, vector<16x16xf32> -> vector<16x16xf32>
    %c0_8 = arith.constant 0 : index
    %c0_9 = arith.constant 0 : index
    %c0_10 = arith.constant 0 : index
    %14 = vector.load %arg2[%c0_8, %c0_9, %c0_10] : memref<2x16x16xf32, #tpu.memory_space<vmem>>, vector<1x16x16xf32>
    %15 = vector.shape_cast %14 : vector<1x16x16xf32> to vector<16x16xf32>
    %16 = arith.addf %13, %15 : vector<16x16xf32>
    %cst_11 = arith.constant dense<0xFF800000> : vector<16xf32>
    %17 = vector.multi_reduction <maximumf>, %16, %cst_11 [1] : vector<16x16xf32> to vector<16xf32>
    %18 = vector.shape_cast %17 : vector<16xf32> to vector<16x1xf32>
    %19 = vector.broadcast %18 : vector<16x1xf32> to vector<16x16xf32>
    %20 = arith.subf %16, %19 : vector<16x16xf32>
    %21 = math.exp %20 : vector<16x16xf32>
    %cst_12 = arith.constant dense<0.000000e+00> : vector<16xf32>
    %22 = vector.multi_reduction <add>, %21, %cst_12 [1] : vector<16x16xf32> to vector<16xf32>
    %23 = vector.shape_cast %22 : vector<16xf32> to vector<16x1xf32>
    %24 = tpu.reciprocal %23 {approx = true} : vector<16x1xf32> -> vector<16x1xf32>
    %25 = vector.broadcast %24 : vector<16x1xf32> to vector<16x16xf32>
    %26 = arith.mulf %21, %25 : vector<16x16xf32>
    %27 = arith.truncf %26 : vector<16x16xf32> to vector<16x16xbf16>
    %cst_13 = arith.constant dense<0.000000e+00> : vector<16x128xf32>
    %28 = tpu.matmul %27, %12, %cst_13 {dimension_numbers = #tpu.dot_dimension_numbers<[1], [0], [0], [1], [0, 0, 1, 1], [], []>} : vector<16x16xbf16>, vector<16x128xbf16>, vector<16x128xf32> -> vector<16x128xf32>
    %29 = arith.truncf %28 : vector<16x128xf32> to vector<16x128xbf16>
    %c0_14 = arith.constant 0 : index
    %c0_15 = arith.constant 0 : index
    %c0_16 = arith.constant 0 : index
    %30 = vector.load %arg5[%c0_14, %c0_15, %c0_16] : memref<2x128x256xbf16, #tpu.memory_space<vmem>>, vector<1x128x256xbf16>
    %31 = vector.shape_cast %30 : vector<1x128x256xbf16> to vector<128x256xbf16>
    %cst_17 = arith.constant dense<0.000000e+00> : vector<16x256xf32>
    %32 = tpu.matmul %29, %31, %cst_17 {dimension_numbers = #tpu.dot_dimension_numbers<[1], [0], [0], [1], [0, 0, 1, 1], [], []>} : vector<16x128xbf16>, vector<128x256xbf16>, vector<16x256xf32> -> vector<16x256xf32>
    %33 = arith.addf %9, %32 : vector<16x256xf32>
    %34 = vector.extract_strided_slice %8 {offsets = [0, 128], sizes = [16, 128], strides = [1, 1]} : vector<16x768xbf16> to vector<16x128xbf16>
    %35 = vector.extract_strided_slice %8 {offsets = [0, 384], sizes = [16, 128], strides = [1, 1]} : vector<16x768xbf16> to vector<16x128xbf16>
    %36 = vector.extract_strided_slice %8 {offsets = [0, 640], sizes = [16, 128], strides = [1, 1]} : vector<16x768xbf16> to vector<16x128xbf16>
    %cst_18 = arith.constant dense<0.000000e+00> : vector<16x16xf32>
    %37 = tpu.matmul %34, %35, %cst_18 {dimension_numbers = #tpu.dot_dimension_numbers<[1], [1], [0], [0], [0, 0, 1, 0], [], []>} : vector<16x128xbf16>, vector<16x128xbf16>, vector<16x16xf32> -> vector<16x16xf32>
    %c1 = arith.constant 1 : index
    %c0_19 = arith.constant 0 : index
    %c0_20 = arith.constant 0 : index
    %38 = vector.load %arg2[%c1, %c0_19, %c0_20] : memref<2x16x16xf32, #tpu.memory_space<vmem>>, vector<1x16x16xf32>
    %39 = vector.shape_cast %38 : vector<1x16x16xf32> to vector<16x16xf32>
    %40 = arith.addf %37, %39 : vector<16x16xf32>
    %cst_21 = arith.constant dense<0xFF800000> : vector<16xf32>
    %41 = vector.multi_reduction <maximumf>, %40, %cst_21 [1] : vector<16x16xf32> to vector<16xf32>
    %42 = vector.shape_cast %41 : vector<16xf32> to vector<16x1xf32>
    %43 = vector.broadcast %42 : vector<16x1xf32> to vector<16x16xf32>
    %44 = arith.subf %40, %43 : vector<16x16xf32>
    %45 = math.exp %44 : vector<16x16xf32>
    %cst_22 = arith.constant dense<0.000000e+00> : vector<16xf32>
    %46 = vector.multi_reduction <add>, %45, %cst_22 [1] : vector<16x16xf32> to vector<16xf32>
    %47 = vector.shape_cast %46 : vector<16xf32> to vector<16x1xf32>
    %48 = tpu.reciprocal %47 {approx = true} : vector<16x1xf32> -> vector<16x1xf32>
    %49 = vector.broadcast %48 : vector<16x1xf32> to vector<16x16xf32>
    %50 = arith.mulf %45, %49 : vector<16x16xf32>
    %51 = arith.truncf %50 : vector<16x16xf32> to vector<16x16xbf16>
    %cst_23 = arith.constant dense<0.000000e+00> : vector<16x128xf32>
    %52 = tpu.matmul %51, %36, %cst_23 {dimension_numbers = #tpu.dot_dimension_numbers<[1], [0], [0], [1], [0, 0, 1, 1], [], []>} : vector<16x16xbf16>, vector<16x128xbf16>, vector<16x128xf32> -> vector<16x128xf32>
    %53 = arith.truncf %52 : vector<16x128xf32> to vector<16x128xbf16>
    %c1_24 = arith.constant 1 : index
    %c0_25 = arith.constant 0 : index
    %c0_26 = arith.constant 0 : index
    %54 = vector.load %arg5[%c1_24, %c0_25, %c0_26] : memref<2x128x256xbf16, #tpu.memory_space<vmem>>, vector<1x128x256xbf16>
    %55 = vector.shape_cast %54 : vector<1x128x256xbf16> to vector<128x256xbf16>
    %cst_27 = arith.constant dense<0.000000e+00> : vector<16x256xf32>
    %56 = tpu.matmul %53, %55, %cst_27 {dimension_numbers = #tpu.dot_dimension_numbers<[1], [0], [0], [1], [0, 0, 1, 1], [], []>} : vector<16x128xbf16>, vector<128x256xbf16>, vector<16x256xf32> -> vector<16x256xf32>
    %57 = arith.addf %33, %56 : vector<16x256xf32>
    %c0_28 = arith.constant 0 : index
    %c0_29 = arith.constant 0 : index
    %58 = vector.load %arg6[%c0_28, %c0_29] : memref<1x256xf32, #tpu.memory_space<vmem>>, vector<1x256xf32>
    %59 = vector.broadcast %58 : vector<1x256xf32> to vector<16x256xf32>
    %60 = arith.addf %57, %59 : vector<16x256xf32>
    %61 = arith.addf %2, %60 : vector<16x256xf32>
    %c0_30 = arith.constant 0 : index
    %c0_31 = arith.constant 0 : index
    %62 = vector.load %arg7[%c0_30, %c0_31] : memref<1x256xf32, #tpu.memory_space<vmem>>, vector<1x256xf32>
    %c0_32 = arith.constant 0 : index
    %c0_33 = arith.constant 0 : index
    %63 = vector.load %arg8[%c0_32, %c0_33] : memref<1x256xf32, #tpu.memory_space<vmem>>, vector<1x256xf32>
    %cst_34 = arith.constant dense<0.000000e+00> : vector<16xf32>
    %64 = vector.multi_reduction <add>, %61, %cst_34 [1] : vector<16x256xf32> to vector<16xf32>
    %65 = vector.shape_cast %64 : vector<16xf32> to vector<16x1xf32>
    %cst_35 = arith.constant 2.560000e+02 : f32
    %66 = vector.broadcast %cst_35 : f32 to vector<16x1xf32>
    %67 = arith.divf %65, %66 : vector<16x1xf32>
    %68 = vector.broadcast %67 : vector<16x1xf32> to vector<16x256xf32>
    %69 = arith.subf %61, %68 : vector<16x256xf32>
    %70 = arith.mulf %69, %69 : vector<16x256xf32>
    %cst_36 = arith.constant dense<0.000000e+00> : vector<16xf32>
    %71 = vector.multi_reduction <add>, %70, %cst_36 [1] : vector<16x256xf32> to vector<16xf32>
    %72 = vector.shape_cast %71 : vector<16xf32> to vector<16x1xf32>
    %cst_37 = arith.constant 2.560000e+02 : f32
    %73 = vector.broadcast %cst_37 : f32 to vector<16x1xf32>
    %74 = arith.divf %72, %73 : vector<16x1xf32>
    %75 = vector.broadcast %67 : vector<16x1xf32> to vector<16x256xf32>
    %76 = arith.subf %61, %75 : vector<16x256xf32>
    %cst_38 = arith.constant 9.99999974E-6 : f32
    %77 = vector.broadcast %cst_38 : f32 to vector<16x1xf32>
    %78 = arith.addf %74, %77 : vector<16x1xf32>
    %79 = math.rsqrt %78 : vector<16x1xf32>
    %80 = vector.broadcast %79 : vector<16x1xf32> to vector<16x256xf32>
    %81 = arith.mulf %76, %80 : vector<16x256xf32>
    %82 = vector.broadcast %62 : vector<1x256xf32> to vector<16x256xf32>
    %83 = arith.mulf %81, %82 : vector<16x256xf32>
    %84 = vector.broadcast %63 : vector<1x256xf32> to vector<16x256xf32>
    %85 = arith.addf %83, %84 : vector<16x256xf32>
    %86 = arith.truncf %85 : vector<16x256xf32> to vector<16x256xbf16>
    %c0_39 = arith.constant 0 : index
    %c0_40 = arith.constant 0 : index
    %87 = vector.load %arg9[%c0_39, %c0_40] : memref<256x512xbf16, #tpu.memory_space<vmem>>, vector<256x512xbf16>
    %cst_41 = arith.constant dense<0.000000e+00> : vector<16x512xf32>
    %88 = tpu.matmul %86, %87, %cst_41 {dimension_numbers = #tpu.dot_dimension_numbers<[1], [0], [0], [1], [0, 0, 1, 1], [], []>} : vector<16x256xbf16>, vector<256x512xbf16>, vector<16x512xf32> -> vector<16x512xf32>
    %c0_42 = arith.constant 0 : index
    %c0_43 = arith.constant 0 : index
    %89 = vector.load %arg10[%c0_42, %c0_43] : memref<1x512xf32, #tpu.memory_space<vmem>>, vector<1x512xf32>
    %90 = vector.broadcast %89 : vector<1x512xf32> to vector<16x512xf32>
    %91 = arith.addf %88, %90 : vector<16x512xf32>
    %cst_44 = arith.constant 0.000000e+00 : f32
    %92 = vector.broadcast %cst_44 : f32 to vector<16x512xf32>
    %93 = arith.maximumf %91, %92 : vector<16x512xf32>
    %94 = arith.truncf %93 : vector<16x512xf32> to vector<16x512xbf16>
    %c0_45 = arith.constant 0 : index
    %c0_46 = arith.constant 0 : index
    %95 = vector.load %arg11[%c0_45, %c0_46] : memref<512x256xbf16, #tpu.memory_space<vmem>>, vector<512x256xbf16>
    %cst_47 = arith.constant dense<0.000000e+00> : vector<16x256xf32>
    %96 = tpu.matmul %94, %95, %cst_47 {dimension_numbers = #tpu.dot_dimension_numbers<[1], [0], [0], [1], [0, 0, 1, 1], [], []>} : vector<16x512xbf16>, vector<512x256xbf16>, vector<16x256xf32> -> vector<16x256xf32>
    %c0_48 = arith.constant 0 : index
    %c0_49 = arith.constant 0 : index
    %97 = vector.load %arg12[%c0_48, %c0_49] : memref<1x256xf32, #tpu.memory_space<vmem>>, vector<1x256xf32>
    %98 = vector.broadcast %97 : vector<1x256xf32> to vector<16x256xf32>
    %99 = arith.addf %96, %98 : vector<16x256xf32>
    %100 = arith.addf %85, %99 : vector<16x256xf32>
    %c0_50 = arith.constant 0 : index
    %c0_51 = arith.constant 0 : index
    %101 = vector.load %arg13[%c0_50, %c0_51] : memref<1x256xf32, #tpu.memory_space<vmem>>, vector<1x256xf32>
    %c0_52 = arith.constant 0 : index
    %c0_53 = arith.constant 0 : index
    %102 = vector.load %arg14[%c0_52, %c0_53] : memref<1x256xf32, #tpu.memory_space<vmem>>, vector<1x256xf32>
    %cst_54 = arith.constant dense<0.000000e+00> : vector<16xf32>
    %103 = vector.multi_reduction <add>, %100, %cst_54 [1] : vector<16x256xf32> to vector<16xf32>
    %104 = vector.shape_cast %103 : vector<16xf32> to vector<16x1xf32>
    %cst_55 = arith.constant 2.560000e+02 : f32
    %105 = vector.broadcast %cst_55 : f32 to vector<16x1xf32>
    %106 = arith.divf %104, %105 : vector<16x1xf32>
    %107 = vector.broadcast %106 : vector<16x1xf32> to vector<16x256xf32>
    %108 = arith.subf %100, %107 : vector<16x256xf32>
    %109 = arith.mulf %108, %108 : vector<16x256xf32>
    %cst_56 = arith.constant dense<0.000000e+00> : vector<16xf32>
    %110 = vector.multi_reduction <add>, %109, %cst_56 [1] : vector<16x256xf32> to vector<16xf32>
    %111 = vector.shape_cast %110 : vector<16xf32> to vector<16x1xf32>
    %cst_57 = arith.constant 2.560000e+02 : f32
    %112 = vector.broadcast %cst_57 : f32 to vector<16x1xf32>
    %113 = arith.divf %111, %112 : vector<16x1xf32>
    %114 = vector.broadcast %106 : vector<16x1xf32> to vector<16x256xf32>
    %115 = arith.subf %100, %114 : vector<16x256xf32>
    %cst_58 = arith.constant 9.99999974E-6 : f32
    %116 = vector.broadcast %cst_58 : f32 to vector<16x1xf32>
    %117 = arith.addf %113, %116 : vector<16x1xf32>
    %118 = math.rsqrt %117 : vector<16x1xf32>
    %119 = vector.broadcast %118 : vector<16x1xf32> to vector<16x256xf32>
    %120 = arith.mulf %115, %119 : vector<16x256xf32>
    %121 = vector.broadcast %101 : vector<1x256xf32> to vector<16x256xf32>
    %122 = arith.mulf %120, %121 : vector<16x256xf32>
    %123 = vector.broadcast %102 : vector<1x256xf32> to vector<16x256xf32>
    %124 = arith.addf %122, %123 : vector<16x256xf32>
    %125 = arith.truncf %124 : vector<16x256xf32> to vector<16x256xbf16>
    %c0_59 = arith.constant 0 : index
    %c0_60 = arith.constant 0 : index
    %c0_61 = arith.constant 0 : index
    %126 = vector.load %arg17[%c0_59, %c0_60, %c0_61] : memref<1x16x256xbf16, #tpu.memory_space<vmem>>, vector<1x16x256xbf16>
    %127 = vector.shape_cast %126 : vector<1x16x256xbf16> to vector<16x256xbf16>
    %128 = vector.shape_cast %125 : vector<16x256xbf16> to vector<1x16x256xbf16>
    tpu.vector_store %arg17[%c0_59, %c0_60, %c0_61], %128 {strides = array<i32>} : memref<1x16x256xbf16, #tpu.memory_space<vmem>>, vector<1x16x256xbf16>,
    return
  }
  func.func @transform_0(%arg0: i32) -> (i32, i32, i32) {
    %c0_i32 = arith.constant 0 : i32
    %c0_i32_0 = arith.constant 0 : i32
    %c0_i32_1 = arith.constant 0 : i32
    return %arg0, %c0_i32, %c0_i32_0 : i32, i32, i32
  }
  func.func @transform_1(%arg0: i32) -> (i32, i32, i32) {
    %c0_i32 = arith.constant 0 : i32
    %c0_i32_0 = arith.constant 0 : i32
    %c0_i32_1 = arith.constant 0 : i32
    %c0_i32_2 = arith.constant 0 : i32
    return %c0_i32, %c0_i32_0, %c0_i32_1 : i32, i32, i32
  }
  func.func @transform_2(%arg0: i32) -> (i32, i32) {
    %c0_i32 = arith.constant 0 : i32
    %c0_i32_0 = arith.constant 0 : i32
    %c0_i32_1 = arith.constant 0 : i32
    return %c0_i32, %c0_i32_0 : i32, i32
  }
  func.func @transform_3(%arg0: i32) -> (i32, i32) {
    %c0_i32 = arith.constant 0 : i32
    %c0_i32_0 = arith.constant 0 : i32
    %c0_i32_1 = arith.constant 0 : i32
    return %c0_i32, %c0_i32_0 : i32, i32
  }
  func.func @transform_4(%arg0: i32) -> (i32, i32, i32) {
    %c0_i32 = arith.constant 0 : i32
    %c0_i32_0 = arith.constant 0 : i32
    %c0_i32_1 = arith.constant 0 : i32
    %c0_i32_2 = arith.constant 0 : i32
    return %c0_i32, %c0_i32_0, %c0_i32_1 : i32, i32, i32
  }
  func.func @transform_5(%arg0: i32) -> (i32, i32) {
    %c0_i32 = arith.constant 0 : i32
    %c0_i32_0 = arith.constant 0 : i32
    %c0_i32_1 = arith.constant 0 : i32
    return %c0_i32, %c0_i32_0 : i32, i32
  }
  func.func @transform_6(%arg0: i32) -> (i32, i32) {
    %c0_i32 = arith.constant 0 : i32
    %c0_i32_0 = arith.constant 0 : i32
    %c0_i32_1 = arith.constant 0 : i32
    return %c0_i32, %c0_i32_0 : i32, i32
  }
  func.func @transform_7(%arg0: i32) -> (i32, i32) {
    %c0_i32 = arith.constant 0 : i32
    %c0_i32_0 = arith.constant 0 : i32
    %c0_i32_1 = arith.constant 0 : i32
    return %c0_i32, %c0_i32_0 : i32, i32
  }
  func.func @transform_8(%arg0: i32) -> (i32, i32) {
    %c0_i32 = arith.constant 0 : i32
    %c0_i32_0 = arith.constant 0 : i32
    %c0_i32_1 = arith.constant 0 : i32
    return %c0_i32, %c0_i32_0 : i32, i32
  }
  func.func @transform_9(%arg0: i32) -> (i32, i32) {
    %c0_i32 = arith.constant 0 : i32
    %c0_i32_0 = arith.constant 0 : i32
    %c0_i32_1 = arith.constant 0 : i32
    return %c0_i32, %c0_i32_0 : i32, i32
  }
  func.func @transform_10(%arg0: i32) -> (i32, i32) {
    %c0_i32 = arith.constant 0 : i32
    %c0_i32_0 = arith.constant 0 : i32
    %c0_i32_1 = arith.constant 0 : i32
    return %c0_i32, %c0_i32_0 : i32, i32
  }
  func.func @transform_11(%arg0: i32) -> (i32, i32) {
    %c0_i32 = arith.constant 0 : i32
    %c0_i32_0 = arith.constant 0 : i32
    %c0_i32_1 = arith.constant 0 : i32
    return %c0_i32, %c0_i32_0 : i32, i32
  }
  func.func @transform_12(%arg0: i32) -> (i32, i32) {
    %c0_i32 = arith.constant 0 : i32
    %c0_i32_0 = arith.constant 0 : i32
    %c0_i32_1 = arith.constant 0 : i32
    return %c0_i32, %c0_i32_0 : i32, i32
  }
  func.func @transform_13(%arg0: i32) -> (i32, i32) {
    %c0_i32 = arith.constant 0 : i32
    %c0_i32_0 = arith.constant 0 : i32
    %c0_i32_1 = arith.constant 0 : i32
    return %c0_i32, %c0_i32_0 : i32, i32
  }
  func.func @transform_14(%arg0: i32) -> (i32, i32) {
    %c0_i32 = arith.constant 0 : i32
    %c0_i32_0 = arith.constant 0 : i32
    %c0_i32_1 = arith.constant 0 : i32
    return %c0_i32, %c0_i32_0 : i32, i32
  }
  func.func @transform_15(%arg0: i32) -> (i32, i32) {
    %c0_i32 = arith.constant 0 : i32
    %c0_i32_0 = arith.constant 0 : i32
    %c0_i32_1 = arith.constant 0 : i32
    return %c0_i32, %c0_i32_0 : i32, i32
  }
  func.func @transform_16(%arg0: i32) -> (i32, i32, i32) {
    %c0_i32 = arith.constant 0 : i32
    %c0_i32_0 = arith.constant 0 : i32
    %c0_i32_1 = arith.constant 0 : i32
    return %arg0, %c0_i32, %c0_i32_0 : i32, i32, i32
  }
}

</mosaic_0001>

<bundles_post_ra>
// kernel: tpu_custom_call.1
= control target key start
LH: loop header
LB: loop body
LE: loop exit
PB: predicated region body
PF: predicated region fallthrough
CT: control target
= control target key end

     0   :  { %s5563_s0 = inlined_call_operand.hbm [shape: bf16[2,16,256], index: 0, kind: input, shape index: {}]   ;;  %s5564_s1 = inlined_call_operand.hbm [shape: f32[2,16,16], index: 1, kind: input, shape index: {}]   ;;  %s5565_s2 = inlined_call_operand.hbm [shape: bf16[256,768], index: 2, kind: input, shape index: {}]   ;;  %s5566_s3 = inlined_call_operand.hbm [shape: f32[1,768], index: 3, kind: input, shape index: {}]   ;;  %s5567_s4 = inlined_call_operand.hbm [shape: bf16[2,128,256], index: 4, kind: input, shape index: {}]   ;;  %s5568_s5 = inlined_call_operand.vmem [shape: f32[1,256], index: 5, kind: input, shape index: {}]   ;;  %s5569_s6 = inlined_call_operand.hbm [shape: f32[1,256], index: 6, kind: input, shape index: {}]   ;;  %s5570_s7 = inlined_call_operand.hbm [shape: f32[1,256], index: 7, kind: input, shape index: {}]   ;;  %s5571_s8 = inlined_call_operand.hbm [shape: bf16[256,512], index: 8, kind: input, shape index: {}]   ;;  %s5572_s9 = inlined_call_operand.vmem [shape: f32[1,512], index: 9, kind: input, shape index: {}]   ;;  %s5573_s10 = inlined_call_operand.hbm [shape: bf16[512,256], index: 10, kind: input, shape index: {}]   ;;  %s5574_s11 = inlined_call_operand.vmem [shape: f32[1,256], index: 11, kind: input, shape index: {}]   ;;  %s5575_s12 = inlined_call_operand.vmem [shape: f32[1,256], index: 12, kind: input, shape index: {}]   ;;  %s5576_s13 = inlined_call_operand.vmem [shape: f32[1,256], index: 13, kind: input, shape index: {}]   ;;  %s5577_s14 = inlined_call_operand.hbm [shape: f32[1,256], index: 14, kind: input, shape index: {}]   ;;  %s5578_s15 = inlined_call_operand.vmem [shape: f32[1,256], index: 15, kind: input, shape index: {}]   ;;  %s5579_s16 = inlined_call_operand.hbm [shape: bf16[2,16,256], index: 16, kind: output, shape index: {}]  }
   0x1   :  { %5585 = sst [smem:[#allocation27_spill]] %s5563_s0 }
   0x2   :  { %5586 = sst [smem:[#allocation28_spill]] %s5564_s1 }
   0x3   :  { %5587 = sst [smem:[#allocation29_spill]] %s5565_s2 }
   0x4   :  { %5588 = sst [smem:[#allocation30_spill]] %s5566_s3 }
   0x5   :  { %5589 = sst [smem:[#allocation31_spill]] %s5567_s4 }
   0x6   :  { %5590 = sst [smem:[#allocation32_spill]] %s5569_s6 }
   0x7   :  { %5591 = sst [smem:[#allocation33_spill]] %s5570_s7 }
   0x8   :  { %5592 = sst [smem:[#allocation34_spill]] %s5571_s8 }
   0x9   :  { %5593 = sst [smem:[#allocation35_spill]] %s5575_s12 }
   0xa   :  { %5594 = sst [smem:[#allocation36_spill]] %s5576_s13 }
   0xb   :  { %5595 = sst [smem:[#allocation37_spill]] %s5579_s16 }
   0xc   :  { %21 = vsyncpa [#allocation3], 0 }
   0xd   :  { %23 = vsyncpa [#allocation3 + $0x1], 0 }
   0xe   :  { %24 = vsyncpa [#allocation6], 0 }
   0xf   :  { %25 = vsyncpa [#allocation9], 0 }
  0x10   :  { %26 = vsyncpa [#allocation12], 0 }
  0x11   :  { %27 = vsyncpa [#allocation15], 0 }
  0x12   :  { %28 = vsyncpa [#allocation18], 0 }
  0x13   :  { %29 = vsyncpa [#allocation4], 0 }
  0x14   :  { %31 = vsyncpa [#allocation4 + $0x1], 0  ;;  %s5214_s21 = smov 0   ;;  %s5216_s22 = smov 0  }
  0x15   :  { %s5218_s23 = smov 0   ;;  %s5220_s24 = smov 0  }
  0x16 LB: > { %s5596_s1 = sld [smem:[#allocation28_spill]]  ;;  %s5238_s27 = sadd.s32 4294967295, %s5109_s24   ;;  %s5109_s24 = sphi %s5220_s24, %s5619_s24   ;;  %s5105_s23 = sphi %s5218_s23, %s5618_s23   ;;  %s5101_s22 = sphi %s5216_s22, %s5617_s22   ;;  %s5097_s21 = sphi %s5214_s21, %s5616_s21  }
  0x17   : > { %p3226_p0 = scmp.ge.s32.totalorder %s5109_s24, 1  ;;  %p58_p1 = scmp.eq.s32.totalorder %s5238_s27, 0 }
  0x18   : > { %p409_p2 = scmp.lt.s32.totalorder %s5109_s24, 3  ;;  %s5111_s29 = smov [#allocation5]  }
  0x19   : > { %s422_s30 = sshll.u32 %s5111_s29, 4  ;;  %s5598_s3 = sld [smem:[#allocation30_spill]]  ;;  %s423_s30 = int_to_ptr.vmem [resolvable:$true] %s422_s30 }
  0x1a   : > { %p5243_p3 = pnand %p3226_p0, %p409_p2  ;;  %s5600_s6 = sld [smem:[#allocation32_spill]] }
  0x1b   : > { %s5112_s29 = smov [#allocation8]   ;;  %s5582_s16 = smov 128  }
  0x1c   : > { %s420_s26 = sshll.u32 %s5596_s1, 4  ;;  %p4591_p4 = pneg %p5243_p3  ;;  %s421_s26 = int_to_ptr.hbm [resolvable:$true] %s420_s26 }
  0x1d   : > { %s451_s1 = sshll.u32 %s5112_s29, 4  ;;  %s5584_s13 = smov 8   ;;  %s452_s1 = int_to_ptr.vmem [resolvable:$true] %s451_s1 }
  0x1e   : > { %p5255_p6 = pnand %p4591_p4, %p58_p1  ;;  %s5601_s8 = sld [smem:[#allocation34_spill]] }
  0x1f   : > { %s449_s18 = sshll.u32 %s5598_s3, 4  ;;  %s5115_s20 = smov [#allocation11]   ;;  %s450_s18 = int_to_ptr.hbm [resolvable:$true] %s449_s18 }
  0x20   : > { %s478_s25 = sshll.u32 %s5600_s6, 4  ;;  %s480_s15 = sshll.u32 %s5115_s20, 4  ;;  %s479_s25 = int_to_ptr.hbm [resolvable:$true] %s478_s25  ;;  %s481_s15 = int_to_ptr.vmem [resolvable:$true] %s480_s15 }
  0x21   : > { %4594 = dma.hbm_to_vmem [thread:$0]  (!%p5255_p6), %s421_s26, 512, %s423_s30, [#allocation6], %s5582_s16, %s5582_s16, %s5584_s13  }
  0x22   : > { %4600 = dma.hbm_to_vmem [thread:$0]  (!%p5255_p6), %s450_s18, 96, %s452_s1, [#allocation9]  }
  0x23   : > { %4606 = dma.hbm_to_vmem [thread:$0]  (!%p5255_p6), %s479_s25, 32, %s481_s15, [#allocation12]  }
  0x24   : > { %s501_s3 = sshll.u32 %s5601_s8, 4  ;;  %s5116_s29 = smov [#allocation14]   ;;  %s502_s3 = int_to_ptr.hbm [resolvable:$true] %s501_s3 }
  0x25   : > { %s503_s6 = sshll.u32 %s5116_s29, 4  ;;  %s5117_s12 = smov 256   ;;  %s504_s6 = int_to_ptr.vmem [resolvable:$true] %s503_s6 }
  0x26   : > { %s5118_s26 = smov 16   ;;  %s5602_s2 = sld [smem:[#allocation29_spill]] }
  0x27   : > { %4612 = dma.hbm_to_vmem [thread:$0]  (!%p5255_p6), %s502_s3, 8192, %s504_s6, [#allocation15], %s5117_s12, %s5117_s12, %s5118_s26  }
  0x28   : > { %s5119_s0 = smov [#allocation7]   ;;  %s5603_s4 = sld [smem:[#allocation31_spill]] }
  0x29   : > { %s436_s17 = sshll.u32 %s5119_s0, 4  ;;  %s5120_s15 = smov 384   ;;  %s437_s17 = int_to_ptr.vmem [resolvable:$true] %s436_s17 }
  0x2a   : > { %s5121_s29 = smov 24   ;;  %s5122_s3 = smov [#allocation10]  }
  0x2b   : > { %s462_s6 = sshll.u32 %s5122_s3, 4  ;;  %s5604_s7 = sld [smem:[#allocation33_spill]]  ;;  %s463_s6 = int_to_ptr.vmem [resolvable:$true] %s462_s6 }
  0x2c   : > { %s434_s18 = sshll.u32 %s5602_s2, 4  ;;  %s5605_s1 = smov 128   ;;  %s435_s18 = int_to_ptr.hbm [resolvable:$true] %s434_s18 }
  0x2d   : > { %4597 = dma.hbm_to_vmem [thread:$0]  (!%p5255_p6), %s435_s18, 12288, %s437_s17, [#allocation6], %s5120_s15, %s5120_s15, %s5121_s29  }
  0x2e   : > { %s460_s25 = sshll.u32 %s5603_s4, 4  ;;  %s518_s18 = sshll.u32 %s5573_s10, 4  ;;  %s461_s25 = int_to_ptr.hbm [resolvable:$true] %s460_s25  ;;  %s519_s18 = int_to_ptr.hbm [resolvable:$true] %s518_s18 }
  0x2f   : > { %4603 = dma.hbm_to_vmem [thread:$0]  (!%p5255_p6), %s461_s25, 4096, %s463_s6, [#allocation9], %s5605_s1, %s5605_s1, %s5584_s13  }
  0x30   : > { %s5123_s17 = smov [#allocation13]   ;;  %s5124_s15 = smov [#allocation16]  }
  0x31   : > { %s490_s30 = sshll.u32 %s5604_s7, 4  ;;  %s492_s20 = sshll.u32 %s5123_s17, 4  ;;  %s491_s30 = int_to_ptr.hbm [resolvable:$true] %s490_s30  ;;  %s493_s20 = int_to_ptr.vmem [resolvable:$true] %s492_s20 }
  0x32   : > { %4609 = dma.hbm_to_vmem [thread:$0]  (!%p5255_p6), %s491_s30, 32, %s493_s20, [#allocation12]  }
  0x33   : > { %s520_s25 = sshll.u32 %s5124_s15, 4  ;;  %s542_s6 = sshll.u32 %s5577_s14, 4  ;;  %s521_s25 = int_to_ptr.vmem [resolvable:$true] %s520_s25  ;;  %s543_s6 = int_to_ptr.hbm [resolvable:$true] %s542_s6 }
  0x34   : > { %4615 = dma.hbm_to_vmem [thread:$0]  (!%p5255_p6), %s519_s18, 8192, %s521_s25, [#allocation15], %s5605_s1, %s5605_s1, %s5584_s13  }
  0x35   : > { %s5125_s12 = smov [#allocation17]   ;;  %s3225_s30 = sadd.s32 4294967294, %s5109_s24  }
  0x36   : > { %s544_s26 = sshll.u32 %s5125_s12, 4  ;;  %s5309_s16 = sadd.s32 1, %s5109_s24   ;;  %s545_s26 = int_to_ptr.vmem [resolvable:$true] %s544_s26 }
  0x37   : > { %4618 = dma.hbm_to_vmem [thread:$0]  (!%p5255_p6), %s543_s6, 32, %s545_s26, [#allocation18]  }
  0x38   : > { %s44_s0 = sadd.s32 1, %s5105_s23  ;;  %s41_s17 = ssub.s32 %s5109_s24, %s5309_s16 }
  0x39   : > { %p51_p7 = scmp.ne.s32.totalorder %s5105_s23, %s5101_s22  ;;  %p42_p8 = scmp.eq.s32.totalorder %s41_s17, 0 }
  0x3a   : > { %p52_p9 = scmp.eq.s32.totalorder %s5109_s24, 0  ;;  %p57_p10 = scmp.ne.s32.totalorder %s5101_s22, %s5097_s21 }
  0x3b   : > { %p396_p11 = scmp.eq.s32.totalorder %s5238_s27, 1  ;;  %p402_p0 = scmp.eq.s32.totalorder %s3225_s30, 1 }
  0x3c   : > { %s5321_s18 = scalar_select %p42_p8, %s5105_s23, %s44_s0  }
  0x3d   : > { %p5325_p12 = por %p58_p1, %p57_p10  ;;  %p5329_p13 = por %p396_p11, %p51_p7 }
  0x3e   : > { %p53_p2 = por %p52_p9, %p51_p7  ;;  %s558_s15 = sand.u32 1, %s5105_s23  }
  0x3f   : > { %p5334_p4 = por %p402_p0, %p57_p10  ;;  %p4636_p6 = scmp.lt.s32.totalorder %s5109_s24, 2 }
  0x40   : > { %s3237_s29 = sshll.u32 %s558_s15, 4  ;;  %s4291_s3 = sshll.u32 %s5109_s24, 4 }
  0x41   : > { %s5609_s26 = sld [smem:[#allocation27_spill]]  ;;  %s562_s13 = scalar_lea.vmem [#allocation2], %s3237_s29 }
  0x42   : > { %s570_s2 = sshll.u32 %s562_s13, 4  ;;  %p5343_p8 = pnand %p4636_p6, %p53_p2  ;;  %s571_s2 = int_to_ptr.vmem [resolvable:$true] %s570_s2 }
  0x43   : > { %s559_s4 = scalar_lea.sflag [#allocation3], %s558_s15 }
  0x44   : > { %p4997_p9 = pneg %p5343_p8 }
  0x47   : > { %s567_s0 = scalar_lea.hbm %s5609_s26, %s4291_s3  ;;  %s5000_s13 = scalar_lea.hbm %s5609_s26, 32 }
  0x48   : > { %s568_s17 = sshll.u32 %s567_s0, 4  ;;  %s569_s17 = int_to_ptr.hbm [resolvable:$true] %s568_s17 }
  0x49   : > { %s4993_s7 = sshra.s32 %s569_s17, 4  ;;  %s4994_s7 = int_to_ptr.hbm [resolvable:$true] %s4993_s7 }
  0x4a   : > { %s4995_s8 = scalar_lea.hbm %s4994_s7, 16  ;;  %p5001_p0 = scmp.lt.s32.totalorder %s4994_s7, %s5609_s26 }
  0x4b   : > { %p4996_p7 = scmp.ne.s32.totalorder %s4994_s7, %s4995_s8  ;;  %p5002_p2 = scmp.lt.s32.totalorder %s5000_s13, %s4995_s8 }
  0x4d   : > { %p4998_p10 = pnand %p4997_p9, %p4996_p7  ;;  %p5003_p6 = por %p5002_p2, %p5001_p0 }
  0x4f   : > { %p4999_p11 = pneg %p4998_p10 }
  0x51   : > { %p5004_p5 = pnand %p5003_p6, %p4999_p11 }
  0x53   : > { %5007 = shalt.err (!%p5004_p5)
}
  0x54   : > { %s5611_s15 = smov 8   ;;  %582 = sbr.rel (%p5243_p3) target bundleno = 1878 (0x756), region = 84 }
  0x55   : > { %4622 = dma.hbm_to_vmem [thread:$0]  (!%p5343_p8), %s569_s17, 256, %s571_s2, %s559_s4, %s5605_s1, %s5605_s1, %s5611_s15  }
  0x56   : > { %s5363_s0 = sand.u32 (!%p5243_p3), 1, %s5101_s22  }
  0x57   : > { %s3241_s7 = sshll.u32 (!%p5243_p3), %s5363_s0, 4  ;;  %s585_s8 = scalar_lea.sflag (!%p5243_p3), [#allocation3], %s5363_s0 }
  0x58   : > { %s5369_s3 = scalar_lea.vmem (!%p5243_p3), [#allocation2], %s3241_s7 }
  0x59   : > { %5068 = dma.done.wait (%p5325_p12), %s585_s8, 256  }
  0x5a   : > { %5070 = vsyncadd (%p5325_p12), %s585_s8, 4294967040 }
  0x5b   : > { %5072 = dma.done.wait (%p58_p1), [#allocation6], 12800  }
  0x5c   : > { %5074 = vsyncadd (%p58_p1), [#allocation6], 4294954496 }
  0x5d   : > { %5076 = dma.done.wait (%p58_p1), [#allocation9], 4192  }
  0x5e   : > { %5078 = vsyncadd (%p58_p1), [#allocation9], 4294963104 }
  0x5f   : > { %5080 = dma.done.wait (%p58_p1), [#allocation12], 64  }
  0x60   : > { %5082 = vsyncadd (%p58_p1), [#allocation12], 4294967232 }
  0x61   : > { %5084 = dma.done.wait (%p58_p1), [#allocation15], 16384  }
  0x62   : > { %5086 = vsyncadd (%p58_p1), [#allocation15], 4294950912 }
  0x63   : > { %5088 = dma.done.wait (%p58_p1), [#allocation18], 32  }
  0x64   : > { %5090 = vsyncadd (%p58_p1), [#allocation18], 4294967264  ;;  %v3430_v0 = vld [vmem:[#allocation7 + $0x150] sm:$0xf]  ;;  %v4339_v1 = vld [vmem:[#allocation7 + $0x164] sm:$0xf0] }
  0x65   : > { %v3622_v2 = vld [vmem:[#allocation7 + $0x2d0] sm:$0xf]  ;;  %v3431_v3 = vor.u32 %v4339_v1, %v3430_v0  ;;  %v4387_v4 = vld [vmem:[#allocation7 + $0x2e4] sm:$0xf0]  ;;  %v4336_v5 = vld [vmem:[#allocation7 + $0x154] sm:$0xf] }
  0x66   : > { %v3432_v6 = vld [vmem:[#allocation7 + $0x168] sm:$0xf0]  ;;  %v3623_v7 = vor.u32 %v4387_v4, %v3622_v2  ;;  %v4384_v9 = vld [vmem:[#allocation7 + $0x2d4] sm:$0xf]  ;;  %v3406_v11 = vld [vmem:[#allocation7 + $0x120] sm:$0xf] }
  0x67   : > { %v3435_v8 = vor.u32 %v4336_v5, %v3432_v6  ;;  %v3624_v10 = vld [vmem:[#allocation7 + $0x2e8] sm:$0xf0]  ;;  %1290 = vmatpush.bf16.msra.mxu0 %v3431_v3  ;;  %v4333_v13 = vld [vmem:[#allocation7 + $0x134] sm:$0xf0]  ;;  %v3598_v14 = vld [vmem:[#allocation7 + $0x2a0] sm:$0xf] }
  0x68   : > { %v3627_v12 = vor.u32 %v4384_v9, %v3624_v10  ;;  %v4381_v15 = vld [vmem:[#allocation7 + $0x2b4] sm:$0xf0]  ;;  %1304 = vmatpush.bf16.msra.mxu1 %v3623_v7  ;;  %v3407_v16 = vor.u32 %v4333_v13, %v3406_v11  ;;  %v4330_v18 = vld [vmem:[#allocation7 + $0x124] sm:$0xf]  ;;  %v3408_v19 = vld [vmem:[#allocation7 + $0x138] sm:$0xf0] }
  0x69   : > { %1318 = vmatpush.bf16.msra.mxu2 %v3435_v8  ;;  %v3599_v17 = vor.u32 %v4381_v15, %v3598_v14  ;;  %v4378_v20 = vld [vmem:[#allocation7 + $0x2a4] sm:$0xf]  ;;  %v3411_v21 = vor.u32 %v4330_v18, %v3408_v19  ;;  %v3600_v22 = vld [vmem:[#allocation7 + $0x2b8] sm:$0xf0]  ;;  %v3382_v23 = vld [vmem:[#allocation7 + $0xf0] sm:$0xf] }
  0x6a   : > { %1332 = vmatpush.bf16.msra.mxu3 %v3627_v12  ;;  %v4327_v24 = vld [vmem:[#allocation7 + $0x104] sm:$0xf0]  ;;  %v3603_v25 = vor.u32 %v4378_v20, %v3600_v22  ;;  %v3574_v26 = vld [vmem:[#allocation7 + $0x270] sm:$0xf]  ;;  %v4324_v28 = vld [vmem:[#allocation7 + $0xf4] sm:$0xf] }
  0x6b   : > { %v4375_v27 = vld [vmem:[#allocation7 + $0x284] sm:$0xf0]  ;;  %1291 = vmatpush.bf16.msra.mxu0 %v3407_v16  ;;  %v3383_v29 = vor.u32 %v4327_v24, %v3382_v23  ;;  %v3384_v30 = vld [vmem:[#allocation7 + $0x108] sm:$0xf0]  ;;  %v4372_v31 = vld [vmem:[#allocation7 + $0x274] sm:$0xf] }
  0x6c   : > { %v3576_v32 = vld [vmem:[#allocation7 + $0x288] sm:$0xf0]  ;;  %1305 = vmatpush.bf16.msra.mxu1 %v3599_v17  ;;  %v3575_v33 = vor.u32 %v4375_v27, %v3574_v26  ;;  %v3387_v34 = vor.u32 %v4324_v28, %v3384_v30  ;;  %v3358_v35 = vld [vmem:[#allocation7 + $0xc0] sm:$0xf]  ;;  %v4321_v36 = vld [vmem:[#allocation7 + $0xd4] sm:$0xf0] }
  0x6d   : > { %1319 = vmatpush.bf16.msra.mxu2 %v3411_v21  ;;  %v3550_v37 = vld [vmem:[#allocation7 + $0x240] sm:$0xf]  ;;  %v3579_v38 = vor.u32 %v4372_v31, %v3576_v32  ;;  %v4369_v39 = vld [vmem:[#allocation7 + $0x254] sm:$0xf0]  ;;  %v4318_v40 = vld [vmem:[#allocation7 + $0xc4] sm:$0xf]  ;;  %v3359_v44 = vor.u32 %v4321_v36, %v3358_v35 }
  0x6e   : > { %1333 = vmatpush.bf16.msra.mxu3 %v3603_v25  ;;  %v3360_v41 = vld [vmem:[#allocation7 + $0xd8] sm:$0xf0]  ;;  %v4366_v42 = vld [vmem:[#allocation7 + $0x244] sm:$0xf]  ;;  %v3551_v45 = vor.u32 %v4369_v39, %v3550_v37  ;;  %v3334_v47 = vld [vmem:[#allocation7 + $0x90] sm:$0xf] }
  0x6f   : > { %v3552_v43 = vld [vmem:[#allocation7 + $0x258] sm:$0xf0]  ;;  %1292 = vmatpush.bf16.msra.mxu0 %v3383_v29  ;;  %v3363_v46 = vor.u32 %v4318_v40, %v3360_v41  ;;  %v4315_v48 = vld [vmem:[#allocation7 + $0xa4] sm:$0xf0]  ;;  %v3526_v49 = vld [vmem:[#allocation7 + $0x210] sm:$0xf] }
  0x70   : > { %1306 = vmatpush.bf16.msra.mxu1 %v3575_v33  ;;  %v3555_v50 = vor.u32 %v4366_v42, %v3552_v43  ;;  %v4363_v51 = vld [vmem:[#allocation7 + $0x224] sm:$0xf0]  ;;  %v4312_v52 = vld [vmem:[#allocation7 + $0x94] sm:$0xf]  ;;  %v3336_v53 = vld [vmem:[#allocation7 + $0xa8] sm:$0xf0]  ;;  %v3335_v56 = vor.u32 %v4315_v48, %v3334_v47 }
  0x71   : > { %1320 = vmatpush.bf16.msra.mxu2 %v3387_v34  ;;  %v4360_v54 = vld [vmem:[#allocation7 + $0x214] sm:$0xf]  ;;  %v3528_v55 = vld [vmem:[#allocation7 + $0x228] sm:$0xf0]  ;;  %v3527_v57 = vor.u32 %v4363_v51, %v3526_v49  ;;  %v3339_v58 = vor.u32 %v4312_v52, %v3336_v53  ;;  %v3310_v59 = vld [vmem:[#allocation7 + $0x60] sm:$0xf] }
  0x72   : > { %1334 = vmatpush.bf16.msra.mxu3 %v3579_v38  ;;  %v4309_v60 = vld [vmem:[#allocation7 + $0x74] sm:$0xf0]  ;;  %v3502_v61 = vld [vmem:[#allocation7 + $0x1e0] sm:$0xf]  ;;  %v3531_v62 = vor.u32 %v4360_v54, %v3528_v55  ;;  %v4306_v0 = vld [vmem:[#allocation7 + $0x64] sm:$0xf] }
  0x73   : > { %1293 = vmatpush.bf16.msra.mxu0 %v3359_v44  ;;  %v4357_v63 = vld [vmem:[#allocation7 + $0x1f4] sm:$0xf0]  ;;  %v3312_v1 = vld [vmem:[#allocation7 + $0x78] sm:$0xf0]  ;;  %v4354_v2 = vld [vmem:[#allocation7 + $0x1e4] sm:$0xf]  ;;  %v3311_v4 = vor.u32 %v4309_v60, %v3310_v59 }
  0x74   : > { %1307 = vmatpush.bf16.msra.mxu1 %v3551_v45  ;;  %v3504_v3 = vld [vmem:[#allocation7 + $0x1f8] sm:$0xf0]  ;;  %v3503_v5 = vor.u32 %v4357_v63, %v3502_v61  ;;  %v3315_v6 = vor.u32 %v4306_v0, %v3312_v1  ;;  %v3286_v7 = vld [vmem:[#allocation7 + $0x30] sm:$0xf]  ;;  %v4303_v8 = vld [vmem:[#allocation7 + $0x44] sm:$0xf0] }
  0x75   : > { %1321 = vmatpush.bf16.msra.mxu2 %v3363_v46  ;;  %v3478_v9 = vld [vmem:[#allocation7 + $0x1b0] sm:$0xf]  ;;  %v3507_v10 = vor.u32 %v4354_v2, %v3504_v3  ;;  %v4351_v11 = vld [vmem:[#allocation7 + $0x1c4] sm:$0xf0]  ;;  %v4300_v12 = vld [vmem:[#allocation7 + $0x34] sm:$0xf]  ;;  %v3287_v16 = vor.u32 %v4303_v8, %v3286_v7 }
  0x76   : > { %1335 = vmatpush.bf16.msra.mxu3 %v3555_v50  ;;  %v3288_v13 = vld [vmem:[#allocation7 + $0x48] sm:$0xf0]  ;;  %v4348_v14 = vld [vmem:[#allocation7 + $0x1b4] sm:$0xf]  ;;  %v3262_v17 = vld [vmem:[#allocation7] sm:$0xf]  ;;  %v3479_v20 = vor.u32 %v4351_v11, %v3478_v9 }
  0x77   : > { %1294 = vmatpush.bf16.msra.mxu0 %v3335_v56  ;;  %v3480_v15 = vld [vmem:[#allocation7 + $0x1c8] sm:$0xf0]  ;;  %v4297_v18 = vld [vmem:[#allocation7 + $0x14] sm:$0xf0]  ;;  %v3454_v19 = vld [vmem:[#allocation7 + $0x180] sm:$0xf]  ;;  %v3291_v21 = vor.u32 %v4300_v12, %v3288_v13 }
  0x78   : > { %1308 = vmatpush.bf16.msra.mxu1 %v3527_v57  ;;  %v4345_v22 = vld [vmem:[#allocation7 + $0x194] sm:$0xf0]  ;;  %v4294_v23 = vld [vmem:[#allocation7 + $0x4] sm:$0xf]  ;;  %v3264_v24 = vld [vmem:[#allocation7 + $0x18] sm:$0xf0]  ;;  %v3483_v25 = vor.u32 %v4348_v14, %v3480_v15  ;;  %v3263_v32 = vor.u32 %v4297_v18, %v3262_v17 }
  0x79   : > { %1322 = vmatpush.bf16.msra.mxu2 %v3339_v58  ;;  %v4342_v26 = vld [vmem:[#allocation7 + $0x184] sm:$0xf]  ;;  %v3456_v27 = vld [vmem:[#allocation7 + $0x198] sm:$0xf0]  ;;  %v3438_v28 = vld [vmem:[#allocation7 + $0x158] sm:$0xf]  ;;  %v3455_v36 = vor.u32 %v4345_v22, %v3454_v19  ;;  %v3267_v37 = vor.u32 %v4294_v23, %v3264_v24 }
  0x7a   : > { %1336 = vmatpush.bf16.msra.mxu3 %v3531_v62  ;;  %v4340_v29 = vld [vmem:[#allocation7 + $0x16c] sm:$0xf0]  ;;  %v3630_v30 = vld [vmem:[#allocation7 + $0x2d8] sm:$0xf]  ;;  %v4337_v33 = vld [vmem:[#allocation7 + $0x15c] sm:$0xf]  ;;  %v3459_v41 = vor.u32 %v4342_v26, %v3456_v27 }
  0x7b   : > { %1295 = vmatpush.bf16.msra.mxu0 %v3311_v4  ;;  %v4388_v31 = vld [vmem:[#allocation7 + $0x2ec] sm:$0xf0]  ;;  %v3440_v34 = vld [vmem:[#allocation7 + $0x170] sm:$0xf0]  ;;  %v4385_v35 = vld [vmem:[#allocation7 + $0x2dc] sm:$0xf]  ;;  %v3439_v42 = vor.u32 %v4340_v29, %v3438_v28 }
  0x7c   : > { %1309 = vmatpush.bf16.msra.mxu1 %v3503_v5  ;;  %v3632_v38 = vld [vmem:[#allocation7 + $0x2f0] sm:$0xf0]  ;;  %v3254_v39 = vld [vmem:[%s5369_s3] sm:$0xf]  ;;  %v4293_v40 = vld [vmem:[%s5369_s3 + $0x4] sm:$0xf0]  ;;  %v3631_v45 = vor.u32 %v4388_v31, %v3630_v30  ;;  %v3443_v46 = vor.u32 %v4337_v33, %v3440_v34 }
  0x7d   : > { %1323 = vmatpush.bf16.msra.mxu2 %v3315_v6  ;;  %v3414_v43 = vld [vmem:[#allocation7 + $0x128] sm:$0xf]  ;;  %v4334_v44 = vld [vmem:[#allocation7 + $0x13c] sm:$0xf0]  ;;  %v4292_v48 = vld [vmem:[%s5369_s3 + $0x4] sm:$0xf]  ;;  %v3635_v50 = vor.u32 %v4385_v35, %v3632_v38  ;;  %v5399_v54 = vor.u32 %v4293_v40, %v3254_v39 }
  0x7e   : > { %1337 = vmatpush.bf16.msra.mxu3 %v3507_v10  ;;  %v3606_v47 = vld [vmem:[#allocation7 + $0x2a8] sm:$0xf]  ;;  %v3256_v49 = vld [vmem:[%s5369_s3 + $0x8] sm:$0xf0]  ;;  %v4382_v51 = vld [vmem:[#allocation7 + $0x2bc] sm:$0xf0]  ;;  %v3415_v58 = vor.u32 %v4334_v44, %v3414_v43 }
  0x7f   : > { %1296 = vmatpush.bf16.msra.mxu0 %v3287_v16  ;;  %v4331_v52 = vld [vmem:[#allocation7 + $0x12c] sm:$0xf]  ;;  %v3416_v53 = vld [vmem:[#allocation7 + $0x140] sm:$0xf0]  ;;  %v5401_v57 = vor.u32 %v4292_v48, %v3256_v49  ;;  %v3607_v59 = vor.u32 %v4382_v51, %v3606_v47  ;;  %v3390_v61 = vld [vmem:[#allocation7 + $0xf8] sm:$0xf] }
  0x80   : > { %1310 = vmatpush.bf16.msra.mxu1 %v3479_v20  ;;  %v4379_v55 = vld [vmem:[#allocation7 + $0x2ac] sm:$0xf]  ;;  %v3608_v56 = vld [vmem:[#allocation7 + $0x2c0] sm:$0xf0]  ;;  %v3419_v60 = vor.u32 %v4331_v52, %v3416_v53  ;;  %v4328_v62 = vld [vmem:[#allocation7 + $0x10c] sm:$0xf0] }
  0x81   : > { %1324 = vmatpush.bf16.msra.mxu2 %v3291_v21  ;;  %v3582_v63 = vld [vmem:[#allocation7 + $0x278] sm:$0xf]  ;;  %v3611_v0 = vor.u32 %v4379_v55, %v3608_v56  ;;  %v4376_v1 = vld [vmem:[#allocation7 + $0x28c] sm:$0xf0]  ;;  %v4325_v2 = vld [vmem:[#allocation7 + $0xfc] sm:$0xf]  ;;  %v3391_v6 = vor.u32 %v4328_v62, %v3390_v61 }
  0x82   : > { %1338 = vmatpush.bf16.msra.mxu3 %v3483_v25  ;;  %v3392_v3 = vld [vmem:[#allocation7 + $0x110] sm:$0xf0]  ;;  %v4373_v4 = vld [vmem:[#allocation7 + $0x27c] sm:$0xf]  ;;  %v3583_v7 = vor.u32 %v4376_v1, %v3582_v63  ;;  %v3366_v9 = vld [vmem:[#allocation7 + $0xc8] sm:$0xf] }
  0x83   : > { %1297 = vmatpush.bf16.msra.mxu0 %v3263_v32  ;;  %v3584_v5 = vld [vmem:[#allocation7 + $0x290] sm:$0xf0]  ;;  %v3395_v8 = vor.u32 %v4325_v2, %v3392_v3  ;;  %v4322_v10 = vld [vmem:[#allocation7 + $0xdc] sm:$0xf0]  ;;  %v3558_v11 = vld [vmem:[#allocation7 + $0x248] sm:$0xf] }
  0x84   : > { %1311 = vmatpush.bf16.msra.mxu1 %v3455_v36  ;;  %v3587_v12 = vor.u32 %v4373_v4, %v3584_v5  ;;  %v4370_v13 = vld [vmem:[#allocation7 + $0x25c] sm:$0xf0]  ;;  %v4319_v14 = vld [vmem:[#allocation7 + $0xcc] sm:$0xf]  ;;  %v3368_v15 = vld [vmem:[#allocation7 + $0xe0] sm:$0xf0]  ;;  %v3367_v18 = vor.u32 %v4322_v10, %v3366_v9 }
  0x85   : > { %1325 = vmatpush.bf16.msra.mxu2 %v3267_v37  ;;  %v4367_v16 = vld [vmem:[#allocation7 + $0x24c] sm:$0xf]  ;;  %v3560_v17 = vld [vmem:[#allocation7 + $0x260] sm:$0xf0]  ;;  %v3559_v19 = vor.u32 %v4370_v13, %v3558_v11  ;;  %v3371_v20 = vor.u32 %v4319_v14, %v3368_v15  ;;  %v3342_v21 = vld [vmem:[#allocation7 + $0x98] sm:$0xf] }
  0x86   : > { %1339 = vmatpush.bf16.msra.mxu3 %v3459_v41  ;;  %1298 = vmatmul.bf16.vlgmr.msra.gmra.mxu0 %v5399_v54  ;;  %v4316_v22 = vld [vmem:[#allocation7 + $0xac] sm:$0xf0]  ;;  %v3534_v23 = vld [vmem:[#allocation7 + $0x218] sm:$0xf]  ;;  %v3563_v24 = vor.u32 %v4367_v16, %v3560_v17  ;;  %v4313_v26 = vld [vmem:[#allocation7 + $0x9c] sm:$0xf] }
  0x87   : > { %1346 = vmatpush.bf16.msrb.mxu0 %v3439_v42  ;;  %1312 = vmatmul.bf16.vlgmr.msra.gmra.mxu1 %v5401_v57  ;;  %v4364_v25 = vld [vmem:[#allocation7 + $0x22c] sm:$0xf0]  ;;  %v3344_v27 = vld [vmem:[#allocation7 + $0xb0] sm:$0xf0]  ;;  %v4361_v28 = vld [vmem:[#allocation7 + $0x21c] sm:$0xf]  ;;  %v3343_v30 = vor.u32 %v4316_v22, %v3342_v21 }
  0x88   : > { %1360 = vmatpush.bf16.msrb.mxu1 %v3631_v45  ;;  %1326 = vmatmul.bf16.vlgmr.msra.gmra.mxu2 %v5399_v54  ;;  %v3536_v29 = vld [vmem:[#allocation7 + $0x230] sm:$0xf0]  ;;  %v3535_v31 = vor.u32 %v4364_v25, %v3534_v23  ;;  %v3347_v32 = vor.u32 %v4313_v26, %v3344_v27  ;;  %v3318_v33 = vld [vmem:[#allocation7 + $0x68] sm:$0xf]  ;;  %v4310_v34 = vld [vmem:[#allocation7 + $0x7c] sm:$0xf0] }
  0x89   : > { %1374 = vmatpush.bf16.msrb.mxu2 %v3443_v46  ;;  %1340 = vmatmul.bf16.vlgmr.msra.gmra.mxu3 %v5401_v57  ;;  %v3510_v35 = vld [vmem:[#allocation7 + $0x1e8] sm:$0xf]  ;;  %v3539_v36 = vor.u32 %v4361_v28, %v3536_v29  ;;  %v4358_v37 = vld [vmem:[#allocation7 + $0x1fc] sm:$0xf0]  ;;  %v4307_v38 = vld [vmem:[#allocation7 + $0x6c] sm:$0xf]  ;;  %v3319_v42 = vor.u32 %v4310_v34, %v3318_v33 }
  0x8a   : > { %1388 = vmatpush.bf16.msrb.mxu3 %v3635_v50  ;;  %v3320_v39 = vld [vmem:[#allocation7 + $0x80] sm:$0xf0]  ;;  %v4355_v40 = vld [vmem:[#allocation7 + $0x1ec] sm:$0xf]  ;;  %v3511_v43 = vor.u32 %v4358_v37, %v3510_v35  ;;  %v3294_v45 = vld [vmem:[#allocation7 + $0x38] sm:$0xf] }
  0x8b   : > { %1347 = vmatpush.bf16.msrb.mxu0 %v3415_v58  ;;  %v3512_v41 = vld [vmem:[#allocation7 + $0x200] sm:$0xf0]  ;;  %v3323_v44 = vor.u32 %v4307_v38, %v3320_v39  ;;  %v4304_v46 = vld [vmem:[#allocation7 + $0x4c] sm:$0xf0]  ;;  %v3486_v47 = vld [vmem:[#allocation7 + $0x1b8] sm:$0xf] }
  0x8c   : > { %1361 = vmatpush.bf16.msrb.mxu1 %v3607_v59  ;;  %v3515_v48 = vor.u32 %v4355_v40, %v3512_v41  ;;  %v4352_v49 = vld [vmem:[#allocation7 + $0x1cc] sm:$0xf0]  ;;  %v4301_v50 = vld [vmem:[#allocation7 + $0x3c] sm:$0xf]  ;;  %v3296_v51 = vld [vmem:[#allocation7 + $0x50] sm:$0xf0]  ;;  %v3295_v55 = vor.u32 %v4304_v46, %v3294_v45 }
  0x8d   : > { %1375 = vmatpush.bf16.msrb.mxu2 %v3419_v60  ;;  %v4349_v52 = vld [vmem:[#allocation7 + $0x1bc] sm:$0xf]  ;;  %v3488_v53 = vld [vmem:[#allocation7 + $0x1d0] sm:$0xf0]  ;;  %v3487_v56 = vor.u32 %v4352_v49, %v3486_v47  ;;  %v3299_v58 = vor.u32 %v4301_v50, %v3296_v51  ;;  %v3270_v59 = vld [vmem:[#allocation7 + $0x8] sm:$0xf] }
  0x8e   : > { %1389 = vmatpush.bf16.msrb.mxu3 %v3611_v0  ;;  %v4298_v60 = vld [vmem:[#allocation7 + $0x1c] sm:$0xf0]  ;;  %v3462_v61 = vld [vmem:[#allocation7 + $0x188] sm:$0xf]  ;;  %v3491_v62 = vor.u32 %v4349_v52, %v3488_v53  ;;  %v4295_v0 = vld [vmem:[#allocation7 + $0xc] sm:$0xf] }
  0x8f   : > { %1348 = vmatpush.bf16.msrb.mxu0 %v3391_v6  ;;  %v4346_v63 = vld [vmem:[#allocation7 + $0x19c] sm:$0xf0]  ;;  %v3272_v1 = vld [vmem:[#allocation7 + $0x20] sm:$0xf0]  ;;  %v4343_v2 = vld [vmem:[#allocation7 + $0x18c] sm:$0xf]  ;;  %v3271_v4 = vor.u32 %v4298_v60, %v3270_v59 }
  0x90   : > { %1362 = vmatpush.bf16.msrb.mxu1 %v3583_v7  ;;  %v3464_v3 = vld [vmem:[#allocation7 + $0x1a0] sm:$0xf0]  ;;  %v3463_v5 = vor.u32 %v4346_v63, %v3462_v61  ;;  %v3275_v6 = vor.u32 %v4295_v0, %v3272_v1  ;;  %v3448_v9 = vld [vmem:[#allocation7 + $0x178] sm:$0xf0]  ;;  %v4332_v14 = vld [vmem:[#allocation7 + $0x134] sm:$0xf] }
  0x91   : > { %1376 = vmatpush.bf16.msrb.mxu2 %v3395_v8  ;;  %v3467_v7 = vor.u32 %v4343_v2, %v3464_v3  ;;  %v4338_v8 = vld [vmem:[#allocation7 + $0x164] sm:$0xf]  ;;  %v3424_v15 = vld [vmem:[#allocation7 + $0x148] sm:$0xf0]  ;;  %v3446_v17 = vld [vmem:[#allocation7 + $0x160] sm:$0xf] }
  0x92   : > { %1390 = vmatpush.bf16.msrb.mxu3 %v3587_v12  ;;  %v3451_v10 = vor.u32 %v4338_v8, %v3448_v9  ;;  %v4386_v11 = vld [vmem:[#allocation7 + $0x2e4] sm:$0xf]  ;;  %v3640_v12 = vld [vmem:[#allocation7 + $0x2f8] sm:$0xf0]  ;;  %v3427_v16 = vor.u32 %v4332_v14, %v3424_v15  ;;  %v3616_v21 = vld [vmem:[#allocation7 + $0x2c8] sm:$0xf0] }
  0x93   : > { %1349 = vmatpush.bf16.msrb.mxu0 %v3367_v18  ;;  %v3643_v13 = vor.u32 %v4386_v11, %v3640_v12  ;;  %v4341_v18 = vld [vmem:[#allocation7 + $0x174] sm:$0xf0]  ;;  %v3422_v22 = vld [vmem:[#allocation7 + $0x130] sm:$0xf]  ;;  %v4335_v23 = vld [vmem:[#allocation7 + $0x144] sm:$0xf0] }
  0x94   : > { %1363 = vmatpush.bf16.msrb.mxu1 %v3559_v19  ;;  %v4380_v19 = vld [vmem:[#allocation7 + $0x2b4] sm:$0xf]  ;;  %v4326_v25 = vld [vmem:[#allocation7 + $0x104] sm:$0xf]  ;;  %v3423_v26 = vor.u32 %v4335_v23, %v3422_v22  ;;  %v3400_v27 = vld [vmem:[#allocation7 + $0x118] sm:$0xf0] }
  0x95   : > { %1377 = vmatpush.bf16.msrb.mxu2 %v3371_v20  ;;  %v3447_v20 = vor.u32 %v4341_v18, %v3446_v17  ;;  %v3638_v28 = vld [vmem:[#allocation7 + $0x2e0] sm:$0xf]  ;;  %v4389_v29 = vld [vmem:[#allocation7 + $0x2f4] sm:$0xf0]  ;;  %v3592_v33 = vld [vmem:[#allocation7 + $0x298] sm:$0xf0] }
  0x96   : > { %1391 = vmatpush.bf16.msrb.mxu3 %v3563_v24  ;;  %v3619_v24 = vor.u32 %v4380_v19, %v3616_v21  ;;  %v4320_v35 = vld [vmem:[#allocation7 + $0xd4] sm:$0xf]  ;;  %v3614_v37 = vld [vmem:[#allocation7 + $0x2b0] sm:$0xf]  ;;  %v4383_v39 = vld [vmem:[#allocation7 + $0x2c4] sm:$0xf0] }
  0x97   : > { %1350 = vmatpush.bf16.msrb.mxu0 %v3343_v30  ;;  %v3403_v30 = vor.u32 %v4326_v25, %v3400_v27  ;;  %v3398_v40 = vld [vmem:[#allocation7 + $0x100] sm:$0xf]  ;;  %v4329_v41 = vld [vmem:[#allocation7 + $0x114] sm:$0xf0]  ;;  %v3568_v45 = vld [vmem:[#allocation7 + $0x268] sm:$0xf0] }
  0x98   : > { %1364 = vmatpush.bf16.msrb.mxu1 %v3535_v31  ;;  %v3639_v31 = vor.u32 %v4389_v29, %v3638_v28  ;;  %v4314_v47 = vld [vmem:[#allocation7 + $0xa4] sm:$0xf]  ;;  %v3590_v49 = vld [vmem:[#allocation7 + $0x280] sm:$0xf]  ;;  %v4377_v51 = vld [vmem:[#allocation7 + $0x294] sm:$0xf0] }
  0x99   : > { %1378 = vmatpush.bf16.msrb.mxu2 %v3347_v32  ;;  %v4374_v32 = vld [vmem:[#allocation7 + $0x284] sm:$0xf]  ;;  %v3374_v52 = vld [vmem:[#allocation7 + $0xd0] sm:$0xf]  ;;  %v4323_v53 = vld [vmem:[#allocation7 + $0xe4] sm:$0xf0] }
  0x9a   : > { %1392 = vmatpush.bf16.msrb.mxu3 %v3539_v36  ;;  %v3595_v34 = vor.u32 %v4374_v32, %v3592_v33  ;;  %v3376_v36 = vld [vmem:[#allocation7 + $0xe8] sm:$0xf0]  ;;  %v3544_v59 = vld [vmem:[#allocation7 + $0x238] sm:$0xf0]  ;;  %v4308_v61 = vld [vmem:[#allocation7 + $0x74] sm:$0xf] }
  0x9b   : > { %1351 = vmatpush.bf16.msrb.mxu0 %v3319_v42  ;;  %v3379_v38 = vor.u32 %v4320_v35, %v3376_v36  ;;  %v3615_v42 = vor.u32 %v4383_v39, %v3614_v37  ;;  %v3566_v63 = vld [vmem:[#allocation7 + $0x250] sm:$0xf]  ;;  %v4371_v1 = vld [vmem:[#allocation7 + $0x264] sm:$0xf0]  ;;  %v3350_v2 = vld [vmem:[#allocation7 + $0xa0] sm:$0xf] }
  0x9c   : > { %1365 = vmatpush.bf16.msrb.mxu1 %v3511_v43  ;;  %v4368_v43 = vld [vmem:[#allocation7 + $0x254] sm:$0xf]  ;;  %v4317_v3 = vld [vmem:[#allocation7 + $0xb4] sm:$0xf0]  ;;  %v4302_v9 = vld [vmem:[#allocation7 + $0x44] sm:$0xf] }
  0x9d   : > { %1379 = vmatpush.bf16.msrb.mxu2 %v3323_v44  ;;  %v3399_v44 = vor.u32 %v4329_v41, %v3398_v40  ;;  %v3571_v46 = vor.u32 %v4368_v43, %v3568_v45  ;;  %v3542_v11 = vld [vmem:[#allocation7 + $0x220] sm:$0xf]  ;;  %v3326_v14 = vld [vmem:[#allocation7 + $0x70] sm:$0xf]  ;;  %v4311_v15 = vld [vmem:[#allocation7 + $0x84] sm:$0xf0] }
  0x9e   : > { %1393 = vmatpush.bf16.msrb.mxu3 %v3515_v48  ;;  %v3352_v48 = vld [vmem:[#allocation7 + $0xb8] sm:$0xf0]  ;;  %v4350_v17 = vld [vmem:[#allocation7 + $0x1c4] sm:$0xf]  ;;  %v3327_v18 = vor.u32 %v4311_v15, %v3326_v14  ;;  %v4296_v21 = vld [vmem:[#allocation7 + $0x14] sm:$0xf] }
  0x9f   : > { %1352 = vmatpush.bf16.msrb.mxu0 %v3295_v55  ;;  %v3355_v50 = vor.u32 %v4314_v47, %v3352_v48  ;;  %v3591_v55 = vor.u32 %v4377_v51, %v3590_v49  ;;  %v3496_v19 = vld [vmem:[#allocation7 + $0x1d8] sm:$0xf0]  ;;  %v3280_v22 = vld [vmem:[#allocation7 + $0x28] sm:$0xf0]  ;;  %v3518_v23 = vld [vmem:[#allocation7 + $0x1f0] sm:$0xf] }
  0xa0   : > { %1366 = vmatpush.bf16.msrb.mxu1 %v3487_v56  ;;  %v3375_v56 = vor.u32 %v4323_v53, %v3374_v52  ;;  %v4359_v25 = vld [vmem:[#allocation7 + $0x204] sm:$0xf0]  ;;  %v4305_v27 = vld [vmem:[#allocation7 + $0x54] sm:$0xf0]  ;;  %v4344_v29 = vld [vmem:[#allocation7 + $0x194] sm:$0xf] }
  0xa1   : > { %1380 = vmatpush.bf16.msrb.mxu2 %v3299_v58  ;;  %v4362_v58 = vld [vmem:[#allocation7 + $0x224] sm:$0xf]  ;;  %v3519_v28 = vor.u32 %v4359_v25, %v3518_v23  ;;  %v3494_v33 = vld [vmem:[#allocation7 + $0x1c0] sm:$0xf]  ;;  %v3278_v36 = vld [vmem:[#allocation7 + $0x10] sm:$0xf] }
  0xa2   : > { %1394 = vmatpush.bf16.msrb.mxu3 %v3491_v62  ;;  %v3547_v60 = vor.u32 %v4362_v58, %v3544_v59  ;;  %v3328_v62 = vld [vmem:[#allocation7 + $0x88] sm:$0xf0]  ;;  %v4299_v37 = vld [vmem:[#allocation7 + $0x24] sm:$0xf0]  ;;  %v3470_v39 = vld [vmem:[#allocation7 + $0x190] sm:$0xf] }
  0xa3   : > { %1353 = vmatpush.bf16.msrb.mxu0 %v3271_v4  ;;  %v3331_v0 = vor.u32 %v4308_v61, %v3328_v62  ;;  %v3567_v4 = vor.u32 %v4371_v1, %v3566_v63  ;;  %v4347_v40 = vld [vmem:[#allocation7 + $0x1a4] sm:$0xf0]  ;;  %v5415_v51 = vld [vmem:[#allocation8] sm:$0x3f]  ;;  %vm1492_vm0 = vcmask 130048   ;;  %s5612_s13 = sld [smem:[#allocation35_spill]] }
  0xa4   : > { %1367 = vmatpush.bf16.msrb.mxu1 %v3463_v5  ;;  %v4356_v5 = vld [vmem:[#allocation7 + $0x1f4] sm:$0xf]  ;;  %v3471_v41 = vor.u32 %v4347_v40, %v3470_v39  ;;  %v790_v52 = vperm.slane %v5415_v51, 2  ;;  %v791_v53 = vperm.slane %v5415_v51, 3  ;;  %s5613_s15 = sld [smem:[#allocation36_spill]]  ;;  %s4550_s8 = sshll.u32 %s5238_s27, 4 }
  0xa5   : > { %1381 = vmatpush.bf16.msrb.mxu2 %v3275_v6  ;;  %v3351_v6 = vor.u32 %v4317_v3, %v3350_v2  ;;  %s5614_s4 = sld [smem:[#allocation37_spill]]  ;;  %s682_s1 = scalar_lea.vmem [#allocation19], %s3241_s7 }
  0xa6   : > { %1395 = vmatpush.bf16.msrb.mxu3 %v3467_v7  ;;  %1354 = vmatmul.bf16.vlgmr.msrb.gmra.mxu0 %v5399_v54  ;;  %v3520_v7 = vld [vmem:[#allocation7 + $0x208] sm:$0xf0]  ;;  %s3063_s19 = sshll.u32 %s682_s1, 4  ;;  %s3051_s17 = scalar_lea.sflag [#allocation4], %s5363_s0  ;;  %s3064_s19 = int_to_ptr.vmem [resolvable:$true] %s3063_s19 }
  0xa7   : > { %1368 = vmatmul.bf16.vlgmr.msrb.gmra.mxu1 %v5401_v57  ;;  %1402 = vmatpush.bf16.msra.mxu0 %v3447_v20  ;;  %v3523_v8 = vor.u32 %v4356_v5, %v3520_v7  ;;  %v3499_v20 = vor.u32 %v4350_v17, %v3496_v19 }
  0xa8   : > { %1382 = vmatmul.bf16.vlgmr.msrb.gmra.mxu2 %v5399_v54  ;;  %1416 = vmatpush.bf16.msra.mxu1 %v3639_v31  ;;  %v3472_v31 = vld [vmem:[#allocation7 + $0x1a8] sm:$0xf0] }
  0xa9   : > { %1396 = vmatmul.bf16.vlgmr.msrb.gmra.mxu3 %v5401_v57  ;;  %1430 = vmatpush.bf16.msra.mxu2 %v3451_v10  ;;  %v3304_v10 = vld [vmem:[#allocation7 + $0x58] sm:$0xf0]  ;;  %v3475_v32 = vor.u32 %v4344_v29, %v3472_v31  ;;  %v792_v31 = vperm.slane %v5415_v51, 4 }
  0xaa   : > { %1444 = vmatpush.bf16.msra.mxu3 %v3643_v13  ;;  %v3307_v12 = vor.u32 %v4302_v9, %v3304_v10  ;;  %v4365_v13 = vld [vmem:[#allocation7 + $0x234] sm:$0xf0] }
  0xab   : > { %1403 = vmatpush.bf16.msra.mxu0 %v3423_v26  ;;  %v3302_v26 = vld [vmem:[#allocation7 + $0x40] sm:$0xf]  ;;  %s3062_s28 = scalar_lea.hbm %s5614_s4, %s4550_s8  ;;  %s5043_s29 = scalar_lea.hbm %s5614_s4, 32 }
  0xac   : > { %1417 = vmatpush.bf16.msra.mxu1 %v3615_v42  ;;  %s3065_s27 = sshll.u32 %s3062_s28, 4  ;;  %s3066_s27 = int_to_ptr.hbm [resolvable:$true] %s3065_s27 }
  0xad   : > { %1431 = vmatpush.bf16.msra.mxu2 %v3427_v16  ;;  %v3543_v16 = vor.u32 %v4365_v13, %v3542_v11  ;;  %s5037_s30 = sshra.s32 %s3066_s27, 4  ;;  %s5038_s30 = int_to_ptr.hbm [resolvable:$true] %s5037_s30 }
  0xae   : > { %1445 = vmatpush.bf16.msra.mxu3 %v3619_v24  ;;  %v3283_v24 = vor.u32 %v4296_v21, %v3280_v22  ;;  %s5039_s6 = scalar_lea.hbm %s5038_s30, 16  ;;  %p5044_p12 = scmp.lt.s32.totalorder %s5038_s30, %s5614_s4 }
  0xaf   : > { %1404 = vmatpush.bf16.msra.mxu0 %v3399_v44  ;;  %p5040_p1 = scmp.ne.s32.totalorder %s5038_s30, %s5039_s6  ;;  %p5045_p8 = scmp.lt.s32.totalorder %s5043_s29, %s5039_s6 }
  0xb0   : > { %1418 = vmatpush.bf16.msra.mxu1 %v3591_v55 }
  0xb1   : > { %1432 = vmatpush.bf16.msra.mxu2 %v3403_v30  ;;  %v3303_v30 = vor.u32 %v4305_v27, %v3302_v26  ;;  %p5041_p3 = pnand %p5040_p1, %p5329_p13  ;;  %p5046_p7 = por %p5045_p8, %p5044_p12 }
  0xb2   : > { %1446 = vmatpush.bf16.msra.mxu3 %v3595_v34  ;;  %v4353_v34 = vld [vmem:[#allocation7 + $0x1d4] sm:$0xf0] }
  0xb3   : > { %1405 = vmatpush.bf16.msra.mxu0 %v3375_v56  ;;  %v3495_v35 = vor.u32 %v4353_v34, %v3494_v33  ;;  %p5042_p5 = pneg %p5041_p3 }
  0xb4   : > { %1419 = vmatpush.bf16.msra.mxu1 %v3567_v4 }
  0xb5   : > { %1433 = vmatpush.bf16.msra.mxu2 %v3379_v38  ;;  %v3279_v38 = vor.u32 %v4299_v37, %v3278_v36  ;;  %p5047_p9 = pnand %p5046_p7, %p5042_p5 }
  0xb6   : > { %1447 = vmatpush.bf16.msra.mxu3 %v3571_v46 }
  0xb7   : > { %1406 = vmatpush.bf16.msra.mxu0 %v3351_v6 }
  0xb8   : > { %1420 = vmatpush.bf16.msra.mxu1 %v3543_v16 }
  0xb9   : > { %1434 = vmatpush.bf16.msra.mxu2 %v3355_v50 }
  0xba   : > { %1448 = vmatpush.bf16.msra.mxu3 %v3547_v60  ;;  %v789_v60 = vperm.slane %v5415_v51, 1 }
  0xbb   : > { %1407 = vmatpush.bf16.msra.mxu0 %v3327_v18 }
  0xbc   : > { %1421 = vmatpush.bf16.msra.mxu1 %v3519_v28 }
  0xbd   : > { %1435 = vmatpush.bf16.msra.mxu2 %v3331_v0 }
  0xbe   : > { %1449 = vmatpush.bf16.msra.mxu3 %v3523_v8 }
  0xbf   : > { %1408 = vmatpush.bf16.msra.mxu0 %v3303_v30 }
  0xc0   : > { %1422 = vmatpush.bf16.msra.mxu1 %v3495_v35 }
  0xc1   : > { %1436 = vmatpush.bf16.msra.mxu2 %v3307_v12 }
  0xc2   : > { %1450 = vmatpush.bf16.msra.mxu3 %v3499_v20 }
  0xc3   : > { %1409 = vmatpush.bf16.msra.mxu0 %v3279_v38 }
  0xc4   : > { %1423 = vmatpush.bf16.msra.mxu1 %v3471_v41 }
  0xc5   : > { %1437 = vmatpush.bf16.msra.mxu2 %v3283_v24 }
  0xc6   : > { %1451 = vmatpush.bf16.msra.mxu3 %v3475_v32  ;;  %1410 = vmatmul.bf16.vlgmr.msra.gmra.mxu0 %v5399_v54  ;;  %v793_v32 = vperm.slane %v5415_v51, 5 }
  0xc7   : > { %1424 = vmatmul.bf16.vlgmr.msra.gmra.mxu1 %v5401_v57 }
  0xc8   : > { %1438 = vmatmul.bf16.vlgmr.msra.gmra.mxu2 %v5399_v54 }
  0xc9   : > { %1452 = vmatmul.bf16.vlgmr.msra.gmra.mxu3 %v5401_v57  ;;  %v788_v57 = vperm.slane %v5415_v51, 0 }
 0x103   : > { %v1299_v42 = vpop.f32.mrf.mxu0 }
 0x104   : > { %v1313_v43 = vpop.f32.mrf.mxu1  ;;  %v1300_v1 = vadd.f32 %v1299_v42, %v788_v57 }
 0x106   : > { %v1314_v12 = vadd.f32 %v1313_v43, %v1300_v1 }
 0x10b   : > { %v1327_v44 = vpop.f32.mrf.mxu2  ;;  %v1301_v46 = vpop.f32.mrf.mxu0 }
 0x10c   : > { %v1341_v45 = vpop.f32.mrf.mxu3  ;;  %v1315_v47 = vpop.f32.mrf.mxu1  ;;  %v1328_v2 = vadd.f32 %v1327_v44, %v789_v60  ;;  %v1302_v3 = vadd.f32 %v1301_v46, %v788_v57 }
 0x10e   : > { %v1342_v13 = vadd.f32 %v1341_v45, %v1328_v2  ;;  %v1316_v14 = vadd.f32 %v1315_v47, %v1302_v3 }
 0x110   : > { %v1458_v21 = vpack.c.bf16 %v1342_v13, %v1314_v12 }
 0x112   : > { %v1468_v25 = vunpack.c.l.b16 %v1458_v21  ;;  %v1559_v26 = vunpack.c.h.b16 %v1458_v21 }
 0x113   : > { %v1329_v48 = vpop.f32.mrf.mxu2 }
 0x114   : > { %v1343_v49 = vpop.f32.mrf.mxu3  ;;  %v1330_v4 = vadd.f32 %v1329_v48, %v789_v60 }
 0x116   : > { %v1344_v15 = vadd.f32 %v1343_v49, %v1330_v4 }
 0x118   : > { %v1461_v22 = vpack.c.bf16 %v1344_v15, %v1316_v14 }
 0x11a   : > { %v1469_v27 = vunpack.c.l.b16 %v1461_v22  ;;  %v1560_v28 = vunpack.c.h.b16 %v1461_v22 }
 0x11c   : > { %v1470_v29 = vpack.c.b16 %v1469_v27, %v1468_v25  ;;  %v1561_v30 = vpack.c.b16 %v1560_v28, %v1559_v26 }
 0x123   : > { %v1355_v50 = vpop.f32.mrf.mxu0 }
 0x124   : > { %v1369_v55 = vpop.f32.mrf.mxu1  ;;  %v1356_v58 = vadd.f32 %v1355_v50, %v790_v52 }
 0x126   : > { %v1370_v62 = vadd.f32 %v1369_v55, %v1356_v58  ;;  %v1464_v58 = vld [vmem:[#allocation5] sm:$0xff] }
 0x12b   : > { %v1383_v56 = vpop.f32.mrf.mxu2  ;;  %v1357_v61 = vpop.f32.mrf.mxu0 }
 0x12c   : > { %v1397_v54 = vpop.f32.mrf.mxu3  ;;  %v1384_v59 = vadd.f32 %v1383_v56, %v791_v53  ;;  %v1358_v0 = vadd.f32 %v1357_v61, %v790_v52  ;;  %v1371_v7 = vpop.f32.mrf.mxu1  ;;  %v1557_v61 = vld [vmem:[#allocation5 + $0x10] sm:$0xff] }
 0x12e   : > { %v1398_v63 = vadd.f32 %v1397_v54, %v1384_v59  ;;  %v1372_v10 = vadd.f32 %v1371_v7, %v1358_v0 }
 0x130   : > { %v1459_v9 = vpack.c.bf16 %v1398_v63, %v1370_v62  ;;  %v1465_v63 = vld [vmem:[#allocation5 + $0x8] sm:$0xff] }
 0x132   : > { %v1474_v17 = vunpack.c.l.b16 %v1459_v9  ;;  %v1563_v18 = vunpack.c.h.b16 %v1459_v9 }
 0x133   : > { %v1385_v5 = vpop.f32.mrf.mxu2 }
 0x134   : > { %v1386_v6 = vadd.f32 %v1385_v5, %v791_v53  ;;  %v1399_v8 = vpop.f32.mrf.mxu3  ;;  %v1558_v5 = vld [vmem:[#allocation5 + $0x18] sm:$0xff] }
 0x136   : > { %v1400_v11 = vadd.f32 %v1399_v8, %v1386_v6 }
 0x138   : > { %v1462_v16 = vpack.c.bf16 %v1400_v11, %v1372_v10 }
 0x13a   : > { %v1475_v19 = vunpack.c.l.b16 %v1462_v16  ;;  %v1564_v20 = vunpack.c.h.b16 %v1462_v16 }
 0x13c   : > { %v1476_v23 = vpack.c.b16 %v1475_v19, %v1474_v17  ;;  %v1565_v24 = vpack.c.b16 %v1564_v20, %v1563_v18 }
 0x13e   : > { %1485 = vmatpush.bf16.xpose.msrb.mxu0 %v1476_v23  ;;  %1574 = vmatpush.bf16.xpose.msrb.mxu2 %v1565_v24 }
 0x143   : > { %v1411_v33 = vpop.f32.mrf.mxu0 }
 0x144   : > { %v1412_v35 = vadd.f32 %v1411_v33, %v792_v31  ;;  %v1425_v37 = vpop.f32.mrf.mxu1  ;;  %v3770_v33 = vld [vmem:[#allocation10 + $0x78] sm:$0xf0] }
 0x145   : > { %1486 = vmatmul.bf16.vlgmr.msrb.gmra.mxu0 %v1470_v29  ;;  %1575 = vmatmul.bf16.vlgmr.msrb.gmra.mxu2 %v1561_v30  ;;  %v3768_v29 = vld [vmem:[#allocation10 + $0x70] sm:$0xf]  ;;  %v4405_v30 = vld [vmem:[#allocation10 + $0x74] sm:$0xf0] }
 0x146   : > { %v1426_v39 = vadd.f32 %v1425_v37, %v1412_v35  ;;  %v4403_v35 = vld [vmem:[#allocation10 + $0x64] sm:$0xf0]  ;;  %v4402_v37 = vld [vmem:[#allocation10 + $0x64] sm:$0xf] }
 0x14b   : > { %v1439_v34 = vpop.f32.mrf.mxu2  ;;  %v1413_v41 = vpop.f32.mrf.mxu0 }
 0x14c   : > { %v1440_v36 = vadd.f32 %v1439_v34, %v793_v32  ;;  %v1453_v38 = vpop.f32.mrf.mxu3  ;;  %v1414_v42 = vadd.f32 %v1413_v41, %v792_v31  ;;  %v1427_v46 = vpop.f32.mrf.mxu1  ;;  %v4404_v31 = vld [vmem:[#allocation10 + $0x74] sm:$0xf]  ;;  %v3760_v34 = vld [vmem:[#allocation10 + $0x60] sm:$0xf]  ;;  %v4401_v41 = vld [vmem:[#allocation10 + $0x54] sm:$0xf0] }
 0x14e   : > { %v1454_v40 = vadd.f32 %v1453_v38, %v1440_v36  ;;  %v1428_v48 = vadd.f32 %v1427_v46, %v1414_v42  ;;  %v3773_v36 = vor.u32 %v4404_v31, %v3770_v33  ;;  %v3762_v38 = vld [vmem:[#allocation10 + $0x68] sm:$0xf0]  ;;  %v4400_v46 = vld [vmem:[#allocation10 + $0x54] sm:$0xf] }
 0x14f   : > { %v3765_v42 = vor.u32 %v4402_v37, %v3762_v38  ;;  %v3730_v33 = vld [vmem:[#allocation10 + $0x28] sm:$0xf0] }
 0x150   : > { %v1460_v44 = vpack.c.bf16 %v1454_v40, %v1426_v39  ;;  %v3761_v39 = vor.u32 %v4403_v35, %v3760_v34  ;;  %v3752_v40 = vld [vmem:[#allocation10 + $0x50] sm:$0xf]  ;;  %v3680_v34 = vld [vmem:[#allocation10 + $0xc0] sm:$0xf] }
 0x152   : > { %v1518_v50 = vunpack.c.l.b16 %v1460_v44  ;;  %v1604_v52 = vunpack.c.h.b16 %v1460_v44  ;;  %v4421_v44 = vld [vmem:[#allocation10 + $0xf4] sm:$0xf0] }
 0x153   : > { %v1441_v43 = vpop.f32.mrf.mxu2 }
 0x154   : > { %v1442_v45 = vadd.f32 %v1441_v43, %v793_v32  ;;  %v1455_v47 = vpop.f32.mrf.mxu3  ;;  %v3769_v32 = vor.u32 %v4405_v30, %v3768_v29  ;;  %v3704_v43 = vld [vmem:[#allocation10 + $0xf0] sm:$0xf]  ;;  %v3690_v29 = vld [vmem:[#allocation10 + $0xd8] sm:$0xf0]  ;;  %v4395_v30 = vld [vmem:[#allocation10 + $0x24] sm:$0xf0] }
 0x156   : > { %v1456_v49 = vadd.f32 %v1455_v47, %v1442_v45  ;;  %1831 = vmatpush.bf16.msra.mxu2 %v3769_v32  ;;  %v4420_v45 = vld [vmem:[#allocation10 + $0xf4] sm:$0xf]  ;;  %v3754_v47 = vld [vmem:[#allocation10 + $0x58] sm:$0xf0]  ;;  %v4394_v32 = vld [vmem:[#allocation10 + $0x24] sm:$0xf] }
 0x157   : > { %v3733_v35 = vor.u32 %v4394_v32, %v3730_v33 }
 0x158   : > { %v1463_v51 = vpack.c.bf16 %v1456_v49, %v1428_v48  ;;  %v3705_v48 = vor.u32 %v4421_v44, %v3704_v43  ;;  %v3706_v49 = vld [vmem:[#allocation10 + $0xf8] sm:$0xf0] }
 0x159   : > { %v3722_v43 = vld [vmem:[#allocation10 + $0x18] sm:$0xf0] }
 0x15a   : > { %v1519_v53 = vunpack.c.l.b16 %v1463_v51  ;;  %v1605_v55 = vunpack.c.h.b16 %v1463_v51  ;;  %v3696_v51 = vld [vmem:[#allocation10 + $0xe0] sm:$0xf]  ;;  %1832 = vmatpush.bf16.msra.mxu2 %v3761_v39  ;;  %1723 = vmatpush.bf16.msra.mxu0 %v3705_v48  ;;  %v3720_v39 = vld [vmem:[#allocation10 + $0x10] sm:$0xf] }
 0x15c   : > { %v1520_v56 = vpack.c.b16 %v1519_v53, %v1518_v50  ;;  %v1606_v54 = vpack.c.b16 %v1605_v55, %v1604_v52  ;;  %v3709_v52 = vor.u32 %v4420_v45, %v3706_v49  ;;  %v3753_v53 = vor.u32 %v4401_v41, %v3752_v40  ;;  %v4419_v55 = vld [vmem:[#allocation10 + $0xe4] sm:$0xf0]  ;;  %v4393_v40 = vld [vmem:[#allocation10 + $0x14] sm:$0xf0]  ;;  %v4392_v41 = vld [vmem:[#allocation10 + $0x14] sm:$0xf] }
 0x15d   : > { %v3725_v44 = vor.u32 %v4392_v41, %v3722_v43  ;;  %v3672_v45 = vld [vmem:[#allocation10 + $0xb0] sm:$0xf]  ;;  %v3674_v49 = vld [vmem:[#allocation10 + $0xb8] sm:$0xf0] }
 0x15e   : > { %1532 = vmatpush.bf16.msrb.mxu1 %v1520_v56  ;;  %1618 = vmatpush.bf16.msrb.mxu3 %v1606_v54  ;;  %v4418_v56 = vld [vmem:[#allocation10 + $0xe4] sm:$0xf]  ;;  %v3698_v54 = vld [vmem:[#allocation10 + $0xe8] sm:$0xf0] }
 0x15f   : > { %1833 = vmatpush.bf16.msra.mxu2 %v3753_v53 }
 0x162   : > { %1845 = vmatpush.bf16.msra.mxu3 %v3773_v36  ;;  %1737 = vmatpush.bf16.msra.mxu1 %v3709_v52  ;;  %v4414_v36 = vld [vmem:[#allocation10 + $0xc4] sm:$0xf]  ;;  %v4391_v52 = vld [vmem:[#allocation10 + $0x4] sm:$0xf0] }
 0x166   : > { %1846 = vmatpush.bf16.msra.mxu3 %v3765_v42  ;;  %v3721_v42 = vor.u32 %v4393_v40, %v3720_v39 }
 0x1c2   : > { %v1487_v59 = vpop.f32.mrf.mxu0 }
 0x1c3   : > { %v1488_v57 = vadd.f32 %v1487_v59, %v1464_v58  ;;  %v3757_v58 = vor.u32 %v4400_v46, %v3754_v47  ;;  %v3744_v59 = vld [vmem:[#allocation10 + $0x40] sm:$0xf]  ;;  %v4413_v46 = vld [vmem:[#allocation10 + $0xb4] sm:$0xf0]  ;;  %v4412_v47 = vld [vmem:[#allocation10 + $0xb4] sm:$0xf] }
 0x1c4   : > { %v3673_v48 = vor.u32 %v4413_v46, %v3672_v45 }
 0x1c5   : > { %v1493_v60 = vsel %vm1492_vm0, %v1488_v57, -inf  ;;  %1847 = vmatpush.bf16.msra.mxu3 %v3757_v58  ;;  %v3664_v58 = vld [vmem:[#allocation10 + $0xa0] sm:$0xf] }
 0x1c6   : > { %1494 = vmax.xlane.f32.xlu0 %v1493_v60  ;;  %v3697_v60 = vor.u32 %v4419_v55, %v3696_v51  ;;  %v3677_v51 = vor.u32 %v4412_v47, %v3674_v49  ;;  %v4390_v55 = vld [vmem:[#allocation10 + $0x4] sm:$0xf] }
 0x1c8   : > { %v1576_v62 = vpop.f32.mrf.mxu2  ;;  %1724 = vmatpush.bf16.msra.mxu0 %v3697_v60 }
 0x1c9   : > { %v1577_v0 = vadd.f32 %v1576_v62, %v1557_v61  ;;  %v3701_v61 = vor.u32 %v4418_v56, %v3698_v54  ;;  %v4398_v62 = vld [vmem:[#allocation10 + $0x44] sm:$0xf]  ;;  %v3714_v56 = vld [vmem:[#allocation10 + $0x8] sm:$0xf0] }
 0x1ca   : > { %v1489_v1 = vpop.f32.mrf.mxu0  ;;  %v3717_v54 = vor.u32 %v4390_v55, %v3714_v56  ;;  %v4016_v55 = vld [vmem:[#allocation14 + $0x1e0] sm:$0xf] }
 0x1cb   : > { %v1490_v2 = vadd.f32 %v1489_v1, %v1465_v63  ;;  %v1581_v3 = vsel %vm1492_vm0, %v1577_v0, -inf  ;;  %v3746_v63 = vld [vmem:[#allocation10 + $0x48] sm:$0xf0]  ;;  %1738 = vmatpush.bf16.msra.mxu1 %v3701_v61 }
 0x1cc   : > { %1582 = vmax.xlane.f32.xlu1 %v1581_v3  ;;  %v3749_v1 = vor.u32 %v4398_v62, %v3746_v63  ;;  %v4397_v3 = vld [vmem:[#allocation10 + $0x34] sm:$0xf0]  ;;  %v3666_v61 = vld [vmem:[#allocation10 + $0xa8] sm:$0xf0]  ;;  %v3656_v63 = vld [vmem:[#allocation10 + $0x90] sm:$0xf] }
 0x1cd   : > { %v1496_v4 = vsel %vm1492_vm0, %v1490_v2, -inf }
 0x1ce   : > { %1497 = vmax.xlane.f32.xlu0 %v1496_v4  ;;  %v4396_v4 = vld [vmem:[#allocation10 + $0x34] sm:$0xf]  ;;  %1848 = vmatpush.bf16.msra.mxu3 %v3749_v1 }
 0x1cf   : > { %v4408_v1 = vld [vmem:[#allocation10 + $0x94] sm:$0xf] }
 0x1d0   : > { %v1578_v6 = vpop.f32.mrf.mxu2 }
 0x1d1   : > { %v1579_v7 = vadd.f32 %v1578_v6, %v1558_v5  ;;  %v3738_v5 = vld [vmem:[#allocation10 + $0x38] sm:$0xf0] }
 0x1d3   : > { %v1584_v8 = vsel %vm1492_vm0, %v1579_v7, -inf }
 0x1d4   : > { %1585 = vmax.xlane.f32.xlu1 %v1584_v8 }
 0x239   : > { %v1495_v9 = vpop.xlane.xlu0 %1494 }
 0x23a   : > { %v1499_v10 = vsub.f32 %v1488_v57, %v1495_v9  ;;  %v4399_v57 = vld [vmem:[#allocation10 + $0x44] sm:$0xf0]  ;;  %v3741_v9 = vor.u32 %v4396_v4, %v3738_v5  ;;  %v3648_v5 = vld [vmem:[#allocation10 + $0x80] sm:$0xf] }
 0x23c   : > { %v1501_v11 = vmul.f32 1.442695, %v1499_v10  ;;  %1849 = vmatpush.bf16.msra.mxu3 %v3741_v9  ;;  %v3650_v9 = vld [vmem:[#allocation10 + $0x88] sm:$0xf0] }
 0x23e   : > { %4697 = vpow2.f32 %v1501_v11 }
 0x23f   : > { %v1583_v12 = vpop.xlane.xlu1 %1582 }
 0x240   : > { %v1587_v13 = vsub.f32 %v1577_v0, %v1583_v12  ;;  %v3745_v0 = vor.u32 %v4399_v57, %v3744_v59  ;;  %1850 = vmatpush.bf16.msra.mxu3 %v3733_v35  ;;  %v4411_v59 = vld [vmem:[#allocation10 + $0xa4] sm:$0xf0]  ;;  %v4410_v57 = vld [vmem:[#allocation10 + $0xa4] sm:$0xf] }
 0x241   : > { %v1498_v14 = vpop.xlane.xlu0 %1497  ;;  %v3665_v60 = vor.u32 %v4411_v59, %v3664_v58  ;;  %v3669_v62 = vor.u32 %v4410_v57, %v3666_v61  ;;  %v685_v35 = vld [vmem:[%s5369_s3 + $0x8] sm:$0xff] }
 0x242   : > { %v1589_v15 = vmul.f32 1.442695, %v1587_v13  ;;  %v1500_v16 = vsub.f32 %v1490_v2, %v1498_v14  ;;  %v3736_v2 = vld [vmem:[#allocation10 + $0x30] sm:$0xf]  ;;  %1834 = vmatpush.bf16.msra.mxu2 %v3745_v0  ;;  %v4409_v0 = vld [vmem:[#allocation10 + $0x94] sm:$0xf0]  ;;  %v688_v41 = vunpack.c.l.bf16 %v685_v35 }
 0x243   : > { %v4450_v58 = vld [vmem:[#allocation14 + $0xe4] sm:$0xf]  ;;  %v3890_v59 = vld [vmem:[#allocation14 + $0xf0] sm:$0xf0] }
 0x244   : > { %v5427_v17 = vpop.eup %4697  ;;  %4699 = vpow2.f32 %v1589_v15  ;;  %v1503_v18 = vmul.f32 1.442695, %v1500_v16  ;;  %1851 = vmatpush.bf16.msra.mxu3 %v3725_v44  ;;  %v4482_v61 = vld [vmem:[#allocation14 + $0x1e4] sm:$0xf] }
 0x245   : > { %v1505_v19 = vsel %vm1492_vm0, %v5427_v17, 0.0 }
 0x246   : > { %4701 = vpow2.f32 %v1503_v18  ;;  %1506 = vadd.xlane.f32.xlu2 %v1505_v19 }
 0x247   : > { %v1586_v20 = vpop.xlane.xlu1 %1585 }
 0x248   : > { %v1588_v21 = vsub.f32 %v1579_v7, %v1586_v20  ;;  %v3737_v7 = vor.u32 %v4397_v3, %v3736_v2  ;;  %1852 = vmatpush.bf16.msra.mxu3 %v3717_v54  ;;  %v3657_v2 = vor.u32 %v4409_v0, %v3656_v63  ;;  %v3658_v3 = vld [vmem:[#allocation10 + $0x98] sm:$0xf0]  ;;  %v4484_v54 = vld [vmem:[#allocation14 + $0x1ec] sm:$0xf0]  ;;  %v3872_v63 = vld [vmem:[#allocation14 + $0xc0] sm:$0xf] }
 0x249   : > { %v3661_v4 = vor.u32 %v4408_v1, %v3658_v3  ;;  %v4017_v57 = vor.u32 %v4484_v54, %v4016_v55  ;;  %v4448_v1 = vld [vmem:[#allocation14 + $0xcc] sm:$0xf0] }
 0x24a   : > { %v5431_v22 = vpop.eup %4699  ;;  %v1591_v23 = vmul.f32 1.442695, %v1588_v21  ;;  %1835 = vmatpush.bf16.msra.mxu2 %v3737_v7  ;;  %v4406_v7 = vld [vmem:[#allocation10 + $0x84] sm:$0xf]  ;;  %v4480_v3 = vld [vmem:[#allocation14 + $0x1cc] sm:$0xf0] }
 0x24b   : > { %v1593_v24 = vsel %vm1492_vm0, %v5431_v22, 0.0  ;;  %v4436_v55 = vld [vmem:[#allocation14 + $0x6c] sm:$0xf0] }
 0x24c   : > { %v5435_v25 = vpop.eup %4701  ;;  %4703 = vpow2.f32 %v1591_v23  ;;  %1594 = vadd.xlane.f32.xlu0 %v1593_v24  ;;  %v3688_v23 = vld [vmem:[#allocation10 + $0xd0] sm:$0xf]  ;;  %v4417_v24 = vld [vmem:[#allocation10 + $0xd4] sm:$0xf0] }
 0x24d   : > { %v1508_v26 = vsel %vm1492_vm0, %v5435_v25, 0.0 }
 0x24e   : > { %1509 = vadd.xlane.f32.xlu2 %v1508_v26  ;;  %v4416_v26 = vld [vmem:[#allocation10 + $0xd4] sm:$0xf] }
 0x252   : > { %v5439_v27 = vpop.eup %4703 }
 0x253   : > { %v1596_v28 = vsel %vm1492_vm0, %v5439_v27, 0.0 }
 0x254   : > { %1597 = vadd.xlane.f32.xlu1 %v1596_v28  ;;  %v3689_v28 = vor.u32 %v4417_v24, %v3688_v23 }
 0x256   : > { %1725 = vmatpush.bf16.msra.mxu0 %v3689_v28 }
 0x2b9   : > { %v1507_v50 = vpop.xlane.xlu2 %1506 }
 0x2ba   : > { %4705 = vrcp.f32 %v1507_v50  ;;  %v3712_v50 = vld [vmem:[#allocation10] sm:$0xf] }
 0x2bb   : > { %v3713_v53 = vor.u32 %v4391_v52, %v3712_v50 }
 0x2bf   : > { %v1595_v8 = vpop.xlane.xlu0 %1594 }
 0x2c0   : > { %v4706_v10 = vpop.eup %4705 }
 0x2c1   : > { %v1510_v6 = vpop.xlane.xlu2 %1509  ;;  %v1513_v13 = vmul.f32 %v4706_v10, %v5427_v17  ;;  %v3728_v17 = vld [vmem:[#allocation10 + $0x20] sm:$0xf]  ;;  %v3653_v10 = vor.u32 %v4406_v7, %v3650_v9  ;;  %v3874_v7 = vld [vmem:[#allocation14 + $0xd0] sm:$0xf0] }
 0x2c2   : > { %4707 = vrcp.f32 %v1510_v6  ;;  %v3729_v31 = vor.u32 %v4395_v30, %v3728_v17  ;;  %v4407_v6 = vld [vmem:[#allocation10 + $0x84] sm:$0xf0] }
 0x2c3   : > { %4709 = vrcp.f32 %v1595_v8  ;;  %v3649_v8 = vor.u32 %v4407_v6, %v3648_v5  ;;  %v4446_v6 = vld [vmem:[#allocation14 + $0xc4] sm:$0xf] }
 0x2c4   : > { %1836 = vmatpush.bf16.msra.mxu2 %v3729_v31 }
 0x2c7   : > { %v1598_v11 = vpop.xlane.xlu1 %1597 }
 0x2c8   : > { %v4708_v12 = vpop.eup %4707  ;;  %4711 = vrcp.f32 %v1598_v11  ;;  %1837 = vmatpush.bf16.msra.mxu2 %v3721_v42  ;;  %v689_v42 = vunpack.c.h.bf16 %v685_v35  ;;  %v4476_v35 = vld [vmem:[#allocation14 + $0x1ac] sm:$0xf0] }
 0x2c9   : > { %v1514_v14 = vmul.f32 %v4708_v12, %v5435_v25  ;;  %v4710_v16 = vpop.eup %4709  ;;  %v3693_v25 = vor.u32 %v4416_v26, %v3690_v29 }
 0x2ca   : > { %v1601_v19 = vmul.f32 %v4710_v16, %v5431_v22  ;;  %v4415_v22 = vld [vmem:[#allocation10 + $0xc4] sm:$0xf0] }
 0x2cb   : > { %v1515_v15 = vpack.c.bf16 %v1514_v14, %v1513_v13  ;;  %1739 = vmatpush.bf16.msra.mxu1 %v3693_v25  ;;  %v3681_v37 = vor.u32 %v4415_v22, %v3680_v34 }
 0x2cc   : > { %1838 = vmatpush.bf16.msra.mxu2 %v3713_v53  ;;  %v4452_v53 = vld [vmem:[#allocation14 + $0xec] sm:$0xf0] }
 0x2cd   : > { %3644 = vmatmul.msk.bf16.vlgmr.msrb.gmra.mxu1 %vm1492_vm0, %v1515_v15  ;;  %1726 = vmatpush.bf16.msra.mxu0 %v3681_v37 }
 0x2ce   : > { %v4712_v18 = vpop.eup %4711 }
 0x2cf   : > { %v1602_v20 = vmul.f32 %v4712_v18, %v5439_v27  ;;  %v3682_v27 = vld [vmem:[#allocation10 + $0xc8] sm:$0xf0]  ;;  %v1859_v18 = vld [vmem:[%s5568_s5] sm:$0x3] }
 0x2d0   : > { %v3685_v38 = vor.u32 %v4414_v36, %v3682_v27  ;;  %v1861_v23 = vperm.slane %v1859_v18, 0  ;;  %v1862_v24 = vperm.slane %v1859_v18, 1 }
 0x2d1   : > { %v1603_v21 = vpack.c.bf16 %v1602_v20, %v1601_v19  ;;  %1727 = vmatpush.bf16.msra.mxu0 %v3673_v48  ;;  %v5126_v48 = vmov 256.0  }
 0x2d2   : > { %1740 = vmatpush.bf16.msra.mxu1 %v3685_v38  ;;  %4713 = vrcp.f32 %v5126_v48 }
 0x2d3   : > { %3645 = vmatmul.msk.bf16.vlgmr.msrb.gmra.mxu3 %vm1492_vm0, %v1603_v21  ;;  %v684_v21 = vld [vmem:[%s5369_s3] sm:$0xff] }
 0x2d4   : > { %v686_v30 = vunpack.c.l.bf16 %v684_v21  ;;  %v687_v25 = vunpack.c.h.bf16 %v684_v21 }
 0x2d5   : > { %1728 = vmatpush.bf16.msra.mxu0 %v3665_v60  ;;  %v3893_v60 = vor.u32 %v4450_v58, %v3890_v59  ;;  %v4468_v58 = vld [vmem:[#allocation14 + $0x16c] sm:$0xf0]  ;;  %v4434_v59 = vld [vmem:[#allocation14 + $0x64] sm:$0xf] }
 0x2d6   : > { %1741 = vmatpush.bf16.msra.mxu1 %v3677_v51  ;;  %v3888_v51 = vld [vmem:[#allocation14 + $0xe0] sm:$0xf] }
 0x2d7   : > { %v3889_v56 = vor.u32 %v4452_v53, %v3888_v51  ;;  %2374 = vmatpush.bf16.msrb.mxu2 %v3893_v60  ;;  %v3824_v53 = vld [vmem:[#allocation14 + $0x60] sm:$0xf] }
 0x2d8   : > { %v4714_v49 = vpop.eup %4713  ;;  %v3825_v54 = vor.u32 %v4436_v55, %v3824_v53  ;;  %v3880_v53 = vld [vmem:[#allocation14 + $0xc8] sm:$0xf]  ;;  %v4449_v55 = vld [vmem:[#allocation14 + $0xd4] sm:$0xf0] }
 0x2d9   : > { %1729 = vmatpush.bf16.msra.mxu0 %v3657_v2  ;;  %v1882_v50 = vmul.f32 256.0, %v4714_v49  ;;  %v4000_v2 = vld [vmem:[#allocation14 + $0x1c0] sm:$0xf]  ;;  %vm1886_vm1 = vweird.f32 %v4714_v49 }
 0x2da   : > { %1742 = vmatpush.bf16.msra.mxu1 %v3669_v62  ;;  %v4018_v62 = vld [vmem:[#allocation14 + $0x1f0] sm:$0xf0]  ;;  %v4001_v5 = vor.u32 %v4480_v3, %v4000_v2  ;;  %v4432_v2 = vld [vmem:[#allocation14 + $0x4c] sm:$0xf0]  ;;  %v3936_v3 = vld [vmem:[#allocation14 + $0x140] sm:$0xf] }
 0x2db   : > { %v1883_v52 = vsub.f32 1.0, %v1882_v50  ;;  %v4021_v0 = vor.u32 %v4482_v61, %v4018_v62  ;;  %v4470_v50 = vld [vmem:[#allocation14 + $0x184] sm:$0xf] }
 0x2dc   : > { %v4466_v62 = vld [vmem:[#allocation14 + $0x164] sm:$0xf] }
 0x2dd   : > { %1730 = vmatpush.bf16.msra.mxu0 %v3649_v8  ;;  %v4478_v8 = vld [vmem:[#allocation14 + $0x1c4] sm:$0xf]  ;;  %v1884_v9 = vmul.f32 %v4714_v49, %v1883_v52  ;;  %2388 = vmatpush.bf16.msrb.mxu3 %v4021_v0  ;;  %v3970_v52 = vld [vmem:[#allocation14 + $0x190] sm:$0xf0] }
 0x2de   : > { %1743 = vmatpush.bf16.msra.mxu1 %v3661_v4  ;;  %v3873_v4 = vor.u32 %v4448_v1, %v3872_v63  ;;  %v3973_v51 = vor.u32 %v4470_v50, %v3970_v52  ;;  %v3954_v63 = vld [vmem:[#allocation14 + $0x170] sm:$0xf0]  ;;  %v3808_v1 = vld [vmem:[#allocation14 + $0x40] sm:$0xf]  ;;  %v4483_v50 = vld [vmem:[#allocation14 + $0x1ec] sm:$0xf] }
 0x2df   : > { %v3957_v0 = vor.u32 %v4466_v62, %v3954_v63  ;;  %v4479_v62 = vld [vmem:[#allocation14 + $0x1cc] sm:$0xf]  ;;  %v4010_v63 = vld [vmem:[#allocation14 + $0x1d8] sm:$0xf0] }
 0x2e1   : > { %2346 = vmatpush.bf16.msrb.mxu0 %v3889_v56  ;;  %v3952_v56 = vld [vmem:[#allocation14 + $0x160] sm:$0xf] }
 0x2e2   : > { %1744 = vmatpush.bf16.msra.mxu1 %v3653_v10  ;;  %v3877_v10 = vor.u32 %v4446_v6, %v3874_v7  ;;  %v3953_v60 = vor.u32 %v4468_v58, %v3952_v56  ;;  %v4430_v6 = vld [vmem:[#allocation14 + $0x44] sm:$0xf]  ;;  %v3810_v7 = vld [vmem:[#allocation14 + $0x50] sm:$0xf0]  ;;  %v4008_v58 = vld [vmem:[#allocation14 + $0x1c8] sm:$0xf] }
 0x2e4   : > { %2375 = vmatpush.bf16.msrb.mxu2 %v3877_v10  ;;  %v4462_v10 = vld [vmem:[#allocation14 + $0x144] sm:$0xf] }
 0x2e5   : > { %2347 = vmatpush.bf16.msrb.mxu0 %v3873_v4  ;;  %v3809_v4 = vor.u32 %v4432_v2, %v3808_v1  ;;  %v4013_v1 = vor.u32 %v4479_v62, %v4010_v63  ;;  %v3864_v2 = vld [vmem:[#allocation14 + $0xa8] sm:$0xf]  ;;  %v4429_v63 = vld [vmem:[#allocation14 + $0x34] sm:$0xf0] }
 0x2e6   : > { %2360 = vmatpush.bf16.msrb.mxu1 %v4017_v57  ;;  %v3826_v57 = vld [vmem:[#allocation14 + $0x70] sm:$0xf0] }
 0x2e7   : > { %v3829_v61 = vor.u32 %v4434_v59, %v3826_v57  ;;  %v4481_v59 = vld [vmem:[#allocation14 + $0x1d4] sm:$0xf0]  ;;  %v4447_v57 = vld [vmem:[#allocation14 + $0xcc] sm:$0xf] }
 0x2ea   : > { %2361 = vmatpush.bf16.msrb.mxu1 %v4001_v5  ;;  %v4464_v5 = vld [vmem:[#allocation14 + $0x14c] sm:$0xf0] }
 0x34a   : > { %v1534_v11 = vpop.f32.mrf.mxu1 }
 0x352   : > { %v1536_v12 = vpop.f32.mrf.mxu1 }
 0x353   : > { %v1539_v13 = vpack.c.bf16 %v1536_v12, %v1534_v11  ;;  %v4002_v11 = vld [vmem:[#allocation14 + $0x1d0] sm:$0xf0] }
 0x354   : > { %v4005_v12 = vor.u32 %v4478_v8, %v4002_v11  ;;  %v3937_v8 = vor.u32 %v4464_v5, %v3936_v3  ;;  %v3938_v11 = vld [vmem:[#allocation14 + $0x150] sm:$0xf0]  ;;  %v4445_v3 = vld [vmem:[#allocation14 + $0xb4] sm:$0xf0] }
 0x355   : > { %1839 = vmatmul.bf16.vlgmr.msra.gmra.mxu2 %v1539_v13  ;;  %1853 = vmatmul.bf16.vlgmr.msra.gmra.mxu3 %v1539_v13  ;;  %v1885_v13 = vadd.f32 %v4714_v49, %v1884_v9  ;;  %v3813_v9 = vor.u32 %v4430_v6, %v3810_v7  ;;  %v3865_v5 = vor.u32 %v4445_v3, %v3864_v2  ;;  %v4477_v6 = vld [vmem:[#allocation14 + $0x1b4] sm:$0xf0]  ;;  %v4443_v7 = vld [vmem:[#allocation14 + $0xac] sm:$0xf] }
 0x356   : > { %v1620_v14 = vpop.f32.mrf.mxu3  ;;  %2389 = vmatpush.bf16.msrb.mxu3 %v4005_v12  ;;  %v3941_v12 = vor.u32 %v4462_v10, %v3938_v11  ;;  %v4427_v3 = vld [vmem:[#allocation14 + $0x2c] sm:$0xf] }
 0x35e   : > { %v1622_v15 = vpop.f32.mrf.mxu3 }
 0x35f   : > { %v1625_v16 = vpack.c.bf16 %v1622_v15, %v1620_v14  ;;  %v5454_v14 = vsel %vm1886_vm1, %v4714_v49, %v1885_v13  ;;  %v3792_v13 = vld [vmem:[#allocation14 + $0x20] sm:$0xf] }
 0x361   : > { %1731 = vmatmul.bf16.vlgmr.msra.gmra.mxu0 %v1625_v16  ;;  %1745 = vmatmul.bf16.vlgmr.msra.gmra.mxu1 %v1625_v16 }
 0x3d8   : > { %v1840_v19 = vpop.f32.mrf.mxu2  ;;  %v1854_v20 = vpop.f32.mrf.mxu3 }
 0x3de   : > { %v1732_v26 = vpop.f32.mrf.mxu0  ;;  %v1746_v28 = vpop.f32.mrf.mxu1 }
 0x3df   : > { %v1841_v29 = vadd.f32 %v1840_v19, %v1732_v26  ;;  %v1855_v17 = vadd.f32 %v1854_v20, %v1746_v28 }
 0x3e0   : > { %v1842_v22 = vpop.f32.mrf.mxu2  ;;  %v1856_v36 = vpop.f32.mrf.mxu3 }
 0x3e1   : > { %v1865_v31 = vadd.f32 %v1861_v23, %v1841_v29  ;;  %v1866_v32 = vadd.f32 %v1862_v24, %v1855_v17 }
 0x3e3   : > { %v1869_v33 = vadd.f32 %v1865_v31, %v686_v30  ;;  %v1870_v34 = vadd.f32 %v1866_v32, %v687_v25  ;;  %v3856_v31 = vld [vmem:[#allocation14 + $0xa0] sm:$0xf]  ;;  %v4444_v32 = vld [vmem:[#allocation14 + $0xac] sm:$0xf0] }
 0x3e5   : > { %v1875_v27 = vadd.f32 %v1870_v34, %v1869_v33 }
 0x3e6   : > { %v1734_v37 = vpop.f32.mrf.mxu0  ;;  %v1748_v38 = vpop.f32.mrf.mxu1 }
 0x3e7   : > { %v1843_v39 = vadd.f32 %v1842_v22, %v1734_v37  ;;  %v1857_v40 = vadd.f32 %v1856_v36, %v1748_v38  ;;  %1876 = vadd.xlane.f32.xlu2 %v1875_v27  ;;  %v4442_v22 = vld [vmem:[#allocation14 + $0xa4] sm:$0xf]  ;;  %v3858_v36 = vld [vmem:[#allocation14 + $0xb0] sm:$0xf0] }
 0x3e8   : > { %v3861_v37 = vor.u32 %v4442_v22, %v3858_v36  ;;  %v4474_v38 = vld [vmem:[#allocation14 + $0x1a4] sm:$0xf]  ;;  %v4456_v22 = vld [vmem:[#allocation14 + $0x10c] sm:$0xf0] }
 0x3e9   : > { %v1867_v43 = vadd.f32 %v1861_v23, %v1843_v39  ;;  %v1868_v44 = vadd.f32 %v1862_v24, %v1857_v40  ;;  %v3986_v39 = vld [vmem:[#allocation14 + $0x1b0] sm:$0xf0]  ;;  %v4422_v36 = vld [vmem:[#allocation14 + $0x4] sm:$0xf] }
 0x3ea   : > { %v3989_v40 = vor.u32 %v4474_v38, %v3986_v39  ;;  %2376 = vmatpush.bf16.msrb.mxu2 %v3861_v37  ;;  %v4454_v39 = vld [vmem:[#allocation14 + $0x104] sm:$0xf] }
 0x3eb   : > { %v1871_v45 = vadd.f32 %v1867_v43, %v688_v41  ;;  %v1872_v46 = vadd.f32 %v1868_v44, %v689_v42  ;;  %v3840_v41 = vld [vmem:[#allocation14 + $0x80] sm:$0xf]  ;;  %v4440_v42 = vld [vmem:[#allocation14 + $0x8c] sm:$0xf0] }
 0x3ec   : > { %v3968_v43 = vld [vmem:[#allocation14 + $0x180] sm:$0xf]  ;;  %2390 = vmatpush.bf16.msrb.mxu3 %v3989_v40  ;;  %v3841_v44 = vor.u32 %v4440_v42, %v3840_v41  ;;  %v3906_v40 = vld [vmem:[#allocation14 + $0x110] sm:$0xf0]  ;;  %v3896_v41 = vld [vmem:[#allocation14 + $0xe8] sm:$0xf] }
 0x3ed   : > { %v1878_v47 = vadd.f32 %v1872_v46, %v1871_v45  ;;  %v3909_v42 = vor.u32 %v4454_v39, %v3906_v40  ;;  %v4435_v39 = vld [vmem:[#allocation14 + $0x6c] sm:$0xf]  ;;  %v3834_v40 = vld [vmem:[#allocation14 + $0x78] sm:$0xf0] }
 0x3ef   : > { %1879 = vadd.xlane.f32.xlu0 %v1878_v47  ;;  %v3842_v47 = vld [vmem:[#allocation14 + $0x90] sm:$0xf0] }
 0x3f0   : > { %2391 = vmatpush.bf16.msrb.mxu3 %v3973_v51  ;;  %v4026_v51 = vld [vmem:[#allocation14 + $0x1f8] sm:$0xf0] }
 0x3f1   : > { %v4029_v56 = vor.u32 %v4483_v50, %v4026_v51  ;;  %v3944_v50 = vld [vmem:[#allocation14 + $0x148] sm:$0xf]  ;;  %v4431_v51 = vld [vmem:[#allocation14 + $0x4c] sm:$0xf] }
 0x3f4   : > { %2392 = vmatpush.bf16.msrb.mxu3 %v3957_v0 }
 0x3f8   : > { %2393 = vmatpush.bf16.msrb.mxu3 %v3941_v12  ;;  %v4475_v12 = vld [vmem:[#allocation14 + $0x1ac] sm:$0xf] }
 0x45a   : > { %v1877_v15 = vpop.xlane.xlu2 %1876 }
 0x45b   : > { %v1888_v16 = vmul.f32 %v5454_v14, %v1877_v15  ;;  %v4428_v15 = vld [vmem:[#allocation14 + $0x2c] sm:$0xf0] }
 0x45d   : > { %v5457_v18 = vsub.f32 %v1869_v33, %v1888_v16  ;;  %v5459_v19 = vsub.f32 %v1870_v34, %v1888_v16  ;;  %v3984_v33 = vld [vmem:[#allocation14 + $0x1a0] sm:$0xf]  ;;  %v3857_v34 = vor.u32 %v4444_v32, %v3856_v31 }
 0x45e   : > { %v3985_v27 = vor.u32 %v4476_v35, %v3984_v33  ;;  %v3920_v16 = vld [vmem:[#allocation14 + $0x120] sm:$0xf]  ;;  %v4424_v33 = vld [vmem:[#allocation14 + $0xc] sm:$0xf0] }
 0x45f   : > { %v1894_v20 = vmul.f32 %v5457_v18, %v5457_v18  ;;  %v1895_v21 = vmul.f32 %v5459_v19, %v5459_v19  ;;  %2348 = vmatpush.bf16.msrb.mxu0 %v3857_v34  ;;  %v3776_v32 = vld [vmem:[#allocation14] sm:$0xf] }
 0x460   : > { %2362 = vmatpush.bf16.msrb.mxu1 %v3985_v27  ;;  %v3904_v34 = vld [vmem:[#allocation14 + $0x100] sm:$0xf]  ;;  %v3777_v35 = vor.u32 %v4424_v33, %v3776_v32  ;;  %v3778_v27 = vld [vmem:[#allocation14 + $0x10] sm:$0xf0]  ;;  %v3978_v33 = vld [vmem:[#allocation14 + $0x198] sm:$0xf0] }
 0x461   : > { %v1898_v23 = vadd.f32 %v1895_v21, %v1894_v20  ;;  %v3793_v20 = vor.u32 %v4428_v15, %v3792_v13  ;;  %v4460_v21 = vld [vmem:[#allocation14 + $0x12c] sm:$0xf0]  ;;  %v3905_v37 = vor.u32 %v4456_v22, %v3904_v34  ;;  %v3781_v38 = vor.u32 %v4422_v36, %v3778_v27  ;;  %v3994_v13 = vld [vmem:[#allocation14 + $0x1b8] sm:$0xf0]  ;;  %v3848_v15 = vld [vmem:[#allocation14 + $0x88] sm:$0xf] }
 0x462   : > { %v1880_v24 = vpop.xlane.xlu0 %1879  ;;  %v3832_v22 = vld [vmem:[#allocation14 + $0x68] sm:$0xf]  ;;  %v4437_v36 = vld [vmem:[#allocation14 + $0x74] sm:$0xf0] }
 0x463   : > { %v1889_v26 = vmul.f32 %v5454_v14, %v1880_v24  ;;  %1899 = vadd.xlane.f32.xlu1 %v1898_v23  ;;  %2349 = vmatpush.bf16.msrb.mxu0 %v3841_v44  ;;  %v4426_v23 = vld [vmem:[#allocation14 + $0x24] sm:$0xf]  ;;  %v3794_v24 = vld [vmem:[#allocation14 + $0x30] sm:$0xf0]  ;;  %v4024_v44 = vld [vmem:[#allocation14 + $0x1e8] sm:$0xf] }
 0x464   : > { %v3960_v27 = vld [vmem:[#allocation14 + $0x168] sm:$0xf] }
 0x465   : > { %v5466_v28 = vsub.f32 %v1871_v45, %v1889_v26  ;;  %v5468_v29 = vsub.f32 %v1872_v46, %v1889_v26  ;;  %v4472_v45 = vld [vmem:[#allocation14 + $0x18c] sm:$0xf0]  ;;  %v4438_v46 = vld [vmem:[#allocation14 + $0x84] sm:$0xf]  ;;  %v3921_v26 = vor.u32 %v4460_v21, %v3920_v16  ;;  %v4441_v21 = vld [vmem:[#allocation14 + $0x94] sm:$0xf0] }
 0x466   : > { %v3969_v48 = vor.u32 %v4472_v45, %v3968_v43  ;;  %v3845_v49 = vor.u32 %v4438_v46, %v3842_v47  ;;  %v4453_v43 = vld [vmem:[#allocation14 + $0xf4] sm:$0xf0] }
 0x467   : > { %v1896_v17 = vmul.f32 %v5466_v28, %v5466_v28  ;;  %v1897_v30 = vmul.f32 %v5468_v29, %v5468_v29  ;;  %2350 = vmatpush.bf16.msrb.mxu0 %v3825_v54  ;;  %v4485_v45 = vld [vmem:[#allocation14 + $0x1f4] sm:$0xf0]  ;;  %v3897_v46 = vor.u32 %v4453_v43, %v3896_v41  ;;  %v3881_v54 = vor.u32 %v4449_v55, %v3880_v53  ;;  %v3818_v53 = vld [vmem:[#allocation14 + $0x58] sm:$0xf0]  ;;  %v4463_v55 = vld [vmem:[#allocation14 + $0x14c] sm:$0xf] }
 0x468   : > { %2363 = vmatpush.bf16.msrb.mxu1 %v3969_v48  ;;  %2377 = vmatpush.bf16.msrb.mxu2 %v3845_v49  ;;  %v4025_v47 = vor.u32 %v4485_v45, %v4024_v44  ;;  %v4451_v48 = vld [vmem:[#allocation14 + $0xec] sm:$0xf]  ;;  %v3898_v49 = vld [vmem:[#allocation14 + $0xf8] sm:$0xf0]  ;;  %v3837_v43 = vor.u32 %v4435_v39, %v3834_v40  ;;  %v3821_v62 = vor.u32 %v4431_v51, %v3818_v53  ;;  %v4088_v53 = vld [vmem:[#allocation16 + $0x70] sm:$0xf] }
 0x469   : > { %v1901_v25 = vadd.f32 %v1897_v30, %v1896_v17  ;;  %v3797_v17 = vor.u32 %v4426_v23, %v3794_v24  ;;  %v4458_v30 = vld [vmem:[#allocation14 + $0x124] sm:$0xf]  ;;  %v3901_v52 = vor.u32 %v4451_v48, %v3898_v49  ;;  %v3976_v23 = vld [vmem:[#allocation14 + $0x188] sm:$0xf]  ;;  %v4473_v24 = vld [vmem:[#allocation14 + $0x194] sm:$0xf0] }
 0x46a   : > { %v3977_v32 = vor.u32 %v4473_v24, %v3976_v23  ;;  %v4467_v44 = vld [vmem:[#allocation14 + $0x16c] sm:$0xf]  ;;  %v3962_v45 = vld [vmem:[#allocation14 + $0x178] sm:$0xf0]  ;;  %v4433_v49 = vld [vmem:[#allocation14 + $0x54] sm:$0xf0] }
 0x46b   : > { %1902 = vadd.xlane.f32.xlu2 %v1901_v25  ;;  %2351 = vmatpush.bf16.msrb.mxu0 %v3809_v4  ;;  %v3922_v25 = vld [vmem:[#allocation14 + $0x130] sm:$0xf0]  ;;  %v3992_v4 = vld [vmem:[#allocation14 + $0x1a8] sm:$0xf]  ;;  %v3965_v48 = vor.u32 %v4467_v44, %v3962_v45  ;;  %v3786_v23 = vld [vmem:[#allocation14 + $0x18] sm:$0xf0] }
 0x46c   : > { %2364 = vmatpush.bf16.msrb.mxu1 %v3953_v60  ;;  %2378 = vmatpush.bf16.msrb.mxu2 %v3829_v61  ;;  %v3925_v31 = vor.u32 %v4458_v30, %v3922_v25  ;;  %v4009_v60 = vor.u32 %v4481_v59, %v4008_v58  ;;  %v3882_v61 = vld [vmem:[#allocation14 + $0xd8] sm:$0xf0]  ;;  %v3993_v10 = vor.u32 %v4477_v6, %v3992_v4  ;;  %v4471_v30 = vld [vmem:[#allocation14 + $0x18c] sm:$0xf] }
 0x46d   : > { %v3885_v0 = vor.u32 %v4447_v57, %v3882_v61  ;;  %v3946_v57 = vld [vmem:[#allocation14 + $0x158] sm:$0xf0]  ;;  %v4459_v6 = vld [vmem:[#allocation14 + $0x12c] sm:$0xf] }
 0x46e   : > { %2394 = vmatpush.bf16.msrb.mxu3 %v3925_v31  ;;  %v3849_v31 = vor.u32 %v4441_v21, %v3848_v15  ;;  %v3949_v2 = vor.u32 %v4463_v55, %v3946_v57  ;;  %v3802_v4 = vld [vmem:[#allocation14 + $0x38] sm:$0xf0]  ;;  %v3912_v15 = vld [vmem:[#allocation14 + $0x108] sm:$0xf]  ;;  %v4423_v21 = vld [vmem:[#allocation14 + $0xc] sm:$0xf] }
 0x46f   : > { %2352 = vmatpush.bf16.msrb.mxu0 %v3793_v20  ;;  %v3997_v20 = vor.u32 %v4475_v12, %v3994_v13  ;;  %v3805_v13 = vor.u32 %v4427_v3, %v3802_v4  ;;  %v4152_v55 = vld [vmem:[#allocation16 + $0xf0] sm:$0xf]  ;;  %v4144_v4 = vld [vmem:[#allocation16 + $0xe0] sm:$0xf] }
 0x470   : > { %2365 = vmatpush.bf16.msrb.mxu1 %v3937_v8  ;;  %2379 = vmatpush.bf16.msrb.mxu2 %v3813_v9  ;;  %v3866_v8 = vld [vmem:[#allocation14 + $0xb8] sm:$0xf0] }
 0x471   : > { %v3869_v11 = vor.u32 %v4443_v7, %v3866_v8  ;;  %v3930_v7 = vld [vmem:[#allocation14 + $0x138] sm:$0xf0] }
 0x472   : > { %2395 = vmatpush.bf16.msrb.mxu3 %v3909_v42 }
 0x473   : > { %2353 = vmatpush.bf16.msrb.mxu0 %v3777_v35  ;;  %v3981_v35 = vor.u32 %v4471_v30, %v3978_v33 }
 0x474   : > { %2366 = vmatpush.bf16.msrb.mxu1 %v3921_v26  ;;  %2380 = vmatpush.bf16.msrb.mxu2 %v3797_v17  ;;  %v4439_v26 = vld [vmem:[#allocation14 + $0x8c] sm:$0xf]  ;;  %v3850_v17 = vld [vmem:[#allocation14 + $0x98] sm:$0xf0] }
 0x475   : > { %v3853_v34 = vor.u32 %v4439_v26, %v3850_v17  ;;  %v4455_v26 = vld [vmem:[#allocation14 + $0x10c] sm:$0xf]  ;;  %v3914_v17 = vld [vmem:[#allocation14 + $0x118] sm:$0xf0] }
 0x476   : > { %2444 = vmatpush.bf16.msra.mxu3 %v4029_v56 }
 0x477   : > { %2402 = vmatpush.bf16.msra.mxu0 %v3897_v46  ;;  %v3816_v46 = vld [vmem:[#allocation14 + $0x48] sm:$0xf] }
 0x478   : > { %2367 = vmatpush.bf16.msrb.mxu1 %v3905_v37  ;;  %2381 = vmatpush.bf16.msrb.mxu2 %v3781_v38  ;;  %v3833_v37 = vor.u32 %v4437_v36, %v3832_v22  ;;  %v4469_v38 = vld [vmem:[#allocation14 + $0x174] sm:$0xf0]  ;;  %v3817_v58 = vor.u32 %v4433_v49, %v3816_v46  ;;  %v3917_v22 = vor.u32 %v4455_v26, %v3914_v17  ;;  %v4200_v26 = vld [vmem:[#allocation16 + $0x150] sm:$0xf] }
 0x479   : > { %v3961_v42 = vor.u32 %v4469_v38, %v3960_v27  ;;  %v1873_v38 = vld [vmem:[#allocation11] sm:$0x3]  ;;  %v4529_v17 = vld [vmem:[#allocation16 + $0x154] sm:$0xf0] }
 0x47a   : > { %2445 = vmatpush.bf16.msra.mxu3 %v4013_v1  ;;  %v4461_v1 = vld [vmem:[#allocation14 + $0x134] sm:$0xf0]  ;;  %v1934_v44 = vperm.slane %v1873_v38, 1 }
 0x47b   : > { %2403 = vmatpush.bf16.msra.mxu0 %v3881_v54 }
 0x47c   : > { %2416 = vmatpush.bf16.msra.mxu1 %v4025_v47  ;;  %2430 = vmatpush.bf16.msra.mxu2 %v3901_v52  ;;  %v4465_v52 = vld [vmem:[#allocation14 + $0x154] sm:$0xf0] }
 0x47d   : > { %v3945_v59 = vor.u32 %v4465_v52, %v3944_v50 }
 0x47e   : > { %2446 = vmatpush.bf16.msra.mxu3 %v3997_v20  ;;  %v3933_v20 = vor.u32 %v4459_v6, %v3930_v7  ;;  %v4208_v7 = vld [vmem:[#allocation16 + $0x160] sm:$0xf] }
 0x47f   : > { %2404 = vmatpush.bf16.msra.mxu0 %v3865_v5 }
 0x480   : > { %2417 = vmatpush.bf16.msra.mxu1 %v4009_v60  ;;  %2431 = vmatpush.bf16.msra.mxu2 %v3885_v0  ;;  %v3800_v60 = vld [vmem:[#allocation14 + $0x28] sm:$0xf] }
 0x481   : > { %v3928_v0 = vld [vmem:[#allocation14 + $0x128] sm:$0xf]  ;;  %v3801_v8 = vor.u32 %v4429_v63, %v3800_v60 }
 0x482   : > { %2447 = vmatpush.bf16.msra.mxu3 %v3981_v35  ;;  %v3789_v35 = vor.u32 %v4423_v21, %v3786_v23  ;;  %v4513_v21 = vld [vmem:[#allocation16 + $0xd4] sm:$0xf0] }
 0x483   : > { %2405 = vmatpush.bf16.msra.mxu0 %v3849_v31 }
 0x484   : > { %2418 = vmatpush.bf16.msra.mxu1 %v3993_v10  ;;  %2432 = vmatpush.bf16.msra.mxu2 %v3869_v11  ;;  %v3784_v10 = vld [vmem:[#allocation14 + $0x8] sm:$0xf]  ;;  %v4425_v11 = vld [vmem:[#allocation14 + $0x14] sm:$0xf0] }
 0x485   : > { %v3785_v31 = vor.u32 %v4425_v11, %v3784_v10  ;;  %v4272_v10 = vld [vmem:[#allocation16 + $0x1e0] sm:$0xf]  ;;  %v4547_v11 = vld [vmem:[#allocation16 + $0x1e4] sm:$0xf0] }
 0x486   : > { %2448 = vmatpush.bf16.msra.mxu3 %v3965_v48 }
 0x487   : > { %2406 = vmatpush.bf16.msra.mxu0 %v3833_v37 }
 0x488   : > { %2419 = vmatpush.bf16.msra.mxu1 %v3977_v32  ;;  %2433 = vmatpush.bf16.msra.mxu2 %v3853_v34 }
 0x48a   : > { %2449 = vmatpush.bf16.msra.mxu3 %v3949_v2  ;;  %v4499_v2 = vld [vmem:[#allocation16 + $0x64] sm:$0xf0] }
 0x48b   : > { %2407 = vmatpush.bf16.msra.mxu0 %v3817_v58  ;;  %v4216_v58 = vld [vmem:[#allocation16 + $0x170] sm:$0xf] }
 0x48c   : > { %2420 = vmatpush.bf16.msra.mxu1 %v3961_v42  ;;  %2434 = vmatpush.bf16.msra.mxu2 %v3837_v43  ;;  %v1874_v42 = vld [vmem:[#allocation13] sm:$0x3]  ;;  %v1933_v43 = vperm.slane %v1873_v38, 0  ;;  %v4493_v38 = vld [vmem:[#allocation16 + $0x34] sm:$0xf0] }
 0x48d   : > { %v1942_v46 = vperm.slane %v1874_v42, 0 }
 0x48e   : > { %2450 = vmatpush.bf16.msra.mxu3 %v3933_v20  ;;  %v4136_v20 = vld [vmem:[#allocation16 + $0xd0] sm:$0xf] }
 0x48f   : > { %2408 = vmatpush.bf16.msra.mxu0 %v3801_v8 }
 0x490   : > { %2421 = vmatpush.bf16.msra.mxu1 %v3945_v59  ;;  %2435 = vmatpush.bf16.msra.mxu2 %v3821_v62 }
 0x492   : > { %2451 = vmatpush.bf16.msra.mxu3 %v3917_v22  ;;  %v4201_v22 = vor.u32 %v4529_v17, %v4200_v26  ;;  %v4496_v26 = vld [vmem:[#allocation16 + $0x54] sm:$0xf]  ;;  %v4074_v17 = vld [vmem:[#allocation16 + $0x58] sm:$0xf0] }
 0x493   : > { %2409 = vmatpush.bf16.msra.mxu0 %v3785_v31  ;;  %v4064_v31 = vld [vmem:[#allocation16 + $0x40] sm:$0xf] }
 0x494   : > { %2436 = vmatpush.bf16.msra.mxu2 %v3805_v13  ;;  %v4072_v13 = vld [vmem:[#allocation16 + $0x50] sm:$0xf] }
 0x498   : > { %2437 = vmatpush.bf16.msra.mxu2 %v3789_v35  ;;  %v4511_v35 = vld [vmem:[#allocation16 + $0xc4] sm:$0xf0] }
 0x4d6   : > { %v1900_v9 = vpop.xlane.xlu1 %1899 }
 0x4d7   : > { %v1904_v16 = vmul.f32 %v1900_v9, %v5454_v14  ;;  %v3929_v9 = vor.u32 %v4461_v1, %v3928_v0  ;;  %v4080_v1 = vld [vmem:[#allocation16 + $0x60] sm:$0xf] }
 0x4d9   : > { %v5475_v25 = vadd.f32 1e-05, %v1904_v16  ;;  %v4457_v16 = vld [vmem:[#allocation14 + $0x114] sm:$0xf0]  ;;  %2422 = vmatpush.bf16.msra.mxu1 %v3929_v9  ;;  %v4531_v9 = vld [vmem:[#allocation16 + $0x164] sm:$0xf0] }
 0x4da   : > { %v3913_v32 = vor.u32 %v4457_v16, %v3912_v15  ;;  %v4497_v16 = vld [vmem:[#allocation16 + $0x54] sm:$0xf0]  ;;  %v4209_v23 = vor.u32 %v4531_v9, %v4208_v7  ;;  %v4503_v9 = vld [vmem:[#allocation16 + $0x84] sm:$0xf0] }
 0x4db   : > { %4715 = vrsqrt.f32 %v5475_v25  ;;  %vm1914_vm3 = vweird.f32 %v5475_v25 }
 0x4dd   : > { %2423 = vmatpush.bf16.msra.mxu1 %v3913_v32  ;;  %v4137_v32 = vor.u32 %v4513_v21, %v4136_v20  ;;  %v4176_v20 = vld [vmem:[#allocation16 + $0x120] sm:$0xf]  ;;  %v4523_v21 = vld [vmem:[#allocation16 + $0x124] sm:$0xf0] }
 0x4de   : > { %v1903_v41 = vpop.xlane.xlu2 %1902 }
 0x4df   : > { %v1905_v47 = vmul.f32 %v1903_v41, %v5454_v14 }
 0x4e1   : > { %v4716_v56 = vpop.eup %4715  ;;  %v5479_v54 = vadd.f32 1e-05, %v1905_v47  ;;  %v1943_v47 = vperm.slane %v1874_v42, 1  ;;  %v4048_v42 = vld [vmem:[#allocation16 + $0x20] sm:$0xf] }
 0x4e2   : > { %v1909_v61 = vmul.f32 %v4716_v56, %v5475_v25  ;;  %vm1915_vm2 = vweird.f32 %v4716_v56 }
 0x4e3   : > { %4717 = vrsqrt.f32 %v5479_v54  ;;  %vm1916_vm4 = vmor %vm1914_vm3, %vm1915_vm2  ;;  %vm1924_vm6 = vweird.f32 %v5479_v54 }
 0x4e4   : > { %v1910_v5 = vmul.f32 %v4716_v56, %v1909_v61  ;;  %v4280_v61 = vld [vmem:[#allocation16 + $0x1f0] sm:$0xf] }
 0x4e6   : > { %v1911_v12 = vmul.f32 0.5, %v1910_v5  ;;  %v4515_v5 = vld [vmem:[#allocation16 + $0xe4] sm:$0xf0] }
 0x4e7   : > { %v4145_v15 = vor.u32 %v4515_v5, %v4144_v4  ;;  %v4498_v5 = vld [vmem:[#allocation16 + $0x64] sm:$0xf] }
 0x4e8   : > { %v1912_v24 = vsub.f32 1.5, %v1911_v12  ;;  %v4081_v12 = vor.u32 %v4499_v2, %v4080_v1  ;;  %v4184_v2 = vld [vmem:[#allocation16 + $0x130] sm:$0xf] }
 0x4e9   : > { %v4718_v30 = vpop.eup %4717 }
 0x4ea   : > { %v1913_v33 = vmul.f32 %v4716_v56, %v1912_v24  ;;  %v1919_v34 = vmul.f32 %v4718_v30, %v5479_v54  ;;  %vm1925_vm5 = vweird.f32 %v4718_v30  ;;  %v4273_v24 = vor.u32 %v4547_v11, %v4272_v10  ;;  %v4256_v11 = vld [vmem:[#allocation16 + $0x1c0] sm:$0xf] }
 0x4eb   : > { %vm1926_vm7 = vmor %vm1924_vm6, %vm1925_vm5 }
 0x4ec   : > { %v1920_v36 = vmul.f32 %v4718_v30, %v1919_v34  ;;  %v1917_v27 = vsel %vm1916_vm4, %v4716_v56, %v1913_v33  ;;  %v4517_v56 = vld [vmem:[#allocation16 + $0xf4] sm:$0xf0]  ;;  %v4495_v33 = vld [vmem:[#allocation16 + $0x44] sm:$0xf0]  ;;  %v4128_v34 = vld [vmem:[#allocation16 + $0xc0] sm:$0xf] }
 0x4ed   : > { %v1928_v40 = vmul.f32 %v1917_v27, %v5457_v18  ;;  %v1929_v41 = vmul.f32 %v1917_v27, %v5459_v19  ;;  %v4501_v19 = vld [vmem:[#allocation16 + $0x74] sm:$0xf0]  ;;  %v4153_v3 = vor.u32 %v4517_v56, %v4152_v55  ;;  %v4056_v27 = vld [vmem:[#allocation16 + $0x30] sm:$0xf]  ;;  %v4500_v55 = vld [vmem:[#allocation16 + $0x74] sm:$0xf] }
 0x4ee   : > { %v1921_v37 = vmul.f32 0.5, %v1920_v36  ;;  %v4089_v0 = vor.u32 %v4501_v19, %v4088_v53  ;;  %v4065_v36 = vor.u32 %v4495_v33, %v4064_v31  ;;  %v4527_v19 = vld [vmem:[#allocation16 + $0x144] sm:$0xf0]  ;;  %v4090_v56 = vld [vmem:[#allocation16 + $0x78] sm:$0xf0] }
 0x4ef   : > { %v1937_v50 = vmul.f32 %v1933_v43, %v1928_v40  ;;  %v1938_v52 = vmul.f32 %v1934_v44, %v1929_v41  ;;  %v4509_v40 = vld [vmem:[#allocation16 + $0xb4] sm:$0xf0]  ;;  %v4057_v41 = vor.u32 %v4493_v38, %v4056_v27  ;;  %v4248_v31 = vld [vmem:[#allocation16 + $0x1b0] sm:$0xf]  ;;  %v4494_v38 = vld [vmem:[#allocation16 + $0x44] sm:$0xf] }
 0x4f0   : > { %v1922_v39 = vsub.f32 1.5, %v1921_v37  ;;  %v4129_v37 = vor.u32 %v4511_v35, %v4128_v34  ;;  %v4514_v34 = vld [vmem:[#allocation16 + $0xe4] sm:$0xf]  ;;  %v4146_v35 = vld [vmem:[#allocation16 + $0xe8] sm:$0xf0] }
 0x4f1   : > { %v5490_v59 = vadd.f32 %v1942_v46, %v1937_v50  ;;  %v5494_v57 = vadd.f32 %v1943_v47, %v1938_v52  ;;  %v4032_v52 = vld [vmem:[#allocation16] sm:$0xf]  ;;  %v4521_v27 = vld [vmem:[#allocation16 + $0x114] sm:$0xf0] }
 0x4f2   : > { %v1923_v45 = vmul.f32 %v4718_v30, %v1922_v39  ;;  %v4120_v39 = vld [vmem:[#allocation16 + $0xb0] sm:$0xf] }
 0x4f4   : > { %v1927_v25 = vsel %vm1926_vm7, %v4718_v30, %v1923_v45  ;;  %v4073_v30 = vor.u32 %v4497_v16, %v4072_v13  ;;  %v4112_v45 = vld [vmem:[#allocation16 + $0xa0] sm:$0xf]  ;;  %v4516_v13 = vld [vmem:[#allocation16 + $0xf4] sm:$0xf]  ;;  %v4154_v16 = vld [vmem:[#allocation16 + $0xf8] sm:$0xf0] }
 0x4f5   : > { %v1930_v48 = vmul.f32 %v1927_v25, %v5466_v28  ;;  %v1931_v49 = vmul.f32 %v1927_v25, %v5468_v29  ;;  %v4533_v28 = vld [vmem:[#allocation16 + $0x174] sm:$0xf0]  ;;  %v4507_v25 = vld [vmem:[#allocation16 + $0xa4] sm:$0xf0] }
 0x4f6   : > { %v4549_v29 = vld [vmem:[#allocation16 + $0x1f4] sm:$0xf0]  ;;  %v4217_v6 = vor.u32 %v4533_v28, %v4216_v58  ;;  %v4093_v28 = vor.u32 %v4500_v55, %v4090_v56  ;;  %v4510_v56 = vld [vmem:[#allocation16 + $0xc4] sm:$0xf] }
 0x4f7   : > { %v1939_v51 = vmul.f32 %v1933_v43, %v1930_v48  ;;  %v1940_v18 = vmul.f32 %v1934_v44, %v1931_v49  ;;  %v4281_v8 = vor.u32 %v4549_v29, %v4280_v61  ;;  %v4121_v43 = vor.u32 %v4509_v40, %v4120_v39  ;;  %v4491_v44 = vld [vmem:[#allocation16 + $0x24] sm:$0xf0]  ;;  %v4040_v48 = vld [vmem:[#allocation16 + $0x10] sm:$0xf]  ;;  %v4489_v49 = vld [vmem:[#allocation16 + $0x14] sm:$0xf0] }
 0x4f8   : > { %v4041_v50 = vor.u32 %v4489_v49, %v4040_v48  ;;  %v4104_v61 = vld [vmem:[#allocation16 + $0x90] sm:$0xf]  ;;  %v4505_v29 = vld [vmem:[#allocation16 + $0x94] sm:$0xf0]  ;;  %v4066_v39 = vld [vmem:[#allocation16 + $0x48] sm:$0xf0] }
 0x4f9   : > { %v5492_v54 = vadd.f32 %v1942_v46, %v1939_v51  ;;  %v5496_v60 = vadd.f32 %v1943_v47, %v1940_v18  ;;  %v4049_v46 = vor.u32 %v4491_v44, %v4048_v42  ;;  %v4113_v47 = vor.u32 %v4507_v25, %v4112_v45  ;;  %v4487_v51 = vld [vmem:[#allocation16 + $0x4] sm:$0xf0]  ;;  %v4192_v18 = vld [vmem:[#allocation16 + $0x140] sm:$0xf]  ;;  %v4512_v44 = vld [vmem:[#allocation16 + $0xd4] sm:$0xf] }
 0x4fa   : > { %v4033_v53 = vor.u32 %v4487_v51, %v4032_v52  ;;  %v4193_v58 = vor.u32 %v4527_v19, %v4192_v18  ;;  %v4069_v40 = vor.u32 %v4494_v38, %v4066_v39  ;;  %v4539_v42 = vld [vmem:[#allocation16 + $0x1a4] sm:$0xf0]  ;;  %v4138_v45 = vld [vmem:[#allocation16 + $0xd8] sm:$0xf0]  ;;  %v4492_v49 = vld [vmem:[#allocation16 + $0x34] sm:$0xf] }
 0x4fb   : > { %v1950_v62 = vpack.c.bf16 %v5492_v54, %v5490_v59  ;;  %v1951_v63 = vpack.c.bf16 %v5496_v60, %v5494_v57  ;;  %v4141_v25 = vor.u32 %v4512_v44, %v4138_v45  ;;  %v4532_v51 = vld [vmem:[#allocation16 + $0x174] sm:$0xf]  ;;  %v4218_v18 = vld [vmem:[#allocation16 + $0x178] sm:$0xf0]  ;;  %v4537_v55 = vld [vmem:[#allocation16 + $0x194] sm:$0xf0] }
 0x4fc   : > { %v4221_v19 = vor.u32 %v4532_v51, %v4218_v18  ;;  %v4106_v38 = vld [vmem:[#allocation16 + $0x98] sm:$0xf0]  ;;  %v4544_v39 = vld [vmem:[#allocation16 + $0x1d4] sm:$0xf]  ;;  %v4258_v51 = vld [vmem:[#allocation16 + $0x1c8] sm:$0xf0] }
 0x4fd   : > { %2354 = vmatmul.bf16.vlgmr.msrb.gmra.mxu0 %v1950_v62  ;;  %2368 = vmatmul.bf16.vlgmr.msrb.gmra.mxu1 %v1951_v63  ;;  %v4524_v45 = vld [vmem:[#allocation16 + $0x134] sm:$0xf] }
 0x4fe   : > { %2382 = vmatmul.bf16.vlgmr.msrb.gmra.mxu2 %v1950_v62  ;;  %2396 = vmatmul.bf16.vlgmr.msrb.gmra.mxu3 %v1951_v63 }
 0x4ff   : > { %2860 = vmatpush.bf16.msrb.mxu0 %v4089_v0  ;;  %2874 = vmatpush.bf16.msrb.mxu1 %v4153_v3  ;;  %v4545_v0 = vld [vmem:[#allocation16 + $0x1d4] sm:$0xf0] }
 0x500   : > { %2888 = vmatpush.bf16.msrb.mxu2 %v4217_v6  ;;  %2902 = vmatpush.bf16.msrb.mxu3 %v4281_v8  ;;  %v4525_v3 = vld [vmem:[#allocation16 + $0x134] sm:$0xf0]  ;;  %v4082_v6 = vld [vmem:[#allocation16 + $0x68] sm:$0xf0]  ;;  %v4096_v8 = vld [vmem:[#allocation16 + $0x80] sm:$0xf] }
 0x501   : > { %v4185_v4 = vor.u32 %v4525_v3, %v4184_v2  ;;  %v4085_v7 = vor.u32 %v4498_v5, %v4082_v6  ;;  %v4097_v10 = vor.u32 %v4503_v9, %v4096_v8  ;;  %v4224_v2 = vld [vmem:[#allocation16 + $0x180] sm:$0xf]  ;;  %v4535_v3 = vld [vmem:[#allocation16 + $0x184] sm:$0xf0]  ;;  %v4508_v6 = vld [vmem:[#allocation16 + $0xb4] sm:$0xf] }
 0x502   : > { %v4225_v5 = vor.u32 %v4535_v3, %v4224_v2  ;;  %v4548_v9 = vld [vmem:[#allocation16 + $0x1f4] sm:$0xf]  ;;  %v4170_v3 = vld [vmem:[#allocation16 + $0x118] sm:$0xf0] }
 0x503   : > { %2861 = vmatpush.bf16.msrb.mxu0 %v4081_v12  ;;  %2875 = vmatpush.bf16.msrb.mxu1 %v4145_v15  ;;  %v4543_v12 = vld [vmem:[#allocation16 + $0x1c4] sm:$0xf0]  ;;  %v4520_v2 = vld [vmem:[#allocation16 + $0x114] sm:$0xf] }
 0x504   : > { %2889 = vmatpush.bf16.msrb.mxu2 %v4209_v23  ;;  %2903 = vmatpush.bf16.msrb.mxu3 %v4273_v24  ;;  %v4257_v15 = vor.u32 %v4543_v12, %v4256_v11  ;;  %v4157_v23 = vor.u32 %v4516_v13, %v4154_v16  ;;  %v4177_v24 = vor.u32 %v4523_v21, %v4176_v20  ;;  %v4488_v12 = vld [vmem:[#allocation16 + $0x14] sm:$0xf]  ;;  %v4042_v13 = vld [vmem:[#allocation16 + $0x18] sm:$0xf0] }
 0x505   : > { %v4045_v16 = vor.u32 %v4488_v12, %v4042_v13  ;;  %v4202_v20 = vld [vmem:[#allocation16 + $0x158] sm:$0xf0]  ;;  %v4536_v13 = vld [vmem:[#allocation16 + $0x194] sm:$0xf] }
 0x507   : > { %2862 = vmatpush.bf16.msrb.mxu0 %v4073_v30  ;;  %2876 = vmatpush.bf16.msrb.mxu1 %v4137_v32  ;;  %v4077_v30 = vor.u32 %v4496_v26, %v4074_v17  ;;  %v4541_v32 = vld [vmem:[#allocation16 + $0x1b4] sm:$0xf0]  ;;  %v4546_v26 = vld [vmem:[#allocation16 + $0x1e4] sm:$0xf] }
 0x508   : > { %2890 = vmatpush.bf16.msrb.mxu2 %v4201_v22  ;;  %v4249_v33 = vor.u32 %v4541_v32, %v4248_v31  ;;  %v4149_v22 = vor.u32 %v4514_v34, %v4146_v35  ;;  %v4486_v32 = vld [vmem:[#allocation16 + $0x4] sm:$0xf]  ;;  %v5505_v35 = vld [vmem:[%s5572_s9] sm:$0xf] }
 0x509   : > { %v4526_v34 = vld [vmem:[#allocation16 + $0x144] sm:$0xf] }
 0x50b   : > { %2863 = vmatpush.bf16.msrb.mxu0 %v4065_v36  ;;  %2877 = vmatpush.bf16.msrb.mxu1 %v4129_v37  ;;  %v4168_v36 = vld [vmem:[#allocation16 + $0x110] sm:$0xf] }
 0x50c   : > { %2891 = vmatpush.bf16.msrb.mxu2 %v4193_v58  ;;  %v4169_v37 = vor.u32 %v4521_v27, %v4168_v36  ;;  %v4130_v58 = vld [vmem:[#allocation16 + $0xc8] sm:$0xf0] }
 0x50d   : > { %2410 = vmatmul.bf16.vlgmr.msra.gmra.mxu0 %v1950_v62  ;;  %2424 = vmatmul.bf16.vlgmr.msra.gmra.mxu1 %v1951_v63  ;;  %v4194_v36 = vld [vmem:[#allocation16 + $0x148] sm:$0xf0] }
 0x50e   : > { %2438 = vmatmul.bf16.vlgmr.msra.gmra.mxu2 %v1950_v62  ;;  %2452 = vmatmul.bf16.vlgmr.msra.gmra.mxu3 %v1951_v63  ;;  %v4264_v62 = vld [vmem:[#allocation16 + $0x1d0] sm:$0xf]  ;;  %v4105_v63 = vor.u32 %v4505_v29, %v4104_v61  ;;  %v4133_v61 = vor.u32 %v4510_v56, %v4130_v58  ;;  %v4490_v29 = vld [vmem:[#allocation16 + $0x24] sm:$0xf]  ;;  %v4197_v27 = vor.u32 %v4526_v34, %v4194_v36  ;;  %v4540_v58 = vld [vmem:[#allocation16 + $0x1b4] sm:$0xf] }
 0x50f   : > { %2864 = vmatpush.bf16.msrb.mxu0 %v4057_v41  ;;  %2878 = vmatpush.bf16.msrb.mxu1 %v4121_v43  ;;  %v4265_v1 = vor.u32 %v4545_v0, %v4264_v62  ;;  %v4240_v41 = vld [vmem:[#allocation16 + $0x1a0] sm:$0xf]  ;;  %v4050_v62 = vld [vmem:[#allocation16 + $0x28] sm:$0xf0]  ;;  %v4534_v36 = vld [vmem:[#allocation16 + $0x184] sm:$0xf] }
 0x510   : > { %2892 = vmatpush.bf16.msrb.mxu2 %v4185_v4  ;;  %v4241_v43 = vor.u32 %v4539_v42, %v4240_v41  ;;  %v4053_v0 = vor.u32 %v4490_v29, %v4050_v62  ;;  %v4266_v41 = vld [vmem:[#allocation16 + $0x1d8] sm:$0xf0] }
 0x511   : > { %2904 = vmatpush.bf16.msrb.mxu3 %v4265_v1  ;;  %v4210_v1 = vld [vmem:[#allocation16 + $0x168] sm:$0xf0]  ;;  %v4269_v44 = vor.u32 %v4544_v39, %v4266_v41 }
 0x513   : > { %2865 = vmatpush.bf16.msrb.mxu0 %v4049_v46  ;;  %2879 = vmatpush.bf16.msrb.mxu1 %v4113_v47  ;;  %v4160_v46 = vld [vmem:[#allocation16 + $0x100] sm:$0xf]  ;;  %v4519_v47 = vld [vmem:[#allocation16 + $0x104] sm:$0xf0] }
 0x514   : > { %2893 = vmatpush.bf16.msrb.mxu2 %v4177_v24  ;;  %v4161_v48 = vor.u32 %v4519_v47, %v4160_v46  ;;  %v4114_v24 = vld [vmem:[#allocation16 + $0xa8] sm:$0xf0]  ;;  %v2018_v46 = vperm.slane %v5505_v35, 0 }
 0x515   : > { %2905 = vmatpush.bf16.msrb.mxu3 %v4257_v15  ;;  %v4528_v15 = vld [vmem:[#allocation16 + $0x154] sm:$0xf] }
 0x516   : > { %v4205_v21 = vor.u32 %v4528_v15, %v4202_v20  ;;  %v4234_v15 = vld [vmem:[#allocation16 + $0x198] sm:$0xf0] }
 0x517   : > { %2866 = vmatpush.bf16.msrb.mxu0 %v4041_v50  ;;  %2880 = vmatpush.bf16.msrb.mxu1 %v4105_v63  ;;  %v4058_v50 = vld [vmem:[#allocation16 + $0x38] sm:$0xf0]  ;;  %v4530_v63 = vld [vmem:[#allocation16 + $0x164] sm:$0xf] }
 0x518   : > { %2894 = vmatpush.bf16.msrb.mxu2 %v4169_v37  ;;  %v4061_v52 = vor.u32 %v4492_v49, %v4058_v50  ;;  %v4213_v4 = vor.u32 %v4530_v63, %v4210_v1  ;;  %v4504_v37 = vld [vmem:[#allocation16 + $0x94] sm:$0xf]  ;;  %v4098_v49 = vld [vmem:[#allocation16 + $0x88] sm:$0xf0]  ;;  %v4542_v50 = vld [vmem:[#allocation16 + $0x1c4] sm:$0xf] }
 0x519   : > { %2906 = vmatpush.bf16.msrb.mxu3 %v4249_v33  ;;  %v4034_v33 = vld [vmem:[#allocation16 + $0x8] sm:$0xf0]  ;;  %v4261_v18 = vor.u32 %v4542_v50, %v4258_v51 }
 0x51b   : > { %2867 = vmatpush.bf16.msrb.mxu0 %v4033_v53  ;;  %2881 = vmatpush.bf16.msrb.mxu1 %v4097_v10  ;;  %v4232_v53 = vld [vmem:[#allocation16 + $0x190] sm:$0xf]  ;;  %v4282_v10 = vld [vmem:[#allocation16 + $0x1f8] sm:$0xf0] }
 0x51c   : > { %2895 = vmatpush.bf16.msrb.mxu2 %v4161_v48  ;;  %v4285_v11 = vor.u32 %v4548_v9, %v4282_v10  ;;  %v4502_v48 = vld [vmem:[#allocation16 + $0x84] sm:$0xf]  ;;  %v4162_v10 = vld [vmem:[#allocation16 + $0x108] sm:$0xf0] }
 0x51d   : > { %2907 = vmatpush.bf16.msrb.mxu3 %v4241_v43  ;;  %v4518_v9 = vld [vmem:[#allocation16 + $0x104] sm:$0xf] }
 0x51e   : > { %v4165_v20 = vor.u32 %v4518_v9, %v4162_v10 }
 0x51f   : > { %2916 = vmatpush.bf16.msra.mxu0 %v4093_v28  ;;  %2930 = vmatpush.bf16.msra.mxu1 %v4157_v23  ;;  %v4233_v28 = vor.u32 %v4537_v55, %v4232_v53  ;;  %v4506_v23 = vld [vmem:[#allocation16 + $0xa4] sm:$0xf] }
 0x520   : > { %2944 = vmatpush.bf16.msra.mxu2 %v4221_v19  ;;  %v4117_v17 = vor.u32 %v4506_v23, %v4114_v24  ;;  %v4522_v53 = vld [vmem:[#allocation16 + $0x124] sm:$0xf]  ;;  %v4178_v19 = vld [vmem:[#allocation16 + $0x128] sm:$0xf0]  ;;  %v4237_v24 = vor.u32 %v4536_v13, %v4234_v15 }
 0x521   : > { %2908 = vmatpush.bf16.msrb.mxu3 %v4233_v28  ;;  %v4181_v56 = vor.u32 %v4522_v53, %v4178_v19  ;;  %v4250_v28 = vld [vmem:[#allocation16 + $0x1b8] sm:$0xf0] }
 0x522   : > { %v4253_v63 = vor.u32 %v4540_v58, %v4250_v28 }
 0x523   : > { %2917 = vmatpush.bf16.msra.mxu0 %v4085_v7  ;;  %2931 = vmatpush.bf16.msra.mxu1 %v4149_v22  ;;  %v4122_v7 = vld [vmem:[#allocation16 + $0xb8] sm:$0xf0]  ;;  %v4037_v22 = vor.u32 %v4486_v32, %v4034_v33 }
 0x524   : > { %v4125_v8 = vor.u32 %v4508_v6, %v4122_v7  ;;  %2945 = vmatpush.bf16.msra.mxu2 %v4213_v4  ;;  %v4538_v4 = vld [vmem:[#allocation16 + $0x1a4] sm:$0xf]  ;;  %v4173_v7 = vor.u32 %v4520_v2, %v4170_v3 }
 0x525   : > { %2909 = vmatpush.bf16.msrb.mxu3 %v4225_v5 }
 0x527   : > { %2918 = vmatpush.bf16.msra.mxu0 %v4077_v30  ;;  %2932 = vmatpush.bf16.msra.mxu1 %v4141_v25  ;;  %v4274_v30 = vld [vmem:[#allocation16 + $0x1e8] sm:$0xf0]  ;;  %v4186_v25 = vld [vmem:[#allocation16 + $0x138] sm:$0xf0] }
 0x528   : > { %2946 = vmatpush.bf16.msra.mxu2 %v4205_v21  ;;  %v4277_v31 = vor.u32 %v4546_v26, %v4274_v30  ;;  %v4189_v47 = vor.u32 %v4524_v45, %v4186_v25  ;;  %v2021_v45 = vperm.slane %v5505_v35, 3 }
 0x529   : > { %2958 = vmatpush.bf16.msra.mxu3 %v4285_v11 }
 0x52b   : > { %2919 = vmatpush.bf16.msra.mxu0 %v4069_v40  ;;  %2933 = vmatpush.bf16.msra.mxu1 %v4133_v61  ;;  %v4109_v40 = vor.u32 %v4504_v37, %v4106_v38  ;;  %v2019_v61 = vperm.slane %v5505_v35, 1 }
 0x52c   : > { %2947 = vmatpush.bf16.msra.mxu2 %v4197_v27  ;;  %v4226_v27 = vld [vmem:[#allocation16 + $0x188] sm:$0xf0] }
 0x52d   : > { %2959 = vmatpush.bf16.msra.mxu3 %v4277_v31  ;;  %v4229_v38 = vor.u32 %v4534_v36, %v4226_v27 }
 0x52f   : > { %2920 = vmatpush.bf16.msra.mxu0 %v4061_v52  ;;  %2934 = vmatpush.bf16.msra.mxu1 %v4125_v8  ;;  %v4101_v52 = vor.u32 %v4502_v48, %v4098_v49  ;;  %v4242_v8 = vld [vmem:[#allocation16 + $0x1a8] sm:$0xf0] }
 0x530   : > { %2948 = vmatpush.bf16.msra.mxu2 %v4189_v47  ;;  %v4245_v11 = vor.u32 %v4538_v4, %v4242_v8  ;;  %v2534_v4 = vld [vmem:[%s5574_s11] sm:$0x3] }
 0x531   : > { %2960 = vmatpush.bf16.msra.mxu3 %v4269_v44 }
 0x533   : > { %2921 = vmatpush.bf16.msra.mxu0 %v4053_v0  ;;  %2935 = vmatpush.bf16.msra.mxu1 %v4117_v17 }
 0x534   : > { %2949 = vmatpush.bf16.msra.mxu2 %v4181_v56 }
 0x535   : > { %2961 = vmatpush.bf16.msra.mxu3 %v4261_v18 }
 0x537   : > { %2922 = vmatpush.bf16.msra.mxu0 %v4045_v16  ;;  %2936 = vmatpush.bf16.msra.mxu1 %v4109_v40 }
 0x538   : > { %2950 = vmatpush.bf16.msra.mxu2 %v4173_v7  ;;  %v2537_v7 = vperm.slane %v2534_v4, 1 }
 0x539   : > { %2962 = vmatpush.bf16.msra.mxu3 %v4253_v63 }
 0x53b   : > { %2923 = vmatpush.bf16.msra.mxu0 %v4037_v22  ;;  %2937 = vmatpush.bf16.msra.mxu1 %v4101_v52  ;;  %v2020_v22 = vperm.slane %v5505_v35, 2 }
 0x53c   : > { %2951 = vmatpush.bf16.msra.mxu2 %v4165_v20 }
 0x53d   : > { %2963 = vmatpush.bf16.msra.mxu3 %v4245_v11 }
 0x541   : > { %2964 = vmatpush.bf16.msra.mxu3 %v4237_v24 }
 0x545   : > { %2965 = vmatpush.bf16.msra.mxu3 %v4229_v38 }
 0x57a   : > { %v2355_v42 = vpop.f32.mrf.mxu0  ;;  %v2369_v43 = vpop.f32.mrf.mxu1 }
 0x57b   : > { %v2356_v55 = vadd.f32 %v2355_v42, %v2018_v46 }
 0x57d   : > { %v2370_v5 = vadd.f32 %v2369_v43, %v2356_v55 }
 0x57f   : > { %v2458_v21 = vmax.f32 %v2370_v5, 0.0  ;;  %v2536_v5 = vperm.slane %v2534_v4, 0 }
 0x581   : > { %v2383_v29 = vpop.f32.mrf.mxu2  ;;  %v2397_v62 = vpop.f32.mrf.mxu3 }
 0x582   : > { %v2357_v0 = vpop.f32.mrf.mxu0  ;;  %v2371_v1 = vpop.f32.mrf.mxu1  ;;  %v2384_v16 = vadd.f32 %v2383_v29, %v2019_v61 }
 0x583   : > { %v2358_v6 = vadd.f32 %v2357_v0, %v2018_v46 }
 0x584   : > { %v2398_v31 = vadd.f32 %v2397_v62, %v2384_v16 }
 0x585   : > { %v2372_v12 = vadd.f32 %v2371_v1, %v2358_v6 }
 0x586   : > { %v2459_v39 = vmax.f32 %v2398_v31, 0.0 }
 0x587   : > { %v2462_v23 = vmax.f32 %v2372_v12, 0.0 }
 0x589   : > { %v2466_v26 = vpack.c.bf16 %v2462_v23, %v2458_v21  ;;  %v2385_v17 = vpop.f32.mrf.mxu2  ;;  %v2399_v30 = vpop.f32.mrf.mxu3 }
 0x58a   : > { %v2386_v32 = vadd.f32 %v2385_v17, %v2019_v61  ;;  %v2411_v33 = vpop.f32.mrf.mxu0  ;;  %v2425_v34 = vpop.f32.mrf.mxu1 }
 0x58b   : > { %2868 = vmatmul.bf16.vlgmr.msrb.gmra.mxu0 %v2466_v26  ;;  %v2412_v41 = vadd.f32 %v2411_v33, %v2020_v22 }
 0x58c   : > { %v2400_v37 = vadd.f32 %v2399_v30, %v2386_v32 }
 0x58d   : > { %v2426_v46 = vadd.f32 %v2425_v34, %v2412_v41 }
 0x58e   : > { %v2463_v40 = vmax.f32 %v2400_v37, 0.0 }
 0x58f   : > { %v2460_v52 = vmax.f32 %v2426_v46, 0.0 }
 0x590   : > { %v2467_v42 = vpack.c.bf16 %v2463_v40, %v2459_v39 }
 0x591   : > { %v2439_v43 = vpop.f32.mrf.mxu2  ;;  %v2453_v44 = vpop.f32.mrf.mxu3 }
 0x592   : > { %2882 = vmatmul.bf16.vlgmr.msrb.gmra.mxu1 %v2467_v42  ;;  %v2413_v25 = vpop.f32.mrf.mxu0  ;;  %v2427_v48 = vpop.f32.mrf.mxu1  ;;  %v2440_v50 = vadd.f32 %v2439_v43, %v2021_v45 }
 0x593   : > { %v2414_v47 = vadd.f32 %v2413_v25, %v2020_v22 }
 0x594   : > { %v2454_v19 = vadd.f32 %v2453_v44, %v2440_v50 }
 0x595   : > { %v2428_v49 = vadd.f32 %v2427_v48, %v2414_v47 }
 0x596   : > { %v2461_v28 = vmax.f32 %v2454_v19, 0.0 }
 0x597   : > { %v2464_v51 = vmax.f32 %v2428_v49, 0.0 }
 0x599   : > { %v2468_v18 = vpack.c.bf16 %v2464_v51, %v2460_v52  ;;  %v2441_v53 = vpop.f32.mrf.mxu2  ;;  %v2455_v56 = vpop.f32.mrf.mxu3 }
 0x59a   : > { %v2442_v55 = vadd.f32 %v2441_v53, %v2021_v45 }
 0x59b   : > { %2896 = vmatmul.bf16.vlgmr.msrb.gmra.mxu2 %v2468_v18  ;;  %2924 = vmatmul.bf16.vlgmr.msra.gmra.mxu0 %v2466_v26 }
 0x59c   : > { %v2456_v58 = vadd.f32 %v2455_v56, %v2442_v55 }
 0x59e   : > { %v2465_v61 = vmax.f32 %v2456_v58, 0.0 }
 0x5a0   : > { %v2469_v35 = vpack.c.bf16 %v2465_v61, %v2461_v28 }
 0x5a2   : > { %2910 = vmatmul.bf16.vlgmr.msrb.gmra.mxu3 %v2469_v35  ;;  %2938 = vmatmul.bf16.vlgmr.msra.gmra.mxu1 %v2467_v42 }
 0x5ab   : > { %2952 = vmatmul.bf16.vlgmr.msra.gmra.mxu2 %v2468_v18 }
 0x5b2   : > { %2966 = vmatmul.bf16.vlgmr.msra.gmra.mxu3 %v2469_v35 }
 0x608   : > { %v2869_v29 = vpop.f32.mrf.mxu0 }
 0x609   : > { %v2870_v10 = vadd.f32 %v2869_v29, %v2536_v5 }
 0x60f   : > { %v2883_v62 = vpop.f32.mrf.mxu1 }
 0x610   : > { %v2871_v0 = vpop.f32.mrf.mxu0  ;;  %v2884_v12 = vadd.f32 %v2883_v62, %v2870_v10 }
 0x611   : > { %v2872_v26 = vadd.f32 %v2871_v0, %v2536_v5 }
 0x617   : > { %v2885_v1 = vpop.f32.mrf.mxu1 }
 0x618   : > { %v2925_v6 = vpop.f32.mrf.mxu0  ;;  %v2886_v31 = vadd.f32 %v2885_v1, %v2872_v26 }
 0x619   : > { %v2926_v13 = vadd.f32 %v2925_v6, %v2537_v7 }
 0x61e   : > { %v2897_v63 = vpop.f32.mrf.mxu2 }
 0x61f   : > { %v2939_v8 = vpop.f32.mrf.mxu1  ;;  %v2898_v15 = vadd.f32 %v2897_v63, %v2884_v12  ;;  %v2976_v63 = vld [vmem:[%s5612_s13] sm:$0x3] }
 0x620   : > { %v2940_v16 = vadd.f32 %v2939_v8, %v2926_v13  ;;  %v2927_v23 = vpop.f32.mrf.mxu0  ;;  %v3029_v4 = vperm.slane %v2976_v63, 0  ;;  %v3030_v5 = vperm.slane %v2976_v63, 1 }
 0x621   : > { %v2928_v32 = vadd.f32 %v2927_v23, %v2537_v7 }
 0x625   : > { %v2911_v2 = vpop.f32.mrf.mxu3 }
 0x626   : > { %v2899_v3 = vpop.f32.mrf.mxu2  ;;  %v2912_v20 = vadd.f32 %v2911_v2, %v2898_v15  ;;  %v2977_v2 = vld [vmem:[%s5613_s15] sm:$0x3] }
 0x627   : > { %v2941_v30 = vpop.f32.mrf.mxu1  ;;  %v2900_v36 = vadd.f32 %v2899_v3, %v2886_v31  ;;  %v3038_v8 = vperm.slane %v2977_v2, 0 }
 0x628   : > { %v2972_v33 = vadd.f32 %v2912_v20, %v5490_v59  ;;  %v2942_v27 = vadd.f32 %v2941_v30, %v2928_v32 }
 0x62d   : > { %v2913_v9 = vpop.f32.mrf.mxu3 }
 0x62e   : > { %v2953_v11 = vpop.f32.mrf.mxu2  ;;  %v2914_v38 = vadd.f32 %v2913_v9, %v2900_v36  ;;  %v3039_v9 = vperm.slane %v2977_v2, 1 }
 0x62f   : > { %v2954_v21 = vadd.f32 %v2953_v11, %v2940_v16 }
 0x630   : > { %v2974_v42 = vadd.f32 %v2914_v38, %v5492_v54 }
 0x635   : > { %v2967_v24 = vpop.f32.mrf.mxu3 }
 0x636   : > { %v2968_v17 = vadd.f32 %v2967_v24, %v2954_v21  ;;  %v2955_v22 = vpop.f32.mrf.mxu2 }
 0x637   : > { %v2956_v39 = vadd.f32 %v2955_v22, %v2942_v27 }
 0x638   : > { %v2973_v34 = vadd.f32 %v2968_v17, %v5494_v57 }
 0x63a   : > { %v2978_v37 = vadd.f32 %v2973_v34, %v2972_v33 }
 0x63c   : > { %2979 = vadd.xlane.f32.xlu0 %v2978_v37 }
 0x63d   : > { %v2969_v40 = vpop.f32.mrf.mxu3 }
 0x63e   : > { %v2970_v41 = vadd.f32 %v2969_v40, %v2956_v39 }
 0x640   : > { %v2975_v43 = vadd.f32 %v2970_v41, %v5496_v60 }
 0x642   : > { %v2981_v44 = vadd.f32 %v2975_v43, %v2974_v42 }
 0x644   : > { %2982 = vadd.xlane.f32.xlu1 %v2981_v44 }
 0x6af   : > { %v2980_v45 = vpop.xlane.xlu0 %2979 }
 0x6b0   : > { %v2984_v59 = vmul.f32 %v2980_v45, %v5454_v14 }
 0x6b2   : > { %v2986_v25 = vsub.f32 %v2972_v33, %v2984_v59  ;;  %v2987_v57 = vsub.f32 %v2973_v34, %v2984_v59 }
 0x6b4   : > { %v2990_v46 = vmul.f32 %v2986_v25, %v2986_v25  ;;  %v2991_v47 = vmul.f32 %v2987_v57, %v2987_v57 }
 0x6b6   : > { %v2994_v48 = vadd.f32 %v2991_v47, %v2990_v46 }
 0x6b7   : > { %v2983_v49 = vpop.xlane.xlu1 %2982 }
 0x6b8   : > { %v2985_v50 = vmul.f32 %v2983_v49, %v5454_v14  ;;  %2995 = vadd.xlane.f32.xlu2 %v2994_v48 }
 0x6ba   : > { %v2988_v52 = vsub.f32 %v2974_v42, %v2985_v50  ;;  %v2989_v51 = vsub.f32 %v2975_v43, %v2985_v50 }
 0x6bc   : > { %v2992_v18 = vmul.f32 %v2988_v52, %v2988_v52  ;;  %v2993_v54 = vmul.f32 %v2989_v51, %v2989_v51 }
 0x6be   : > { %v2997_v53 = vadd.f32 %v2993_v54, %v2992_v18 }
 0x6c0   : > { %2998 = vadd.xlane.f32.xlu0 %v2997_v53 }
 0x72b   : > { %v2996_v60 = vpop.xlane.xlu2 %2995 }
 0x72c   : > { %v3000_v19 = vmul.f32 %v2996_v60, %v5454_v14 }
 0x72e   : > { %v3002_v55 = vadd.f32 1e-05, %v3000_v19 }
 0x730   : > { %4719 = vrsqrt.f32 %v3002_v55  ;;  %vm3010_vm9 = vweird.f32 %v3002_v55 }
 0x733   : > { %v2999_v56 = vpop.xlane.xlu0 %2998 }
 0x734   : > { %v3001_v58 = vmul.f32 %v2999_v56, %v5454_v14 }
 0x736   : > { %v4720_v28 = vpop.eup %4719  ;;  %v3003_v61 = vadd.f32 1e-05, %v3001_v58 }
 0x737   : > { %v3005_v35 = vmul.f32 %v4720_v28, %v3002_v55  ;;  %vm3011_vm8 = vweird.f32 %v4720_v28 }
 0x738   : > { %4721 = vrsqrt.f32 %v3003_v61  ;;  %vm3012_vm10 = vmor %vm3010_vm9, %vm3011_vm8  ;;  %vm3020_vm12 = vweird.f32 %v3003_v61 }
 0x739   : > { %v3006_v29 = vmul.f32 %v4720_v28, %v3005_v35 }
 0x73b   : > { %v3007_v62 = vmul.f32 0.5, %v3006_v29 }
 0x73d   : > { %v3008_v0 = vsub.f32 1.5, %v3007_v62 }
 0x73e   : > { %v4722_v1 = vpop.eup %4721 }
 0x73f   : > { %v3009_v3 = vmul.f32 %v4720_v28, %v3008_v0  ;;  %v3015_v14 = vmul.f32 %v4722_v1, %v3003_v61  ;;  %vm3021_vm11 = vweird.f32 %v4722_v1 }
 0x740   : > { %vm3022_vm13 = vmor %vm3020_vm12, %vm3021_vm11 }
 0x741   : > { %v3013_v6 = vsel %vm3012_vm10, %v4720_v28, %v3009_v3  ;;  %v3016_v7 = vmul.f32 %v4722_v1, %v3015_v14 }
 0x742   : > { %v3024_v10 = vmul.f32 %v3013_v6, %v2986_v25  ;;  %v3025_v11 = vmul.f32 %v3013_v6, %v2987_v57 }
 0x743   : > { %v3017_v12 = vmul.f32 0.5, %v3016_v7 }
 0x744   : > { %v3033_v13 = vmul.f32 %v3029_v4, %v3024_v10  ;;  %v3034_v15 = vmul.f32 %v3030_v5, %v3025_v11 }
 0x745   : > { %v3018_v16 = vsub.f32 1.5, %v3017_v12 }
 0x746   : > { %v3042_v20 = vadd.f32 %v3038_v8, %v3033_v13  ;;  %v3043_v21 = vadd.f32 %v3039_v9, %v3034_v15 }
 0x747   : > { %v3019_v23 = vmul.f32 %v4722_v1, %v3018_v16 }
 0x748   : > { %v3046_v24 = vpack.c.bf16 %v3043_v21, %v3042_v20 }
 0x749   : > { %v3023_v26 = vsel %vm3022_vm13, %v4722_v1, %v3019_v23 }
 0x74a   : > { %v3026_v17 = vmul.f32 %v3023_v26, %v2988_v52  ;;  %v3027_v30 = vmul.f32 %v3023_v26, %v2989_v51  ;;  %3048 = vst [vmem:[%s682_s1] sm:$0xff] %v3046_v24 }
 0x74c   : > { %v3035_v31 = vmul.f32 %v3029_v4, %v3026_v17  ;;  %v3036_v32 = vmul.f32 %v3030_v5, %v3027_v30 }
 0x74e   : > { %v3044_v33 = vadd.f32 %v3038_v8, %v3035_v31  ;;  %v3045_v34 = vadd.f32 %v3039_v9, %v3036_v32 }
 0x750   : > { %v3047_v22 = vpack.c.bf16 %v3045_v34, %v3044_v33 }
 0x752   : > { %3049 = vst [vmem:[%s682_s1 + $0x8] sm:$0xff] %v3047_v22 }
 0x753   : > { %5050 = shalt.err (!%p5047_p9)
}
 0x754   : > { %s5127_s0 = smov 128   ;;  %s5128_s8 = smov 8  }
 0x755   : > { %4589 = dma.vmem_to_hbm [thread:$0]  (%p5329_p13), %s3064_s19, 256, %s3066_s27, %s3051_s17, %s5127_s0, %s5127_s0, %s5128_s8  }
 0x756 PF: > { %s3080_s3 = sand.u32 1, %s5097_s21   ;;  %p5615_p10 = scmp.ge.s32.totalorder %s5109_s24, 2 }
 0x757   : > { %s3081_s2 = scalar_lea.sflag [#allocation4], %s3080_s3 }
 0x758   : > { %p4624_p11 = pnand %p5615_p10, %p5334_p4 }
 0x75a   : > { %p4625_p0 = pneg %p4624_p11 }
 0x75c   : > { %5092 = dma.done.wait (%p4625_p0), %s3081_s2, 256  }
 0x75d   : > { %5094 = vsyncadd (%p4625_p0), %s3081_s2, 4294967040  ;;  %p34_p2 = scmp.ge.s32.totalorder %s5309_s16, 4   ;;  %s5616_s21 = smov %s5101_s22 }
 0x75e   : > { %s5617_s22 = smov %s5105_s23  ;;  %s5618_s23 = smov %s5321_s18 }
 0x75f   : > { %s5619_s24 = smov %s5309_s16  ;;  %36 = sbr.rel (!%p34_p2) target bundleno = 22 (0x16), region = 167 }
 0x764   :  { %3087 = vsyncpa [#allocation3], 1 }
 0x765   :  { %3089 = vsyncpa [#allocation3 + $0x1], 1 }
 0x766   :  { %3090 = vsyncpa [#allocation6], 1 }
 0x767   :  { %3091 = vsyncpa [#allocation9], 1 }
 0x768   :  { %3092 = vsyncpa [#allocation12], 1 }
 0x769   :  { %3093 = vsyncpa [#allocation15], 1 }
 0x76a   :  { %3094 = vsyncpa [#allocation18], 1 }
 0x76b   :  { %3095 = vsyncpa [#allocation4], 1 }
 0x76c   :  { %3097 = vsyncpa [#allocation4 + $0x1], 1 }

</bundles_post_ra>
